<compile_context>
chip_gen: v6e
topology: v6e:2x2x1
jax: 0.10.0
libtpu: 0.0.40
codegen_flags: <defaults>
</compile_context>

<pallas_src>
import numpy as np
import jax
import jax.numpy as jnp
from jax.experimental import pallas as pl
from jax.experimental.pallas import tpu as pltpu

# ----------------------------- configuration --------------------------------
SEQ_LEN   = 5                      # module default
EMBED     = 16                     # module default
NHEAD     = 4                      # module default
HEAD_DIM  = EMBED // NHEAD
DIM_FF    = 256                    # kept small (module default 2048); all ratios preserved
IN_FEATS  = 15                     # hard-coded in the module (Conv1d(15, embed_size, ...))
K         = 5                      # conv1d_kernel_size (odd)
PAD       = K - 1                  # conv1d_padding
BATCH     = SEQ_LEN                # required by the PositionalEncoding broadcast (see NOTE)
LN_EPS    = 1e-5

VMEM_SPEC = pl.BlockSpec(memory_space=pltpu.MemorySpace.VMEM)


# --------------------------- single fused kernel -----------------------------
def forecasting_kernel(xcol_ref, wconv_ref, ebias_ref,
                       wqkv_ref, bqkv_ref, wo_ref, bo_ref, mask_ref,
                       ln1w_ref, ln1b_ref, we1_ref, be1_ref, we2_ref, be2_ref,
                       ln2w_ref, ln2b_ref,
                       mw1_ref, mb1_ref, mw2_ref, mb2_ref, mw3_ref, mb3_ref,
                       mw4_ref, mb4_ref, mw5_ref, mb5_ref, mwo_ref, mbo_ref,
                       out_ref):
    def layer_norm(x, g, b):
        mu  = jnp.mean(x, axis=-1, keepdims=True)
        xc  = x - mu
        var = jnp.mean(xc * xc, axis=-1, keepdims=True)
        return xc * jax.lax.rsqrt(var + LN_EPS) * g + b

    # ---- Conv1d embedding as one im2col matmul + (bias + positional encoding) ----
    # xcol: (B*S, K*C_in), wconv: (K*C_in, E), ebias: (B*S, E) = conv bias + PE rows
    h2 = jnp.dot(xcol_ref[...], wconv_ref[...],
                 preferred_element_type=jnp.float32) + ebias_ref[...]      # (B*S, E)

    # ---- Transformer encoder layer (post-LN, relu activation) ----
    qkv = jnp.dot(h2, wqkv_ref[...],
                  preferred_element_type=jnp.float32) + bqkv_ref[...]      # (B*S, 3E)
    q = qkv[:, 0 * EMBED:1 * EMBED].reshape(BATCH, SEQ_LEN, EMBED)
    k = qkv[:, 1 * EMBED:2 * EMBED].reshape(BATCH, SEQ_LEN, EMBED)
    v = qkv[:, 2 * EMBED:3 * EMBED].reshape(BATCH, SEQ_LEN, EMBED)

    scale  = 1.0 / float(np.sqrt(HEAD_DIM))
    mask_b = jnp.broadcast_to(mask_ref[...], (BATCH, SEQ_LEN, SEQ_LEN))    # hoisted once
    wo_all = wo_ref[...]                                                   # (E, E), loaded once

    # accumulate the output projection per head: out_proj(concat(heads)) == sum_h head_h @ Wo_h
    attn = jnp.broadcast_to(bo_ref[...], (BATCH * SEQ_LEN, EMBED))
    for hd in range(NHEAD):
        sl = slice(hd * HEAD_DIM, (hd + 1) * HEAD_DIM)
        s = jnp.einsum('bsd,btd->bst', q[:, :, sl], k[:, :, sl],
                       preferred_element_type=jnp.float32) * scale + mask_b
        s = s - jnp.max(s, axis=-1, keepdims=True)
        p = jnp.exp(s)
        p = p * pl.reciprocal(jnp.sum(p, axis=-1, keepdims=True), approx=True)
        head = jnp.einsum('bst,btd->bsd', p, v[:, :, sl],
                          preferred_element_type=jnp.float32)              # (B, S, Dh)
        attn = attn + jnp.dot(head.reshape(BATCH * SEQ_LEN, HEAD_DIM),
                              wo_all[sl, :],
                              preferred_element_type=jnp.float32)

    x1 = layer_norm(h2 + attn, ln1w_ref[...], ln1b_ref[...])
    ff = jnp.maximum(jnp.dot(x1, we1_ref[...],
                             preferred_element_type=jnp.float32) + be1_ref[...], 0.0)
    ff = jnp.dot(ff, we2_ref[...],
                 preferred_element_type=jnp.float32) + be2_ref[...]
    enc = layer_norm(x1 + ff, ln2w_ref[...], ln2b_ref[...])                # (B*S, E)

    # ---- MLP head; (B, S*E) flatten folded into the first matmul ----
    enc3 = enc.reshape(BATCH, SEQ_LEN, EMBED)
    mw1  = mw1_ref[...]                                                    # (S*E, DIM_FF)
    acc = jnp.zeros((BATCH, DIM_FF), jnp.float32)
    for t in range(SEQ_LEN):
        acc = acc + jnp.dot(enc3[:, t, :], mw1[t * EMBED:(t + 1) * EMBED, :],
                            preferred_element_type=jnp.float32)
    x = jnp.maximum(acc + mb1_ref[...], 0.0)
    for (w_ref, b_ref) in ((mw2_ref, mb2_ref), (mw3_ref, mb3_ref),
                           (mw4_ref, mb4_ref), (mw5_ref, mb5_ref)):
        x = jnp.maximum(jnp.dot(x, w_ref[...],
                                preferred_element_type=jnp.float32) + b_ref[...], 0.0)
    out_ref[...] = jnp.dot(x, mwo_ref[...],
                           preferred_element_type=jnp.float32) + mbo_ref[...]


# --------------------------------- wrapper ------------------------------------
def run_forecasting_model(x, params):
    (w_conv_t, b_conv, pe, wqkv, bqkv, wo, bo, mask,
     ln1w, ln1b, we1, be1, we2, be2, ln2w, ln2b,
     mw1, mb1, mw2, mb2, mw3, mb3, mw4, mb4, mw5, mb5, mwo, mbo) = params

    # F.pad(x, (0,0, PAD, 0), value=-1) + im2col: row (b,t) = concat_k x_pad[b, t+k, :]
    x_pad = jnp.pad(x, ((0, 0), (PAD, 0), (0, 0)), constant_values=-1.0)
    x_col = jnp.concatenate([x_pad[:, k:k + SEQ_LEN, :] for k in range(K)], axis=-1)
    x_col = x_col.reshape(BATCH * SEQ_LEN, K * IN_FEATS)                   # (B*S, K*C_in)

    # flattened conv weight matching the im2col column order (k-major, then channel)
    w_flat = w_conv_t.reshape(K * IN_FEATS, EMBED)                         # (K*C_in, E)

    # conv bias + positional encoding folded into one additive term.
    # Reference quirk: (S,1,E) + (B,S,E) broadcast means row (b,t) gets pe[b]  (needs B == S).
    pe_rows    = jnp.repeat(pe, SEQ_LEN, axis=0)                           # (B*S, E)
    embed_bias = b_conv + pe_rows                                          # (B*S, E)

    out = pl.pallas_call(
        forecasting_kernel,
        out_shape=jax.ShapeDtypeStruct((BATCH, 1), jnp.float32),
        in_specs=[VMEM_SPEC] * 28,
        out_specs=VMEM_SPEC,
    )(x_col, w_flat, embed_bias,
      wqkv, bqkv, wo, bo, mask,
      ln1w, ln1b, we1, be1, we2, be2, ln2w, ln2b,
      mw1, mb1, mw2, mb2, mw3, mb3, mw4, mb4, mw5, mb5, mwo, mbo)
    return out


def make_params(key):
    keys = iter(jax.random.split(key, 32))

    def init(shape, scale=0.05):
        return (scale * jax.random.normal(next(keys), shape)).astype(jnp.float32)

    # Conv1d(15, EMBED, K): weight (E, C_in, K) -> pre-transposed to (K, C_in, E)
    w_conv = init((EMBED, IN_FEATS, K))
    w_conv_t = jnp.transpose(w_conv, (2, 1, 0))
    b_conv = init((1, EMBED))

    # PositionalEncoding buffer (max_len = SEQ_LEN)
    position = jnp.arange(SEQ_LEN, dtype=jnp.float32)[:, None]
    div_term = jnp.exp(jnp.arange(0, EMBED, 2, dtype=jnp.float32)
                       * (-np.log(10000.0) / EMBED))
    pe = jnp.zeros((SEQ_LEN, EMBED), jnp.float32)
    pe = pe.at[:, 0::2].set(jnp.sin(position * div_term))
    pe = pe.at[:, 1::2].set(jnp.cos(position * div_term))

    # TransformerEncoderLayer params (weights stored (in, out))
    wqkv = init((EMBED, 3 * EMBED))
    bqkv = init((1, 3 * EMBED))
    wo   = init((EMBED, EMBED))
    bo   = init((1, EMBED))
    ln1w = jnp.ones((1, EMBED), jnp.float32)
    ln1b = jnp.zeros((1, EMBED), jnp.float32)
    we1  = init((EMBED, DIM_FF))
    be1  = init((1, DIM_FF))
    we2  = init((DIM_FF, EMBED))
    be2  = init((1, EMBED))
    ln2w = jnp.ones((1, EMBED), jnp.float32)
    ln2b = jnp.zeros((1, EMBED), jnp.float32)

    # causal mask: large-negative strictly above the diagonal (additive src_mask)
    idx = jnp.arange(SEQ_LEN)
    mask = jnp.where(idx[None, :] > idx[:, None], -1e30, 0.0).astype(jnp.float32)

    # MLP head (weights stored (in, out))
    d1, d2, d3, d4, d5 = DIM_FF, DIM_FF // 2, DIM_FF // 4, DIM_FF // 16, DIM_FF // 64
    mw1, mb1 = init((SEQ_LEN * EMBED, d1)), init((1, d1))
    mw2, mb2 = init((d1, d2)), init((1, d2))
    mw3, mb3 = init((d2, d3)), init((1, d3))
    mw4, mb4 = init((d3, d4)), init((1, d4))
    mw5, mb5 = init((d4, d5)), init((1, d5))
    mwo, mbo = init((d5, 1)), init((1, 1))

    return (w_conv_t, b_conv, pe, wqkv, bqkv, wo, bo, mask,
            ln1w, ln1b, we1, be1, we2, be2, ln2w, ln2b,
            mw1, mb1, mw2, mb2, mw3, mb3, mw4, mb4, mw5, mb5, mwo, mbo)


if __name__ == "__main__":
    assert BATCH == SEQ_LEN, "reference PositionalEncoding broadcast requires B == S"
    key = jax.random.PRNGKey(0)
    kx, kp = jax.random.split(key)
    x = jax.random.normal(kx, (BATCH, SEQ_LEN, IN_FEATS), dtype=jnp.float32)
    params = make_params(kp)

    out = jax.jit(run_forecasting_model)(x, params)
    out = jax.block_until_ready(out)
    assert out.shape == (BATCH, 1) and bool(jnp.all(jnp.isfinite(out)))
    print("KERNEL_OK")
</pallas_src>

<mosaic_0001>
module attributes {stable_mosaic.version = 11 : i64} {
  func.func @forecasting_kernel(%arg0: memref<25x75xf32, #tpu.memory_space<vmem>>, %arg1: memref<75x16xf32, #tpu.memory_space<vmem>>, %arg2: memref<25x16xf32, #tpu.memory_space<vmem>>, %arg3: memref<16x48xf32, #tpu.memory_space<vmem>>, %arg4: memref<1x48xf32, #tpu.memory_space<vmem>>, %arg5: memref<16x16xf32, #tpu.memory_space<vmem>>, %arg6: memref<1x16xf32, #tpu.memory_space<vmem>>, %arg7: memref<5x5xf32, #tpu.memory_space<vmem>>, %arg8: memref<1x16xf32, #tpu.memory_space<vmem>>, %arg9: memref<1x16xf32, #tpu.memory_space<vmem>>, %arg10: memref<16x256xf32, #tpu.memory_space<vmem>>, %arg11: memref<1x256xf32, #tpu.memory_space<vmem>>, %arg12: memref<256x16xf32, #tpu.memory_space<vmem>>, %arg13: memref<1x16xf32, #tpu.memory_space<vmem>>, %arg14: memref<1x16xf32, #tpu.memory_space<vmem>>, %arg15: memref<1x16xf32, #tpu.memory_space<vmem>>, %arg16: memref<80x256xf32, #tpu.memory_space<vmem>>, %arg17: memref<1x256xf32, #tpu.memory_space<vmem>>, %arg18: memref<256x128xf32, #tpu.memory_space<vmem>>, %arg19: memref<1x128xf32, #tpu.memory_space<vmem>>, %arg20: memref<128x64xf32, #tpu.memory_space<vmem>>, %arg21: memref<1x64xf32, #tpu.memory_space<vmem>>, %arg22: memref<64x16xf32, #tpu.memory_space<vmem>>, %arg23: memref<1x16xf32, #tpu.memory_space<vmem>>, %arg24: memref<16x4xf32, #tpu.memory_space<vmem>>, %arg25: memref<1x4xf32, #tpu.memory_space<vmem>>, %arg26: memref<4x1xf32, #tpu.memory_space<vmem>>, %arg27: memref<1x1xf32, #tpu.memory_space<vmem>>, %arg28: memref<5x1xf32, #tpu.memory_space<vmem>>) attributes {dimension_semantics = [], scalar_prefetch = 0 : i64, scratch_operands = 0 : i64, tpu.core_type = #tpu.core_type<tc>} {
    %c0 = arith.constant 0 : index
    %c0_0 = arith.constant 0 : index
    %0 = vector.load %arg0[%c0, %c0_0] : memref<25x75xf32, #tpu.memory_space<vmem>>, vector<25x75xf32>
    %c0_1 = arith.constant 0 : index
    %c0_2 = arith.constant 0 : index
    %1 = vector.load %arg1[%c0_1, %c0_2] : memref<75x16xf32, #tpu.memory_space<vmem>>, vector<75x16xf32>
    %cst = arith.constant dense<0.000000e+00> : vector<25x16xf32>
    %2 = tpu.matmul %0, %1, %cst {dimension_numbers = #tpu.dot_dimension_numbers<[1], [0], [0], [1], [0, 0, 1, 1], [], []>} : vector<25x75xf32>, vector<75x16xf32>, vector<25x16xf32> -> vector<25x16xf32>
    %c0_3 = arith.constant 0 : index
    %c0_4 = arith.constant 0 : index
    %3 = vector.load %arg2[%c0_3, %c0_4] : memref<25x16xf32, #tpu.memory_space<vmem>>, vector<25x16xf32>
    %4 = arith.addf %2, %3 : vector<25x16xf32>
    %c0_5 = arith.constant 0 : index
    %c0_6 = arith.constant 0 : index
    %5 = vector.load %arg3[%c0_5, %c0_6] : memref<16x48xf32, #tpu.memory_space<vmem>>, vector<16x48xf32>
    %cst_7 = arith.constant dense<0.000000e+00> : vector<25x48xf32>
    %6 = tpu.matmul %4, %5, %cst_7 {dimension_numbers = #tpu.dot_dimension_numbers<[1], [0], [0], [1], [0, 0, 1, 1], [], []>} : vector<25x16xf32>, vector<16x48xf32>, vector<25x48xf32> -> vector<25x48xf32>
    %c0_8 = arith.constant 0 : index
    %c0_9 = arith.constant 0 : index
    %7 = vector.load %arg4[%c0_8, %c0_9] : memref<1x48xf32, #tpu.memory_space<vmem>>, vector<1x48xf32>
    %8 = vector.broadcast %7 : vector<1x48xf32> to vector<25x48xf32>
    %9 = arith.addf %6, %8 : vector<25x48xf32>
    %10 = vector.extract_strided_slice %9 {offsets = [0, 0], sizes = [25, 16], strides = [1, 1]} : vector<25x48xf32> to vector<25x16xf32>
    %11 = vector.shape_cast %10 : vector<25x16xf32> to vector<5x5x16xf32>
    %12 = vector.extract_strided_slice %9 {offsets = [0, 16], sizes = [25, 16], strides = [1, 1]} : vector<25x48xf32> to vector<25x16xf32>
    %13 = vector.shape_cast %12 : vector<25x16xf32> to vector<5x5x16xf32>
    %14 = vector.extract_strided_slice %9 {offsets = [0, 32], sizes = [25, 16], strides = [1, 1]} : vector<25x48xf32> to vector<25x16xf32>
    %15 = vector.shape_cast %14 : vector<25x16xf32> to vector<5x5x16xf32>
    %c0_10 = arith.constant 0 : index
    %c0_11 = arith.constant 0 : index
    %16 = vector.load %arg7[%c0_10, %c0_11] : memref<5x5xf32, #tpu.memory_space<vmem>>, vector<5x5xf32>
    %17 = vector.shape_cast %16 : vector<5x5xf32> to vector<1x5x5xf32>
    %18 = vector.broadcast %17 : vector<1x5x5xf32> to vector<5x5x5xf32>
    %c0_12 = arith.constant 0 : index
    %c0_13 = arith.constant 0 : index
    %19 = vector.load %arg5[%c0_12, %c0_13] : memref<16x16xf32, #tpu.memory_space<vmem>>, vector<16x16xf32>
    %c0_14 = arith.constant 0 : index
    %c0_15 = arith.constant 0 : index
    %20 = vector.load %arg6[%c0_14, %c0_15] : memref<1x16xf32, #tpu.memory_space<vmem>>, vector<1x16xf32>
    %21 = vector.shape_cast %20 : vector<1x16xf32> to vector<1x16xf32>
    %22 = vector.broadcast %21 : vector<1x16xf32> to vector<25x16xf32>
    %23 = vector.extract_strided_slice %11 {offsets = [0, 0, 0], sizes = [5, 5, 4], strides = [1, 1, 1]} : vector<5x5x16xf32> to vector<5x5x4xf32>
    %24 = vector.extract_strided_slice %13 {offsets = [0, 0, 0], sizes = [5, 5, 4], strides = [1, 1, 1]} : vector<5x5x16xf32> to vector<5x5x4xf32>
    "tpu.trace_start"() <{level = 10 : i32, message = "bsd,btd->bst"}> : () -> ()
    %cst_16 = arith.constant dense<0.000000e+00> : vector<5x5x5xf32>
    %25 = tpu.matmul %23, %24, %cst_16 {dimension_numbers = #tpu.dot_dimension_numbers<[2], [2], [1], [1], [0, 0, 0, 1, 1, 1], [0], [0]>} : vector<5x5x4xf32>, vector<5x5x4xf32>, vector<5x5x5xf32> -> vector<5x5x5xf32>
    "tpu.trace_stop"() : () -> ()
    %cst_17 = arith.constant 5.000000e-01 : f32
    %26 = vector.broadcast %cst_17 : f32 to vector<5x5x5xf32>
    %27 = arith.mulf %25, %26 : vector<5x5x5xf32>
    %28 = arith.addf %27, %18 : vector<5x5x5xf32>
    %cst_18 = arith.constant dense<0xFF800000> : vector<5x5xf32>
    %29 = vector.multi_reduction <maximumf>, %28, %cst_18 [2] : vector<5x5x5xf32> to vector<5x5xf32>
    %30 = vector.shape_cast %29 : vector<5x5xf32> to vector<5x5x1xf32>
    %31 = vector.broadcast %30 : vector<5x5x1xf32> to vector<5x5x5xf32>
    %32 = arith.subf %28, %31 : vector<5x5x5xf32>
    %33 = math.exp %32 : vector<5x5x5xf32>
    %cst_19 = arith.constant dense<0.000000e+00> : vector<5x5xf32>
    %34 = vector.multi_reduction <add>, %33, %cst_19 [2] : vector<5x5x5xf32> to vector<5x5xf32>
    %35 = vector.shape_cast %34 : vector<5x5xf32> to vector<5x5x1xf32>
    %36 = tpu.reciprocal %35 {approx = true} : vector<5x5x1xf32> -> vector<5x5x1xf32>
    %37 = vector.broadcast %36 : vector<5x5x1xf32> to vector<5x5x5xf32>
    %38 = arith.mulf %33, %37 : vector<5x5x5xf32>
    %39 = vector.extract_strided_slice %15 {offsets = [0, 0, 0], sizes = [5, 5, 4], strides = [1, 1, 1]} : vector<5x5x16xf32> to vector<5x5x4xf32>
    "tpu.trace_start"() <{level = 10 : i32, message = "bst,btd->bsd"}> : () -> ()
    %cst_20 = arith.constant dense<0.000000e+00> : vector<5x5x4xf32>
    %40 = tpu.matmul %38, %39, %cst_20 {dimension_numbers = #tpu.dot_dimension_numbers<[2], [1], [1], [2], [0, 0, 0, 1, 1, 2], [0], [0]>} : vector<5x5x5xf32>, vector<5x5x4xf32>, vector<5x5x4xf32> -> vector<5x5x4xf32>
    "tpu.trace_stop"() : () -> ()
    %41 = vector.shape_cast %40 : vector<5x5x4xf32> to vector<25x4xf32>
    %42 = vector.extract_strided_slice %19 {offsets = [0, 0], sizes = [4, 16], strides = [1, 1]} : vector<16x16xf32> to vector<4x16xf32>
    %cst_21 = arith.constant dense<0.000000e+00> : vector<25x16xf32>
    %43 = tpu.matmul %41, %42, %cst_21 {dimension_numbers = #tpu.dot_dimension_numbers<[1], [0], [0], [1], [0, 0, 1, 1], [], []>} : vector<25x4xf32>, vector<4x16xf32>, vector<25x16xf32> -> vector<25x16xf32>
    %44 = arith.addf %22, %43 : vector<25x16xf32>
    %45 = vector.extract_strided_slice %11 {offsets = [0, 0, 4], sizes = [5, 5, 4], strides = [1, 1, 1]} : vector<5x5x16xf32> to vector<5x5x4xf32>
    %46 = vector.extract_strided_slice %13 {offsets = [0, 0, 4], sizes = [5, 5, 4], strides = [1, 1, 1]} : vector<5x5x16xf32> to vector<5x5x4xf32>
    "tpu.trace_start"() <{level = 10 : i32, message = "bsd,btd->bst"}> : () -> ()
    %cst_22 = arith.constant dense<0.000000e+00> : vector<5x5x5xf32>
    %47 = tpu.matmul %45, %46, %cst_22 {dimension_numbers = #tpu.dot_dimension_numbers<[2], [2], [1], [1], [0, 0, 0, 1, 1, 1], [0], [0]>} : vector<5x5x4xf32>, vector<5x5x4xf32>, vector<5x5x5xf32> -> vector<5x5x5xf32>
    "tpu.trace_stop"() : () -> ()
    %cst_23 = arith.constant 5.000000e-01 : f32
    %48 = vector.broadcast %cst_23 : f32 to vector<5x5x5xf32>
    %49 = arith.mulf %47, %48 : vector<5x5x5xf32>
    %50 = arith.addf %49, %18 : vector<5x5x5xf32>
    %cst_24 = arith.constant dense<0xFF800000> : vector<5x5xf32>
    %51 = vector.multi_reduction <maximumf>, %50, %cst_24 [2] : vector<5x5x5xf32> to vector<5x5xf32>
    %52 = vector.shape_cast %51 : vector<5x5xf32> to vector<5x5x1xf32>
    %53 = vector.broadcast %52 : vector<5x5x1xf32> to vector<5x5x5xf32>
    %54 = arith.subf %50, %53 : vector<5x5x5xf32>
    %55 = math.exp %54 : vector<5x5x5xf32>
    %cst_25 = arith.constant dense<0.000000e+00> : vector<5x5xf32>
    %56 = vector.multi_reduction <add>, %55, %cst_25 [2] : vector<5x5x5xf32> to vector<5x5xf32>
    %57 = vector.shape_cast %56 : vector<5x5xf32> to vector<5x5x1xf32>
    %58 = tpu.reciprocal %57 {approx = true} : vector<5x5x1xf32> -> vector<5x5x1xf32>
    %59 = vector.broadcast %58 : vector<5x5x1xf32> to vector<5x5x5xf32>
    %60 = arith.mulf %55, %59 : vector<5x5x5xf32>
    %61 = vector.extract_strided_slice %15 {offsets = [0, 0, 4], sizes = [5, 5, 4], strides = [1, 1, 1]} : vector<5x5x16xf32> to vector<5x5x4xf32>
    "tpu.trace_start"() <{level = 10 : i32, message = "bst,btd->bsd"}> : () -> ()
    %cst_26 = arith.constant dense<0.000000e+00> : vector<5x5x4xf32>
    %62 = tpu.matmul %60, %61, %cst_26 {dimension_numbers = #tpu.dot_dimension_numbers<[2], [1], [1], [2], [0, 0, 0, 1, 1, 2], [0], [0]>} : vector<5x5x5xf32>, vector<5x5x4xf32>, vector<5x5x4xf32> -> vector<5x5x4xf32>
    "tpu.trace_stop"() : () -> ()
    %63 = vector.shape_cast %62 : vector<5x5x4xf32> to vector<25x4xf32>
    %64 = vector.extract_strided_slice %19 {offsets = [4, 0], sizes = [4, 16], strides = [1, 1]} : vector<16x16xf32> to vector<4x16xf32>
    %cst_27 = arith.constant dense<0.000000e+00> : vector<25x16xf32>
    %65 = tpu.matmul %63, %64, %cst_27 {dimension_numbers = #tpu.dot_dimension_numbers<[1], [0], [0], [1], [0, 0, 1, 1], [], []>} : vector<25x4xf32>, vector<4x16xf32>, vector<25x16xf32> -> vector<25x16xf32>
    %66 = arith.addf %44, %65 : vector<25x16xf32>
    %67 = vector.extract_strided_slice %11 {offsets = [0, 0, 8], sizes = [5, 5, 4], strides = [1, 1, 1]} : vector<5x5x16xf32> to vector<5x5x4xf32>
    %68 = vector.extract_strided_slice %13 {offsets = [0, 0, 8], sizes = [5, 5, 4], strides = [1, 1, 1]} : vector<5x5x16xf32> to vector<5x5x4xf32>
    "tpu.trace_start"() <{level = 10 : i32, message = "bsd,btd->bst"}> : () -> ()
    %cst_28 = arith.constant dense<0.000000e+00> : vector<5x5x5xf32>
    %69 = tpu.matmul %67, %68, %cst_28 {dimension_numbers = #tpu.dot_dimension_numbers<[2], [2], [1], [1], [0, 0, 0, 1, 1, 1], [0], [0]>} : vector<5x5x4xf32>, vector<5x5x4xf32>, vector<5x5x5xf32> -> vector<5x5x5xf32>
    "tpu.trace_stop"() : () -> ()
    %cst_29 = arith.constant 5.000000e-01 : f32
    %70 = vector.broadcast %cst_29 : f32 to vector<5x5x5xf32>
    %71 = arith.mulf %69, %70 : vector<5x5x5xf32>
    %72 = arith.addf %71, %18 : vector<5x5x5xf32>
    %cst_30 = arith.constant dense<0xFF800000> : vector<5x5xf32>
    %73 = vector.multi_reduction <maximumf>, %72, %cst_30 [2] : vector<5x5x5xf32> to vector<5x5xf32>
    %74 = vector.shape_cast %73 : vector<5x5xf32> to vector<5x5x1xf32>
    %75 = vector.broadcast %74 : vector<5x5x1xf32> to vector<5x5x5xf32>
    %76 = arith.subf %72, %75 : vector<5x5x5xf32>
    %77 = math.exp %76 : vector<5x5x5xf32>
    %cst_31 = arith.constant dense<0.000000e+00> : vector<5x5xf32>
    %78 = vector.multi_reduction <add>, %77, %cst_31 [2] : vector<5x5x5xf32> to vector<5x5xf32>
    %79 = vector.shape_cast %78 : vector<5x5xf32> to vector<5x5x1xf32>
    %80 = tpu.reciprocal %79 {approx = true} : vector<5x5x1xf32> -> vector<5x5x1xf32>
    %81 = vector.broadcast %80 : vector<5x5x1xf32> to vector<5x5x5xf32>
    %82 = arith.mulf %77, %81 : vector<5x5x5xf32>
    %83 = vector.extract_strided_slice %15 {offsets = [0, 0, 8], sizes = [5, 5, 4], strides = [1, 1, 1]} : vector<5x5x16xf32> to vector<5x5x4xf32>
    "tpu.trace_start"() <{level = 10 : i32, message = "bst,btd->bsd"}> : () -> ()
    %cst_32 = arith.constant dense<0.000000e+00> : vector<5x5x4xf32>
    %84 = tpu.matmul %82, %83, %cst_32 {dimension_numbers = #tpu.dot_dimension_numbers<[2], [1], [1], [2], [0, 0, 0, 1, 1, 2], [0], [0]>} : vector<5x5x5xf32>, vector<5x5x4xf32>, vector<5x5x4xf32> -> vector<5x5x4xf32>
    "tpu.trace_stop"() : () -> ()
    %85 = vector.shape_cast %84 : vector<5x5x4xf32> to vector<25x4xf32>
    %86 = vector.extract_strided_slice %19 {offsets = [8, 0], sizes = [4, 16], strides = [1, 1]} : vector<16x16xf32> to vector<4x16xf32>
    %cst_33 = arith.constant dense<0.000000e+00> : vector<25x16xf32>
    %87 = tpu.matmul %85, %86, %cst_33 {dimension_numbers = #tpu.dot_dimension_numbers<[1], [0], [0], [1], [0, 0, 1, 1], [], []>} : vector<25x4xf32>, vector<4x16xf32>, vector<25x16xf32> -> vector<25x16xf32>
    %88 = arith.addf %66, %87 : vector<25x16xf32>
    %89 = vector.extract_strided_slice %11 {offsets = [0, 0, 12], sizes = [5, 5, 4], strides = [1, 1, 1]} : vector<5x5x16xf32> to vector<5x5x4xf32>
    %90 = vector.extract_strided_slice %13 {offsets = [0, 0, 12], sizes = [5, 5, 4], strides = [1, 1, 1]} : vector<5x5x16xf32> to vector<5x5x4xf32>
    "tpu.trace_start"() <{level = 10 : i32, message = "bsd,btd->bst"}> : () -> ()
    %cst_34 = arith.constant dense<0.000000e+00> : vector<5x5x5xf32>
    %91 = tpu.matmul %89, %90, %cst_34 {dimension_numbers = #tpu.dot_dimension_numbers<[2], [2], [1], [1], [0, 0, 0, 1, 1, 1], [0], [0]>} : vector<5x5x4xf32>, vector<5x5x4xf32>, vector<5x5x5xf32> -> vector<5x5x5xf32>
    "tpu.trace_stop"() : () -> ()
    %cst_35 = arith.constant 5.000000e-01 : f32
    %92 = vector.broadcast %cst_35 : f32 to vector<5x5x5xf32>
    %93 = arith.mulf %91, %92 : vector<5x5x5xf32>
    %94 = arith.addf %93, %18 : vector<5x5x5xf32>
    %cst_36 = arith.constant dense<0xFF800000> : vector<5x5xf32>
    %95 = vector.multi_reduction <maximumf>, %94, %cst_36 [2] : vector<5x5x5xf32> to vector<5x5xf32>
    %96 = vector.shape_cast %95 : vector<5x5xf32> to vector<5x5x1xf32>
    %97 = vector.broadcast %96 : vector<5x5x1xf32> to vector<5x5x5xf32>
    %98 = arith.subf %94, %97 : vector<5x5x5xf32>
    %99 = math.exp %98 : vector<5x5x5xf32>
    %cst_37 = arith.constant dense<0.000000e+00> : vector<5x5xf32>
    %100 = vector.multi_reduction <add>, %99, %cst_37 [2] : vector<5x5x5xf32> to vector<5x5xf32>
    %101 = vector.shape_cast %100 : vector<5x5xf32> to vector<5x5x1xf32>
    %102 = tpu.reciprocal %101 {approx = true} : vector<5x5x1xf32> -> vector<5x5x1xf32>
    %103 = vector.broadcast %102 : vector<5x5x1xf32> to vector<5x5x5xf32>
    %104 = arith.mulf %99, %103 : vector<5x5x5xf32>
    %105 = vector.extract_strided_slice %15 {offsets = [0, 0, 12], sizes = [5, 5, 4], strides = [1, 1, 1]} : vector<5x5x16xf32> to vector<5x5x4xf32>
    "tpu.trace_start"() <{level = 10 : i32, message = "bst,btd->bsd"}> : () -> ()
    %cst_38 = arith.constant dense<0.000000e+00> : vector<5x5x4xf32>
    %106 = tpu.matmul %104, %105, %cst_38 {dimension_numbers = #tpu.dot_dimension_numbers<[2], [1], [1], [2], [0, 0, 0, 1, 1, 2], [0], [0]>} : vector<5x5x5xf32>, vector<5x5x4xf32>, vector<5x5x4xf32> -> vector<5x5x4xf32>
    "tpu.trace_stop"() : () -> ()
    %107 = vector.shape_cast %106 : vector<5x5x4xf32> to vector<25x4xf32>
    %108 = vector.extract_strided_slice %19 {offsets = [12, 0], sizes = [4, 16], strides = [1, 1]} : vector<16x16xf32> to vector<4x16xf32>
    %cst_39 = arith.constant dense<0.000000e+00> : vector<25x16xf32>
    %109 = tpu.matmul %107, %108, %cst_39 {dimension_numbers = #tpu.dot_dimension_numbers<[1], [0], [0], [1], [0, 0, 1, 1], [], []>} : vector<25x4xf32>, vector<4x16xf32>, vector<25x16xf32> -> vector<25x16xf32>
    %110 = arith.addf %88, %109 : vector<25x16xf32>
    %111 = arith.addf %4, %110 : vector<25x16xf32>
    %c0_40 = arith.constant 0 : index
    %c0_41 = arith.constant 0 : index
    %112 = vector.load %arg8[%c0_40, %c0_41] : memref<1x16xf32, #tpu.memory_space<vmem>>, vector<1x16xf32>
    %c0_42 = arith.constant 0 : index
    %c0_43 = arith.constant 0 : index
    %113 = vector.load %arg9[%c0_42, %c0_43] : memref<1x16xf32, #tpu.memory_space<vmem>>, vector<1x16xf32>
    %cst_44 = arith.constant dense<0.000000e+00> : vector<25xf32>
    %114 = vector.multi_reduction <add>, %111, %cst_44 [1] : vector<25x16xf32> to vector<25xf32>
    %115 = vector.shape_cast %114 : vector<25xf32> to vector<25x1xf32>
    %cst_45 = arith.constant 1.600000e+01 : f32
    %116 = vector.broadcast %cst_45 : f32 to vector<25x1xf32>
    %117 = arith.divf %115, %116 : vector<25x1xf32>
    %118 = vector.broadcast %117 : vector<25x1xf32> to vector<25x16xf32>
    %119 = arith.subf %111, %118 : vector<25x16xf32>
    %120 = arith.mulf %119, %119 : vector<25x16xf32>
    %cst_46 = arith.constant dense<0.000000e+00> : vector<25xf32>
    %121 = vector.multi_reduction <add>, %120, %cst_46 [1] : vector<25x16xf32> to vector<25xf32>
    %122 = vector.shape_cast %121 : vector<25xf32> to vector<25x1xf32>
    %cst_47 = arith.constant 1.600000e+01 : f32
    %123 = vector.broadcast %cst_47 : f32 to vector<25x1xf32>
    %124 = arith.divf %122, %123 : vector<25x1xf32>
    %cst_48 = arith.constant 9.99999974E-6 : f32
    %125 = vector.broadcast %cst_48 : f32 to vector<25x1xf32>
    %126 = arith.addf %124, %125 : vector<25x1xf32>
    %127 = math.rsqrt %126 : vector<25x1xf32>
    %128 = vector.broadcast %127 : vector<25x1xf32> to vector<25x16xf32>
    %129 = arith.mulf %119, %128 : vector<25x16xf32>
    %130 = vector.broadcast %112 : vector<1x16xf32> to vector<25x16xf32>
    %131 = arith.mulf %129, %130 : vector<25x16xf32>
    %132 = vector.broadcast %113 : vector<1x16xf32> to vector<25x16xf32>
    %133 = arith.addf %131, %132 : vector<25x16xf32>
    %c0_49 = arith.constant 0 : index
    %c0_50 = arith.constant 0 : index
    %134 = vector.load %arg10[%c0_49, %c0_50] : memref<16x256xf32, #tpu.memory_space<vmem>>, vector<16x256xf32>
    %cst_51 = arith.constant dense<0.000000e+00> : vector<25x256xf32>
    %135 = tpu.matmul %133, %134, %cst_51 {dimension_numbers = #tpu.dot_dimension_numbers<[1], [0], [0], [1], [0, 0, 1, 1], [], []>} : vector<25x16xf32>, vector<16x256xf32>, vector<25x256xf32> -> vector<25x256xf32>
    %c0_52 = arith.constant 0 : index
    %c0_53 = arith.constant 0 : index
    %136 = vector.load %arg11[%c0_52, %c0_53] : memref<1x256xf32, #tpu.memory_space<vmem>>, vector<1x256xf32>
    %137 = vector.broadcast %136 : vector<1x256xf32> to vector<25x256xf32>
    %138 = arith.addf %135, %137 : vector<25x256xf32>
    %cst_54 = arith.constant 0.000000e+00 : f32
    %139 = vector.broadcast %cst_54 : f32 to vector<25x256xf32>
    %140 = arith.maximumf %138, %139 : vector<25x256xf32>
    %c0_55 = arith.constant 0 : index
    %c0_56 = arith.constant 0 : index
    %141 = vector.load %arg12[%c0_55, %c0_56] : memref<256x16xf32, #tpu.memory_space<vmem>>, vector<256x16xf32>
    %cst_57 = arith.constant dense<0.000000e+00> : vector<25x16xf32>
    %142 = tpu.matmul %140, %141, %cst_57 {dimension_numbers = #tpu.dot_dimension_numbers<[1], [0], [0], [1], [0, 0, 1, 1], [], []>} : vector<25x256xf32>, vector<256x16xf32>, vector<25x16xf32> -> vector<25x16xf32>
    %c0_58 = arith.constant 0 : index
    %c0_59 = arith.constant 0 : index
    %143 = vector.load %arg13[%c0_58, %c0_59] : memref<1x16xf32, #tpu.memory_space<vmem>>, vector<1x16xf32>
    %144 = vector.broadcast %143 : vector<1x16xf32> to vector<25x16xf32>
    %145 = arith.addf %142, %144 : vector<25x16xf32>
    %146 = arith.addf %133, %145 : vector<25x16xf32>
    %c0_60 = arith.constant 0 : index
    %c0_61 = arith.constant 0 : index
    %147 = vector.load %arg14[%c0_60, %c0_61] : memref<1x16xf32, #tpu.memory_space<vmem>>, vector<1x16xf32>
    %c0_62 = arith.constant 0 : index
    %c0_63 = arith.constant 0 : index
    %148 = vector.load %arg15[%c0_62, %c0_63] : memref<1x16xf32, #tpu.memory_space<vmem>>, vector<1x16xf32>
    %cst_64 = arith.constant dense<0.000000e+00> : vector<25xf32>
    %149 = vector.multi_reduction <add>, %146, %cst_64 [1] : vector<25x16xf32> to vector<25xf32>
    %150 = vector.shape_cast %149 : vector<25xf32> to vector<25x1xf32>
    %cst_65 = arith.constant 1.600000e+01 : f32
    %151 = vector.broadcast %cst_65 : f32 to vector<25x1xf32>
    %152 = arith.divf %150, %151 : vector<25x1xf32>
    %153 = vector.broadcast %152 : vector<25x1xf32> to vector<25x16xf32>
    %154 = arith.subf %146, %153 : vector<25x16xf32>
    %155 = arith.mulf %154, %154 : vector<25x16xf32>
    %cst_66 = arith.constant dense<0.000000e+00> : vector<25xf32>
    %156 = vector.multi_reduction <add>, %155, %cst_66 [1] : vector<25x16xf32> to vector<25xf32>
    %157 = vector.shape_cast %156 : vector<25xf32> to vector<25x1xf32>
    %cst_67 = arith.constant 1.600000e+01 : f32
    %158 = vector.broadcast %cst_67 : f32 to vector<25x1xf32>
    %159 = arith.divf %157, %158 : vector<25x1xf32>
    %cst_68 = arith.constant 9.99999974E-6 : f32
    %160 = vector.broadcast %cst_68 : f32 to vector<25x1xf32>
    %161 = arith.addf %159, %160 : vector<25x1xf32>
    %162 = math.rsqrt %161 : vector<25x1xf32>
    %163 = vector.broadcast %162 : vector<25x1xf32> to vector<25x16xf32>
    %164 = arith.mulf %154, %163 : vector<25x16xf32>
    %165 = vector.broadcast %147 : vector<1x16xf32> to vector<25x16xf32>
    %166 = arith.mulf %164, %165 : vector<25x16xf32>
    %167 = vector.broadcast %148 : vector<1x16xf32> to vector<25x16xf32>
    %168 = arith.addf %166, %167 : vector<25x16xf32>
    %169 = vector.shape_cast %168 : vector<25x16xf32> to vector<5x5x16xf32>
    %c0_69 = arith.constant 0 : index
    %c0_70 = arith.constant 0 : index
    %170 = vector.load %arg16[%c0_69, %c0_70] : memref<80x256xf32, #tpu.memory_space<vmem>>, vector<80x256xf32>
    %cst_71 = arith.constant 0.000000e+00 : f32
    %171 = vector.broadcast %cst_71 : f32 to vector<5x256xf32>
    %172 = vector.extract_strided_slice %169 {offsets = [0, 0, 0], sizes = [5, 1, 16], strides = [1, 1, 1]} : vector<5x5x16xf32> to vector<5x1x16xf32>
    %173 = vector.shape_cast %172 : vector<5x1x16xf32> to vector<5x16xf32>
    %174 = vector.extract_strided_slice %170 {offsets = [0, 0], sizes = [16, 256], strides = [1, 1]} : vector<80x256xf32> to vector<16x256xf32>
    %cst_72 = arith.constant dense<0.000000e+00> : vector<5x256xf32>
    %175 = tpu.matmul %173, %174, %cst_72 {dimension_numbers = #tpu.dot_dimension_numbers<[1], [0], [0], [1], [0, 0, 1, 1], [], []>} : vector<5x16xf32>, vector<16x256xf32>, vector<5x256xf32> -> vector<5x256xf32>
    %176 = arith.addf %171, %175 : vector<5x256xf32>
    %177 = vector.extract_strided_slice %169 {offsets = [0, 1, 0], sizes = [5, 1, 16], strides = [1, 1, 1]} : vector<5x5x16xf32> to vector<5x1x16xf32>
    %178 = vector.shape_cast %177 : vector<5x1x16xf32> to vector<5x16xf32>
    %179 = vector.extract_strided_slice %170 {offsets = [16, 0], sizes = [16, 256], strides = [1, 1]} : vector<80x256xf32> to vector<16x256xf32>
    %cst_73 = arith.constant dense<0.000000e+00> : vector<5x256xf32>
    %180 = tpu.matmul %178, %179, %cst_73 {dimension_numbers = #tpu.dot_dimension_numbers<[1], [0], [0], [1], [0, 0, 1, 1], [], []>} : vector<5x16xf32>, vector<16x256xf32>, vector<5x256xf32> -> vector<5x256xf32>
    %181 = arith.addf %176, %180 : vector<5x256xf32>
    %182 = vector.extract_strided_slice %169 {offsets = [0, 2, 0], sizes = [5, 1, 16], strides = [1, 1, 1]} : vector<5x5x16xf32> to vector<5x1x16xf32>
    %183 = vector.shape_cast %182 : vector<5x1x16xf32> to vector<5x16xf32>
    %184 = vector.extract_strided_slice %170 {offsets = [32, 0], sizes = [16, 256], strides = [1, 1]} : vector<80x256xf32> to vector<16x256xf32>
    %cst_74 = arith.constant dense<0.000000e+00> : vector<5x256xf32>
    %185 = tpu.matmul %183, %184, %cst_74 {dimension_numbers = #tpu.dot_dimension_numbers<[1], [0], [0], [1], [0, 0, 1, 1], [], []>} : vector<5x16xf32>, vector<16x256xf32>, vector<5x256xf32> -> vector<5x256xf32>
    %186 = arith.addf %181, %185 : vector<5x256xf32>
    %187 = vector.extract_strided_slice %169 {offsets = [0, 3, 0], sizes = [5, 1, 16], strides = [1, 1, 1]} : vector<5x5x16xf32> to vector<5x1x16xf32>
    %188 = vector.shape_cast %187 : vector<5x1x16xf32> to vector<5x16xf32>
    %189 = vector.extract_strided_slice %170 {offsets = [48, 0], sizes = [16, 256], strides = [1, 1]} : vector<80x256xf32> to vector<16x256xf32>
    %cst_75 = arith.constant dense<0.000000e+00> : vector<5x256xf32>
    %190 = tpu.matmul %188, %189, %cst_75 {dimension_numbers = #tpu.dot_dimension_numbers<[1], [0], [0], [1], [0, 0, 1, 1], [], []>} : vector<5x16xf32>, vector<16x256xf32>, vector<5x256xf32> -> vector<5x256xf32>
    %191 = arith.addf %186, %190 : vector<5x256xf32>
    %192 = vector.extract_strided_slice %169 {offsets = [0, 4, 0], sizes = [5, 1, 16], strides = [1, 1, 1]} : vector<5x5x16xf32> to vector<5x1x16xf32>
    %193 = vector.shape_cast %192 : vector<5x1x16xf32> to vector<5x16xf32>
    %194 = vector.extract_strided_slice %170 {offsets = [64, 0], sizes = [16, 256], strides = [1, 1]} : vector<80x256xf32> to vector<16x256xf32>
    %cst_76 = arith.constant dense<0.000000e+00> : vector<5x256xf32>
    %195 = tpu.matmul %193, %194, %cst_76 {dimension_numbers = #tpu.dot_dimension_numbers<[1], [0], [0], [1], [0, 0, 1, 1], [], []>} : vector<5x16xf32>, vector<16x256xf32>, vector<5x256xf32> -> vector<5x256xf32>
    %196 = arith.addf %191, %195 : vector<5x256xf32>
    %c0_77 = arith.constant 0 : index
    %c0_78 = arith.constant 0 : index
    %197 = vector.load %arg17[%c0_77, %c0_78] : memref<1x256xf32, #tpu.memory_space<vmem>>, vector<1x256xf32>
    %198 = vector.broadcast %197 : vector<1x256xf32> to vector<5x256xf32>
    %199 = arith.addf %196, %198 : vector<5x256xf32>
    %cst_79 = arith.constant 0.000000e+00 : f32
    %200 = vector.broadcast %cst_79 : f32 to vector<5x256xf32>
    %201 = arith.maximumf %199, %200 : vector<5x256xf32>
    %c0_80 = arith.constant 0 : index
    %c0_81 = arith.constant 0 : index
    %202 = vector.load %arg18[%c0_80, %c0_81] : memref<256x128xf32, #tpu.memory_space<vmem>>, vector<256x128xf32>
    %cst_82 = arith.constant dense<0.000000e+00> : vector<5x128xf32>
    %203 = tpu.matmul %201, %202, %cst_82 {dimension_numbers = #tpu.dot_dimension_numbers<[1], [0], [0], [1], [0, 0, 1, 1], [], []>} : vector<5x256xf32>, vector<256x128xf32>, vector<5x128xf32> -> vector<5x128xf32>
    %c0_83 = arith.constant 0 : index
    %c0_84 = arith.constant 0 : index
    %204 = vector.load %arg19[%c0_83, %c0_84] : memref<1x128xf32, #tpu.memory_space<vmem>>, vector<1x128xf32>
    %205 = vector.broadcast %204 : vector<1x128xf32> to vector<5x128xf32>
    %206 = arith.addf %203, %205 : vector<5x128xf32>
    %cst_85 = arith.constant 0.000000e+00 : f32
    %207 = vector.broadcast %cst_85 : f32 to vector<5x128xf32>
    %208 = arith.maximumf %206, %207 : vector<5x128xf32>
    %c0_86 = arith.constant 0 : index
    %c0_87 = arith.constant 0 : index
    %209 = vector.load %arg20[%c0_86, %c0_87] : memref<128x64xf32, #tpu.memory_space<vmem>>, vector<128x64xf32>
    %cst_88 = arith.constant dense<0.000000e+00> : vector<5x64xf32>
    %210 = tpu.matmul %208, %209, %cst_88 {dimension_numbers = #tpu.dot_dimension_numbers<[1], [0], [0], [1], [0, 0, 1, 1], [], []>} : vector<5x128xf32>, vector<128x64xf32>, vector<5x64xf32> -> vector<5x64xf32>
    %c0_89 = arith.constant 0 : index
    %c0_90 = arith.constant 0 : index
    %211 = vector.load %arg21[%c0_89, %c0_90] : memref<1x64xf32, #tpu.memory_space<vmem>>, vector<1x64xf32>
    %212 = vector.broadcast %211 : vector<1x64xf32> to vector<5x64xf32>
    %213 = arith.addf %210, %212 : vector<5x64xf32>
    %cst_91 = arith.constant 0.000000e+00 : f32
    %214 = vector.broadcast %cst_91 : f32 to vector<5x64xf32>
    %215 = arith.maximumf %213, %214 : vector<5x64xf32>
    %c0_92 = arith.constant 0 : index
    %c0_93 = arith.constant 0 : index
    %216 = vector.load %arg22[%c0_92, %c0_93] : memref<64x16xf32, #tpu.memory_space<vmem>>, vector<64x16xf32>
    %cst_94 = arith.constant dense<0.000000e+00> : vector<5x16xf32>
    %217 = tpu.matmul %215, %216, %cst_94 {dimension_numbers = #tpu.dot_dimension_numbers<[1], [0], [0], [1], [0, 0, 1, 1], [], []>} : vector<5x64xf32>, vector<64x16xf32>, vector<5x16xf32> -> vector<5x16xf32>
    %c0_95 = arith.constant 0 : index
    %c0_96 = arith.constant 0 : index
    %218 = vector.load %arg23[%c0_95, %c0_96] : memref<1x16xf32, #tpu.memory_space<vmem>>, vector<1x16xf32>
    %219 = vector.broadcast %218 : vector<1x16xf32> to vector<5x16xf32>
    %220 = arith.addf %217, %219 : vector<5x16xf32>
    %cst_97 = arith.constant 0.000000e+00 : f32
    %221 = vector.broadcast %cst_97 : f32 to vector<5x16xf32>
    %222 = arith.maximumf %220, %221 : vector<5x16xf32>
    %c0_98 = arith.constant 0 : index
    %c0_99 = arith.constant 0 : index
    %223 = vector.load %arg24[%c0_98, %c0_99] : memref<16x4xf32, #tpu.memory_space<vmem>>, vector<16x4xf32>
    %cst_100 = arith.constant dense<0.000000e+00> : vector<5x4xf32>
    %224 = tpu.matmul %222, %223, %cst_100 {dimension_numbers = #tpu.dot_dimension_numbers<[1], [0], [0], [1], [0, 0, 1, 1], [], []>} : vector<5x16xf32>, vector<16x4xf32>, vector<5x4xf32> -> vector<5x4xf32>
    %c0_101 = arith.constant 0 : index
    %c0_102 = arith.constant 0 : index
    %225 = vector.load %arg25[%c0_101, %c0_102] : memref<1x4xf32, #tpu.memory_space<vmem>>, vector<1x4xf32>
    %226 = vector.broadcast %225 : vector<1x4xf32> to vector<5x4xf32>
    %227 = arith.addf %224, %226 : vector<5x4xf32>
    %cst_103 = arith.constant 0.000000e+00 : f32
    %228 = vector.broadcast %cst_103 : f32 to vector<5x4xf32>
    %229 = arith.maximumf %227, %228 : vector<5x4xf32>
    %c0_104 = arith.constant 0 : index
    %c0_105 = arith.constant 0 : index
    %230 = vector.load %arg26[%c0_104, %c0_105] : memref<4x1xf32, #tpu.memory_space<vmem>>, vector<4x1xf32>
    %cst_106 = arith.constant dense<0.000000e+00> : vector<5x1xf32>
    %231 = tpu.matmul %229, %230, %cst_106 {dimension_numbers = #tpu.dot_dimension_numbers<[1], [0], [0], [1], [0, 0, 1, 1], [], []>} : vector<5x4xf32>, vector<4x1xf32>, vector<5x1xf32> -> vector<5x1xf32>
    %c0_107 = arith.constant 0 : index
    %c0_108 = arith.constant 0 : index
    %232 = vector.load %arg27[%c0_107, %c0_108] : memref<1x1xf32, #tpu.memory_space<vmem>>, vector<1x1xf32>
    %233 = vector.broadcast %232 : vector<1x1xf32> to vector<5x1xf32>
    %234 = arith.addf %231, %233 : vector<5x1xf32>
    %c0_109 = arith.constant 0 : index
    %c0_110 = arith.constant 0 : index
    %235 = vector.load %arg28[%c0_109, %c0_110] : memref<5x1xf32, #tpu.memory_space<vmem>>, vector<5x1xf32>
    tpu.vector_store %arg28[%c0_109, %c0_110], %234 {strides = array<i32>} : memref<5x1xf32, #tpu.memory_space<vmem>>, vector<5x1xf32>,
    return
  }
}

</mosaic_0001>

<bundles_post_ra>
// kernel: run_forecasting_model.1
= control target key start
LH: loop header
LB: loop body
LE: loop exit
PB: predicated region body
PF: predicated region fallthrough
CT: control target
= control target key end

     0   :  { %vm122_vm0 = vcmask 1042432   ;;  %vm109_vm1 = vcmask 613376   ;;  %vm220_vm2 = vcmask 130048   ;;  %v8355_v28 = vmov 0.0   ;;  %s9880_s1 = inlined_call_operand.vmem [shape: f32[75,16], index: 1, kind: input, shape index: {}]   ;;  %s9881_s0 = inlined_call_operand.vmem [shape: f32[25,75], index: 0, kind: input, shape index: {}]   ;;  %s9882_s3 = inlined_call_operand.vmem [shape: f32[16,48], index: 3, kind: input, shape index: {}]   ;;  %s9883_s2 = inlined_call_operand.vmem [shape: f32[25,16], index: 2, kind: input, shape index: {}]   ;;  %s9884_s4 = inlined_call_operand.vmem [shape: f32[1,48], index: 4, kind: input, shape index: {}]   ;;  %s9885_s7 = inlined_call_operand.vmem [shape: f32[5,5], index: 7, kind: input, shape index: {}]   ;;  %s9886_s5 = inlined_call_operand.vmem [shape: f32[16,16], index: 5, kind: input, shape index: {}]   ;;  %s9887_s6 = inlined_call_operand.vmem [shape: f32[1,16], index: 6, kind: input, shape index: {}]   ;;  %s9888_s10 = inlined_call_operand.vmem [shape: f32[16,256], index: 10, kind: input, shape index: {}]   ;;  %s9889_s12 = inlined_call_operand.vmem [shape: f32[256,16], index: 12, kind: input, shape index: {}]   ;;  %s9890_s8 = inlined_call_operand.vmem [shape: f32[1,16], index: 8, kind: input, shape index: {}]   ;;  %s9891_s9 = inlined_call_operand.vmem [shape: f32[1,16], index: 9, kind: input, shape index: {}]   ;;  %s9892_s11 = inlined_call_operand.vmem [shape: f32[1,256], index: 11, kind: input, shape index: {}]   ;;  %s9893_s13 = inlined_call_operand.vmem [shape: f32[1,16], index: 13, kind: input, shape index: {}]   ;;  %s9894_s16 = inlined_call_operand.vmem [shape: f32[80,256], index: 16, kind: input, shape index: {}]   ;;  %s9895_s18 = inlined_call_operand.vmem [shape: f32[256,128], index: 18, kind: input, shape index: {}]   ;;  %s9896_s14 = inlined_call_operand.vmem [shape: f32[1,16], index: 14, kind: input, shape index: {}]   ;;  %s9897_s15 = inlined_call_operand.vmem [shape: f32[1,16], index: 15, kind: input, shape index: {}]   ;;  %s9898_s20 = inlined_call_operand.vmem [shape: f32[128,64], index: 20, kind: input, shape index: {}]   ;;  %s9899_s17 = inlined_call_operand.vmem [shape: f32[1,256], index: 17, kind: input, shape index: {}]   ;;  %s9900_s22 = inlined_call_operand.vmem [shape: f32[64,16], index: 22, kind: input, shape index: {}]   ;;  %s9901_s19 = inlined_call_operand.vmem [shape: f32[1,128], index: 19, kind: input, shape index: {}]   ;;  %s9902_s21 = inlined_call_operand.vmem [shape: f32[1,64], index: 21, kind: input, shape index: {}]   ;;  %s9903_s24 = inlined_call_operand.vmem [shape: f32[16,4], index: 24, kind: input, shape index: {}]   ;;  %s9904_s23 = inlined_call_operand.vmem [shape: f32[1,16], index: 23, kind: input, shape index: {}]   ;;  %s9905_s26 = inlined_call_operand.vmem [shape: f32[4,1], index: 26, kind: input, shape index: {}]   ;;  %s9906_s27 = inlined_call_operand.<no memory space> [shape: f32[1,1], index: 27, kind: input, shape index: {}]   ;;  %s9907_s25 = inlined_call_operand.vmem [shape: f32[1,4], index: 25, kind: input, shape index: {}]   ;;  %s9908_s28 = inlined_call_operand.vmem [shape: f32[5,1], index: 28, kind: output, shape index: {}]  }
   0x1   :  { %9917 = sst [smem:[#allocation3_spill]] %s9880_s1  ;;  %v8356_v29 = vmov 1966171168   ;;  %v326_v31 = vlaneseq  ;;  %vm8357_vm3 = vmmov 0   ;;  %vm534_vm4 = vcmask 31744  }
   0x2   :  { %9918 = sst [smem:[#allocation4_spill]] %s9881_s0  ;;  %v324_v30 = vunpack.c.l.s4 %v8356_v29  ;;  %vm1079_vm5 = vcmask 36864   ;;  %vm1141_vm6 = vcmask 1044480   ;;  %vm1137_vm7 = vcmask 39936  }
   0x3   :  { %9919 = sst [smem:[#allocation5_spill]] %s9882_s3  ;;  %v8596_v33 = vshrl.u32 %v326_v31, 7  ;;  %vm1891_vm8 = vcmask 1043456   ;;  %vm5902_vm9 = vcmask 122880   ;;  %vm7280_vm10 = vcmask 523264  }
   0x4   :  { %9920 = sst [smem:[#allocation6_spill]] %s9883_s2  ;;  %v325_v32 = vunpack.c.0.s8 %v324_v30  ;;  %vm7522_vm11 = vcmask 4096  }
   0x5   :  { %9921 = sst [smem:[#allocation7_spill]] %s9884_s4  ;;  %s8362_s4 = smov 92  }
   0x6   :  { %9922 = sst [smem:[#allocation8_spill]] %s9885_s7  ;;  %v8602_v35 = vsub.s32 %v325_v32, %v8596_v33  ;;  %s8364_s7 = smov 104  }
   0x7   :  { %9923 = sst [smem:[#allocation9_spill]] %s9886_s5 }
   0x8   :  { %9924 = sst [smem:[#allocation10_spill]] %s9887_s6 }
   0x9   :  { %9925 = sst [smem:[#allocation11_spill]] %s9888_s10  ;;  %s8363_s10 = smov 120  }
   0xa   :  { %9926 = sst [smem:[#allocation12_spill]] %s9889_s12 }
   0xb   :  { %9927 = sst [smem:[#allocation13_spill]] %s9890_s8 }
   0xc   :  { %9928 = sst [smem:[#allocation14_spill]] %s9891_s9  ;;  %s8359_s9 = smov 96  }
   0xd   :  { %9929 = sst [smem:[#allocation15_spill]] %s9892_s11  ;;  %s8368_s11 = smov 84  }
   0xe   :  { %s9930_s12 = sld [smem:[#allocation3_spill]] }
   0xf   :  { %s9931_s29 = sld [smem:[#allocation4_spill]] }
  0x10   :  { %s9932_s2 = sld [smem:[#allocation5_spill]] }
  0x11   :  { %s9933_s3 = sld [smem:[#allocation6_spill]] }
  0x12   :  { %s9934_s30 = sld [smem:[#allocation7_spill]] }
  0x13   :  { %s9935_s0 = sld [smem:[#allocation8_spill]] }
  0x14   :  { %v104_v0 = vld [vmem:[%s9930_s12 + $0x48] sm:$0x7]  ;;  %v103_v1 = vld [vmem:[%s9930_s12 + $0x40] sm:$0xff]  ;;  %v102_v2 = vld [vmem:[%s9930_s12 + $0x38] sm:$0xff]  ;;  %s9936_s1 = sld [smem:[#allocation9_spill]] }
  0x15   :  { %7910 = vmatprep.subr.msk.mxu0 %vm122_vm0, %v104_v0  ;;  %v91_v3 = vld [vmem:[%s9931_s29] sm:$0xff]  ;;  %v101_v4 = vld [vmem:[%s9930_s12 + $0x30] sm:$0xff]  ;;  %v100_v5 = vld [vmem:[%s9930_s12 + $0x28] sm:$0xff] }
  0x16   :  { %7911 = vmatpush3.msk.msra.mxu0 %vm122_vm0, %v104_v0  ;;  %7930 = vmatprep.mubr.msk.f32.mxu0 %vm109_vm1, %v91_v3  ;;  %v99_v6 = vld [vmem:[%s9930_s12 + $0x20] sm:$0xff]  ;;  %v98_v7 = vld [vmem:[%s9930_s12 + $0x18] sm:$0xff]  ;;  %v97_v8 = vld [vmem:[%s9930_s12 + $0x10] sm:$0xff] }
  0x17   :  { %7912 = vmatprep.subr.mxu0 %v103_v1  ;;  %v96_v9 = vld [vmem:[%s9930_s12 + $0x8] sm:$0xff]  ;;  %v95_v10 = vld [vmem:[%s9930_s12] sm:$0xff]  ;;  %v93_v12 = vld [vmem:[%s9931_s29 + $0x10] sm:$0xff] }
  0x18   :  { %7913 = vmatpush3.msra.mxu0 %v103_v1  ;;  %v92_v11 = vld [vmem:[%s9931_s29 + $0x8] sm:$0xff]  ;;  %v94_v13 = vld [vmem:[%s9931_s29 + $0x18] sm:$0x1]  ;;  %v211_v15 = vld [vmem:[%s9932_s2] sm:$0xff]  ;;  %s8361_s29 = smov 108  }
  0x19   :  { %7914 = vmatprep.subr.mxu0 %v102_v2  ;;  %v212_v14 = vld [vmem:[%s9932_s2 + $0x8] sm:$0xff]  ;;  %v105_v17 = vld [vmem:[%s9933_s3] sm:$0xff]  ;;  %v108_v21 = vld [vmem:[%s9933_s3 + $0x18] sm:$0x1]  ;;  %s8358_s2 = smov 112  }
  0x1a   :  { %7915 = vmatpush3.msra.mxu0 %v102_v2  ;;  %7936 = vmatprep.subr.mxu1 %v212_v14  ;;  %v106_v18 = vld [vmem:[%s9933_s3 + $0x8] sm:$0xff]  ;;  %v107_v24 = vld [vmem:[%s9933_s3 + $0x10] sm:$0xff]  ;;  %v7533_v34 = vld [vmem:[%s9934_s30] ss:$0 sm:$0xff]  ;;  %s8360_s3 = smov 124  }
  0x1b   :  { %7916 = vmatprep.subr.mxu0 %v101_v4  ;;  %7937 = vmatpush3.msra.mxu1 %v212_v14 }
  0x1c   :  { %7917 = vmatpush3.msra.mxu0 %v101_v4  ;;  %7938 = vmatprep.subr.mxu1 %v211_v15 }
  0x1d   :  { %7918 = vmatprep.subr.mxu0 %v100_v5  ;;  %7939 = vmatpush3.msra.mxu1 %v211_v15 }
  0x1e   :  { %7919 = vmatpush3.msra.mxu0 %v100_v5  ;;  %7946 = vmatprep.subr.mxu1 %v8355_v28 }
  0x1f   :  { %7920 = vmatprep.subr.mxu0 %v99_v6 }
  0x20   :  { %7921 = vmatpush3.msra.mxu0 %v99_v6 }
  0x21   :  { %7922 = vmatprep.subr.mxu0 %v98_v7 }
  0x22   :  { %7923 = vmatpush3.msra.mxu0 %v98_v7 }
  0x23   :  { %7924 = vmatprep.subr.mxu0 %v97_v8 }
  0x24   :  { %7925 = vmatpush3.msra.mxu0 %v97_v8 }
  0x25   :  { %7926 = vmatprep.subr.mxu0 %v96_v9 }
  0x26   :  { %7927 = vmatpush3.msra.mxu0 %v96_v9 }
  0x27   :  { %7928 = vmatprep.subr.mxu0 %v95_v10 }
  0x28   :  { %7929 = vmatpush3.msra.mxu0 %v95_v10 }
  0x29   :  { %7931 = vmatmul.mubr.msk.f32.vlgmr.msra.gmra.mxu0 %vm109_vm1, %v92_v11  ;;  %7976 = vmatprep.subr.mxu0 %v8355_v28 }
  0x2a   :  { %7933 = vmatprep.mubr.msk.f32.mxu0 %vm109_vm1, %v93_v12 }
  0x2d   :  { %7934 = vmatmul.mubr.msk.f32.gmra.mxu0 %vm109_vm1, %v94_v13 }
  0x2e   :  { %7978 = vmatprep.mubr.msk.f32.mxu0 %vm8357_vm3, %v8355_v28 }
  0xe9   :  { %v7932_v16 = vpop.f32.mrf.mxu0 }
  0xea   :  { %v8577_v22 = vadd.f32 %v7932_v16, %v106_v18 }
  0xeb   :  { %v192_v19 = vpop.f32.mrf.mxu0 }
  0xec   :  { %v8572_v20 = vadd.f32 %v192_v19, %v105_v17 }
  0xed   :  { %v7935_v23 = vpop.f32.mrf.mxu0 }
  0xee   :  { %7940 = vmatprep.mubr.msk.f32.mxu1 %vm220_vm2, %v8572_v20  ;;  %v8584_v25 = vadd.f32 %v7935_v23, %v108_v21 }
  0xef   :  { %v202_v26 = vpop.f32.mrf.mxu0  ;;  %7941 = vmatmul.mubr.msk.f32.vlgmr.msra.gmra.mxu1 %vm220_vm2, %v8577_v22 }
  0xf0   :  { %v8588_v27 = vadd.f32 %v202_v26, %v107_v24 }
  0xf2   :  { %7943 = vmatprep.mubr.msk.f32.mxu1 %vm220_vm2, %v8588_v27 }
  0xf3   :  { %7944 = vmatmul.mubr.msk.f32.gmra.mxu1 %vm220_vm2, %v8584_v25 }
  0xf4   :  { %7948 = vmatprep.mubr.msk.f32.mxu1 %vm8357_vm3, %v8355_v28 }
 0x1af   :  { %v7942_v36 = vpop.f32.mrf.mxu1 }
 0x1b0   :  { %v305_v37 = vadd.f32 %v7942_v36, %v7533_v34 }
 0x1b1   :  { %v299_v38 = vpop.f32.mrf.mxu1 }
 0x1b2   :  { %v371_v39 = vcombine.high %v305_v37, %v305_v37  ;;  %v378_v40 = vrot.slane %v305_v37, %v8602_v35  ;;  %v300_v41 = vadd.f32 %v7533_v34, %v299_v38 }
 0x1b3   :  { %v7945_v42 = vpop.f32.mrf.mxu1 }
 0x1b4   :  { %v385_v43 = vrot.slane %v371_v39, %v8602_v35  ;;  %v386_v44 = vcombine.high %v378_v40, %v378_v40  ;;  %v322_v45 = vcombine.high %v300_v41, %v300_v41  ;;  %v394_v46 = vrot.slane %v378_v40, %v8602_v35 }
 0x1b5   :  { %v329_v47 = vrot.slane %v300_v41, %v8602_v35  ;;  %v309_v53 = vpop.f32.mrf.mxu1  ;;  %v315_v57 = vadd.f32 %v7945_v42, %v7533_v34 }
 0x1b6   :  { %v387_v48 = vcombine.high %v385_v43, %v385_v43  ;;  %v401_v49 = vrot.slane %v385_v43, %v8602_v35  ;;  %v408_v50 = vrot.slane %v386_v44, %v8602_v35  ;;  %v336_v51 = vrot.slane %v322_v45, %v8602_v35 }
 0x1b7   :  { %v337_v52 = vcombine.high %v329_v47, %v329_v47  ;;  %v345_v59 = vrot.slane %v329_v47, %v8602_v35  ;;  %v310_v0 = vadd.f32 %v7533_v34, %v309_v53  ;;  %v475_v8 = vrot.slane %v315_v57, %v8602_v35 }
 0x1b8   :  { %v415_v54 = vrot.slane %v387_v48, %v8602_v35  ;;  %v417_v55 = vcombine.high %v401_v49, %v401_v49  ;;  %v7544_v56 = vcombine.high %v394_v46, %v408_v50  ;;  %v338_v58 = vcombine.high %v336_v51, %v336_v51 }
 0x1b9   :  { %v352_v60 = vrot.slane %v336_v51, %v8602_v35  ;;  %v359_v61 = vrot.slane %v337_v52, %v8602_v35  ;;  %v631_v13 = vrot.slane %v408_v50, %v8602_v35  ;;  %v420_v21 = vcombine.high %v310_v0, %v310_v0 }
 0x1ba   :  { %v725_v62 = vcombine.low %v401_v49, %v415_v54  ;;  %v746_v63 = vrot.slane %v417_v55, %v8602_v35  ;;  %v366_v1 = vrot.slane %v338_v58, %v8602_v35  ;;  %v732_v5 = vrot.slane %v7544_v56, %v8602_v35 }
 0x1bb   :  { %v368_v2 = vcombine.high %v352_v60, %v352_v60  ;;  %v493_v3 = vcombine.low %v345_v59, %v359_v61  ;;  %v7539_v4 = vcombine.high %v345_v59, %v359_v61  ;;  %v515_v7 = vrot.slane %v352_v60, %v8602_v35 }
 0x1bc   :  { %v739_v6 = vrot.slane %v725_v62, %v8602_v35  ;;  %v370_v9 = vcombine.high %v366_v1, %v366_v1  ;;  %v761_v15 = vrot.slane %v746_v63, %v8602_v35  ;;  %v419_v19 = vcombine.high %v415_v54, %v415_v54 }
 0x1bd   :  { %v501_v10 = vrot.slane %v493_v3, %v8602_v35  ;;  %v508_v11 = vrot.slane %v7539_v4, %v8602_v35  ;;  %v609_v12 = vcombine.low %v366_v1, %v368_v2  ;;  %v530_v16 = vrot.slane %v515_v7, %v8602_v35 }
 0x1be   :  { %v747_v14 = vcombine.low %v732_v5, %v739_v6  ;;  %v610_v18 = vcombine.low %v370_v9, %v394_v46  ;;  %v427_v26 = vrot.slane %v310_v0, %v8602_v35  ;;  %v434_v31 = vrot.slane %v420_v21, %v8602_v35  ;;  %v8701_v9 = vld [vmem:[%s9935_s0] sm:$0x1f] }
 0x1bf   :  { %v516_v17 = vcombine.low %v501_v10, %v508_v11  ;;  %v617_v24 = vrot.slane %v609_v12, %v8602_v35  ;;  %v646_v44 = vrot.slane %v631_v13, %v8602_v35  ;;  %v482_v46 = vrot.slane %v475_v8, %v8602_v35 }
 0x1c0   :  { %v754_v23 = vrot.slane %v747_v14, %v8602_v35  ;;  %v624_v30 = vrot.slane %v610_v18, %v8602_v35  ;;  %v435_v34 = vcombine.high %v427_v26, %v427_v26  ;;  %v443_v36 = vrot.slane %v427_v26, %v8602_v35 }
 0x1c1   :  { %v523_v29 = vrot.slane %v516_v17, %v8602_v35  ;;  %v436_v39 = vcombine.high %v434_v31, %v434_v31  ;;  %v450_v40 = vrot.slane %v434_v31, %v8602_v35  ;;  %v976_v56 = vrot.slane %v482_v46, %v8602_v35 }
 0x1c2   :  { %v8636_v32 = vcombine.low %v754_v23, %v761_v15  ;;  %v632_v38 = vcombine.low %v617_v24, %v624_v30  ;;  %v457_v41 = vrot.slane %v435_v34, %v8602_v35  ;;  %v465_v42 = vcombine.high %v443_v36, %v443_v36 }
 0x1c3   :  { %v8639_v37 = vcombine.low %v523_v29, %v530_v16  ;;  %v839_v43 = vcombine.low %v419_v19, %v443_v36  ;;  %v464_v47 = vrot.slane %v436_v39, %v8602_v35  ;;  %v991_v63 = vrot.slane %v976_v56, %v8602_v35 }
 0x1c4   :  { %763 = vrot.lane.b32.xlu1 %v8636_v32, %s8358_s2  ;;  %v639_v45 = vrot.slane %v632_v38, %v8602_v35  ;;  %v467_v48 = vcombine.high %v457_v41, %v457_v41  ;;  %v840_v49 = vcombine.low %v457_v41, %v465_v42 }
 0x1c5   :  { %532 = vrot.lane.b32.xlu0 %v8639_v37, %s8358_s2  ;;  %v954_v51 = vcombine.low %v450_v40, %v464_v47  ;;  %v7549_v52 = vcombine.high %v450_v40, %v464_v47  ;;  %v847_v53 = vrot.slane %v839_v43, %v8602_v35 }
 0x1c6   :  { %v8649_v50 = vcombine.low %v639_v45, %v646_v44  ;;  %v854_v54 = vrot.slane %v840_v49, %v8602_v35  ;;  %v861_v55 = vrot.slane %v467_v48, %v8602_v35 }
 0x1c7   :  { %v962_v57 = vrot.slane %v954_v51, %v8602_v35  ;;  %v969_v58 = vrot.slane %v7549_v52, %v8602_v35 }
 0x1c8   :  { %v862_v59 = vcombine.low %v847_v53, %v854_v54  ;;  %v876_v60 = vrot.slane %v861_v55, %v8602_v35 }
 0x1c9   :  { %648 = vrot.lane.b32.xlu0 %v8649_v50, %s8358_s2  ;;  %v977_v61 = vcombine.low %v962_v57, %v969_v58 }
 0x1ca   :  { %v869_v62 = vrot.slane %v862_v59, %v8602_v35 }
 0x1cb   :  { %v984_v0 = vrot.slane %v977_v61, %v8602_v35 }
 0x1cc   :  { %v8662_v1 = vcombine.low %v869_v62, %v876_v60 }
 0x1cd   :  { %v8664_v2 = vcombine.low %v984_v0, %v991_v63 }
 0x1ce   :  { %878 = vrot.lane.b32.xlu1 %v8662_v1, %s8358_s2 }
 0x1cf   :  { %993 = vrot.lane.b32.xlu0 %v8664_v2, %s8358_s2  ;;  %s8365_s2 = smov 88  }
 0x236   :  { %v764_v5 = vpop.permute.xlu1 %763 }
 0x237   :  { %v533_v3 = vpop.permute.xlu0 %532 }
 0x238   :  { %7947 = vmatpush3.xpose.msk.msra.mxu1 %vm534_vm4, %v533_v3 }
 0x239   :  { %7951 = vmatprep.subr.mxu1 %v8355_v28 }
 0x23b   :  { %7949 = vmatmul.mubr.msk.f32.vlgmr.msra.gmra.mxu1 %vm534_vm4, %v8639_v37  ;;  %v649_v4 = vpop.permute.xlu0 %648 }
 0x23c   :  { %7952 = vmatpush3.xpose.msk.msra.mxu1 %vm534_vm4, %v649_v4  ;;  %7953 = vmatprep.mubr.msk.f32.mxu1 %vm8357_vm3, %v8355_v28 }
 0x23d   :  { %7956 = vmatprep.subr.mxu1 %v8355_v28 }
 0x23f   :  { %7954 = vmatmul.mubr.msk.f32.vlgmr.msra.gmra.mxu1 %vm534_vm4, %v8649_v50 }
 0x240   :  { %7957 = vmatpush3.xpose.msk.msra.mxu1 %vm534_vm4, %v764_v5  ;;  %7958 = vmatprep.mubr.msk.f32.mxu1 %vm8357_vm3, %v8355_v28  ;;  %v879_v6 = vpop.permute.xlu1 %878 }
 0x241   :  { %7961 = vmatprep.subr.mxu1 %v8355_v28  ;;  %v994_v7 = vpop.permute.xlu0 %993 }
 0x243   :  { %7959 = vmatmul.mubr.msk.f32.vlgmr.msra.gmra.mxu1 %vm534_vm4, %v8636_v32 }
 0x244   :  { %7962 = vmatpush3.xpose.msk.msra.mxu1 %vm534_vm4, %v879_v6  ;;  %7963 = vmatprep.mubr.msk.f32.mxu1 %vm8357_vm3, %v8355_v28 }
 0x245   :  { %7966 = vmatprep.subr.mxu1 %v8355_v28 }
 0x247   :  { %7964 = vmatmul.mubr.msk.f32.vlgmr.msra.gmra.mxu1 %vm534_vm4, %v8662_v1 }
 0x248   :  { %7967 = vmatpush3.xpose.msk.msra.mxu1 %vm534_vm4, %v994_v7  ;;  %7968 = vmatprep.mubr.msk.f32.mxu1 %vm8357_vm3, %v8355_v28 }
 0x249   :  { %7971 = vmatprep.subr.mxu1 %v8355_v28 }
 0x24b   :  { %7969 = vmatmul.mubr.msk.f32.vlgmr.msra.gmra.mxu1 %vm534_vm4, %v8664_v2 }
 0x24c   :  { %7973 = vmatprep.mubr.msk.f32.mxu1 %vm8357_vm3, %v8355_v28 }
 0x2fb   :  { %v605_v8 = vpop.f32.mrf.mxu1 }
 0x2fc   :  { %v1069_v10 = vmul.f32 0.5, %v605_v8 }
 0x2fd   :  { %v7950_v11 = vpop.f32.mrf.mxu1 }
 0x2fe   :  { %v1074_v12 = vadd.f32 %v1069_v10, %v8701_v9 }
 0x2ff   :  { %v720_v13 = vpop.f32.mrf.mxu1 }
 0x300   :  { %v1070_v14 = vmul.f32 0.5, %v720_v13  ;;  %v1080_v15 = vsel %vm1079_vm5, %v1074_v12, -inf }
 0x301   :  { %1081 = vmax.xlane.f32.xlu1 %v1080_v15  ;;  %v7955_v16 = vpop.f32.mrf.mxu1 }
 0x302   :  { %v1075_v17 = vadd.f32 %v1070_v14, %v8701_v9 }
 0x303   :  { %v835_v18 = vpop.f32.mrf.mxu1 }
 0x304   :  { %v1071_v19 = vmul.f32 0.5, %v835_v18  ;;  %v1083_v21 = vsel %vm1079_vm5, %v1075_v17, -inf }
 0x305   :  { %1084 = vmax.xlane.f32.xlu0 %v1083_v21  ;;  %v7960_v23 = vpop.f32.mrf.mxu1 }
 0x306   :  { %v1076_v24 = vadd.f32 %v1071_v19, %v8701_v9 }
 0x307   :  { %v950_v26 = vpop.f32.mrf.mxu1 }
 0x308   :  { %v1072_v29 = vmul.f32 0.5, %v950_v26  ;;  %v1086_v30 = vsel %vm1079_vm5, %v1076_v24, -inf }
 0x309   :  { %1087 = vmax.xlane.f32.xlu0 %v1086_v30  ;;  %v7965_v31 = vpop.f32.mrf.mxu1 }
 0x30a   :  { %v1077_v34 = vadd.f32 %v1072_v29, %v8701_v9 }
 0x30b   :  { %v1065_v36 = vpop.f32.mrf.mxu1 }
 0x30c   :  { %v1073_v38 = vmul.f32 0.5, %v1065_v36  ;;  %v1089_v39 = vsel %vm1079_vm5, %v1077_v34, -inf }
 0x30d   :  { %1090 = vmax.xlane.f32.xlu1 %v1089_v39  ;;  %v7970_v40 = vpop.f32.mrf.mxu1 }
 0x30e   :  { %v1078_v41 = vadd.f32 %v1073_v38, %v8701_v9 }
 0x310   :  { %v1092_v42 = vsel %vm1079_vm5, %v1078_v41, -inf }
 0x311   :  { %1093 = vmax.xlane.f32.xlu0 %v1092_v42 }
 0x31e   :  { %1214 = vrot.lane.b32.xlu1 %v8649_v50, %s8359_s9 }
 0x322   :  { %1291 = vrot.lane.b32.xlu1 %v8636_v32, %s8359_s9 }
 0x327   :  { %1135 = vrot.lane.b32.xlu0 %v8639_v37, %s8359_s9 }
 0x38a   :  { %v1082_v43 = vpop.xlane.xlu1 %1081 }
 0x38b   :  { %v1095_v44 = vsub.f32 %v1074_v12, %v1082_v43 }
 0x38d   :  { %v1100_v45 = vmul.f32 1.442695, %v1095_v44 }
 0x38e   :  { %v1085_v46 = vpop.xlane.xlu0 %1084 }
 0x38f   :  { %8258 = vpow2.f32 %v1100_v45  ;;  %v1096_v47 = vsub.f32 %v1075_v17, %v1085_v46  ;;  %v8782_v45 = vld [vmem:[%s9936_s1] sm:$0xff] }
 0x391   :  { %v1102_v48 = vmul.f32 1.442695, %v1096_v47 }
 0x392   :  { %v1088_v49 = vpop.xlane.xlu0 %1087 }
 0x393   :  { %8260 = vpow2.f32 %v1102_v48  ;;  %v1097_v51 = vsub.f32 %v1076_v24, %v1088_v49 }
 0x395   :  { %v1104_v52 = vmul.f32 1.442695, %v1097_v51 }
 0x396   :  { %v1091_v53 = vpop.xlane.xlu1 %1090 }
 0x397   :  { %8262 = vpow2.f32 %v1104_v52  ;;  %v1098_v54 = vsub.f32 %v1077_v34, %v1091_v53 }
 0x399   :  { %v1106_v55 = vmul.f32 1.442695, %v1098_v54 }
 0x39a   :  { %v1215_v56 = vpop.permute.xlu1 %1214  ;;  %v1094_v57 = vpop.xlane.xlu0 %1093 }
 0x39b   :  { %8264 = vpow2.f32 %v1106_v55  ;;  %v1099_v58 = vsub.f32 %v1078_v41, %v1094_v57  ;;  %7977 = vmatpush3.msk.msra.mxu0 %vm1141_vm6, %v1215_v56 }
 0x39c   :  { %v8259_v59 = vpop.eup %8258  ;;  %7986 = vmatprep.subr.mxu0 %v8355_v28 }
 0x39d   :  { %v1108_v60 = vmul.f32 1.442695, %v1099_v58  ;;  %v1110_v61 = vsel %vm1079_vm5, %v8259_v59, 0.0 }
 0x39e   :  { %1111 = vadd.xlane.f32.xlu1 %v1110_v61  ;;  %v1136_v62 = vpop.permute.xlu0 %1135  ;;  %v1292_v10 = vpop.permute.xlu1 %1291 }
 0x39f   :  { %8266 = vpow2.f32 %v1108_v60  ;;  %7972 = vmatpush3.msk.msra.mxu1 %vm1141_vm6, %v1136_v62 }
 0x3a0   :  { %v8261_v63 = vpop.eup %8260  ;;  %7981 = vmatprep.subr.mxu1 %v8355_v28 }
 0x3a1   :  { %v1113_v0 = vsel %vm1079_vm5, %v8261_v63, 0.0 }
 0x3a2   :  { %1114 = vadd.xlane.f32.xlu0 %v1113_v0 }
 0x3a4   :  { %v8263_v3 = vpop.eup %8262 }
 0x3a5   :  { %v1116_v4 = vsel %vm1079_vm5, %v8263_v3, 0.0 }
 0x3a6   :  { %1117 = vadd.xlane.f32.xlu1 %v1116_v4 }
 0x3a8   :  { %v8265_v5 = vpop.eup %8264 }
 0x3a9   :  { %v1119_v6 = vsel %vm1079_vm5, %v8265_v5, 0.0 }
 0x3aa   :  { %1120 = vadd.xlane.f32.xlu0 %v1119_v6 }
 0x3ac   :  { %v8267_v7 = vpop.eup %8266 }
 0x3ad   :  { %v1122_v8 = vsel %vm1079_vm5, %v8267_v7, 0.0 }
 0x3ae   :  { %1123 = vadd.xlane.f32.xlu1 %v1122_v8 }
 0x3bf   :  { %1445 = vrot.lane.b32.xlu1 %v8664_v2, %s8359_s9 }
 0x3c0   :  { %1368 = vrot.lane.b32.xlu0 %v8662_v1, %s8359_s9  ;;  %s8366_s9 = smov 100  }
 0x3c3   :  { %1984 = vrot.lane.b32.xlu1 %v8639_v37, %s8360_s3 }
 0x3c4   :  { %1986 = vrot.lane.b32.xlu0 %v8639_v37, %s8361_s29 }
 0x3c7   :  { %2142 = vrot.lane.b32.xlu1 %v8636_v32, %s8361_s29 }
 0x3c8   :  { %2064 = vrot.lane.b32.xlu0 %v8649_v50, %s8361_s29 }
 0x3cb   :  { %2220 = vrot.lane.b32.xlu1 %v8662_v1, %s8361_s29 }
 0x3cc   :  { %2062 = vrot.lane.b32.xlu0 %v8649_v50, %s8360_s3 }
 0x3cf   :  { %2298 = vrot.lane.b32.xlu1 %v8664_v2, %s8361_s29  ;;  %s9942_s29 = sld [smem:[#allocation15_spill]] }
 0x3d0   :  { %2140 = vrot.lane.b32.xlu0 %v8636_v32, %s8360_s3 }
 0x3d3   :  { %2296 = vrot.lane.b32.xlu1 %v8664_v2, %s8360_s3 }
 0x3d4   :  { %2218 = vrot.lane.b32.xlu0 %v8662_v1, %s8360_s3  ;;  %s8367_s3 = smov 116  }
 0x427   :  { %v1112_v11 = vpop.xlane.xlu1 %1111 }
 0x428   :  { %8268 = vrcp.f32 %v1112_v11 }
 0x42b   :  { %v1115_v12 = vpop.xlane.xlu0 %1114 }
 0x42c   :  { %8270 = vrcp.f32 %v1115_v12 }
 0x42f   :  { %v1118_v13 = vpop.xlane.xlu1 %1117 }
 0x430   :  { %8272 = vrcp.f32 %v1118_v13 }
 0x433   :  { %v1121_v14 = vpop.xlane.xlu0 %1120 }
 0x434   :  { %8274 = vrcp.f32 %v1121_v14 }
 0x435   :  { %v8269_v15 = vpop.eup %8268 }
 0x436   :  { %v1130_v16 = vmul.f32 %v8269_v15, %v8259_v59 }
 0x437   :  { %v1124_v17 = vpop.xlane.xlu1 %1123  ;;  %v1369_v18 = vpop.permute.xlu0 %1368 }
 0x438   :  { %8276 = vrcp.f32 %v1124_v17  ;;  %7974 = vmatmul.mubr.msk.f32.vlgmr.msra.gmra.mxu1 %vm1137_vm7, %v1130_v16 }
 0x439   :  { %v8271_v19 = vpop.eup %8270  ;;  %7982 = vmatpush3.msk.msra.mxu1 %vm1141_vm6, %v1292_v10  ;;  %7983 = vmatprep.mubr.msk.f32.mxu1 %vm8357_vm3, %v8355_v28 }
 0x43a   :  { %v1131_v21 = vmul.f32 %v8271_v19, %v8261_v63  ;;  %7991 = vmatprep.subr.mxu1 %v8355_v28 }
 0x43b   :  { %v1987_v23 = vpop.permute.xlu0 %1986  ;;  %v1446_v26 = vpop.permute.xlu1 %1445 }
 0x43c   :  { %7979 = vmatmul.mubr.msk.f32.vlgmr.msra.gmra.mxu0 %vm1137_vm7, %v1131_v21 }
 0x43d   :  { %v8273_v24 = vpop.eup %8272  ;;  %7987 = vmatpush3.msk.msra.mxu0 %vm1141_vm6, %v1369_v18  ;;  %7988 = vmatprep.mubr.msk.f32.mxu0 %vm8357_vm3, %v8355_v28 }
 0x43e   :  { %v1132_v29 = vmul.f32 %v8273_v24, %v8263_v3  ;;  %7996 = vmatprep.subr.msk.mxu0 %vm1891_vm8, %v8782_v45 }
 0x43f   :  { %v2065_v31 = vpop.permute.xlu0 %2064  ;;  %v1985_v36 = vpop.permute.xlu1 %1984 }
 0x440   :  { %7984 = vmatmul.mubr.msk.f32.vlgmr.msra.gmra.mxu1 %vm1137_vm7, %v1132_v29 }
 0x441   :  { %v8275_v30 = vpop.eup %8274  ;;  %7992 = vmatpush3.msk.msra.mxu1 %vm1141_vm6, %v1446_v26  ;;  %7993 = vmatprep.mubr.msk.f32.mxu1 %vm8357_vm3, %v8355_v28 }
 0x442   :  { %v1133_v34 = vmul.f32 %v8275_v30, %v8265_v5  ;;  %8004 = vmatprep.subr.mxu1 %v8355_v28 }
 0x443   :  { %v2063_v40 = vpop.permute.xlu0 %2062  ;;  %v8761_v41 = vpop.permute.xlu1 %2142 }
 0x444   :  { %7989 = vmatmul.mubr.msk.f32.vlgmr.msra.gmra.mxu0 %vm1137_vm7, %v1133_v34 }
 0x445   :  { %v8277_v38 = vpop.eup %8276  ;;  %7997 = vmatpush3.msk.msra.mxu0 %vm1891_vm8, %v8782_v45 }
 0x446   :  { %v1134_v39 = vmul.f32 %v8277_v38, %v8267_v7  ;;  %8014 = vmatprep.subr.mxu0 %v8355_v28 }
 0x447   :  { %v8765_v42 = vpop.permute.xlu0 %2140  ;;  %v2221_v43 = vpop.permute.xlu1 %2220 }
 0x448   :  { %7994 = vmatmul.mubr.msk.f32.vlgmr.msra.gmra.mxu1 %vm1137_vm7, %v1134_v39 }
 0x449   :  { %8005 = vmatpush3.xpose.msk.msra.mxu1 %vm534_vm4, %v1987_v23  ;;  %8006 = vmatprep.mubr.msk.f32.mxu1 %vm8357_vm3, %v8355_v28 }
 0x44a   :  { %8009 = vmatprep.subr.mxu1 %v8355_v28 }
 0x44b   :  { %v2219_v44 = vpop.permute.xlu0 %2218 }
 0x44c   :  { %8007 = vmatmul.mubr.msk.f32.vlgmr.msra.gmra.mxu1 %vm534_vm4, %v1985_v36 }
 0x44d   :  { %8010 = vmatpush3.xpose.msk.msra.mxu1 %vm534_vm4, %v2065_v31  ;;  %8011 = vmatprep.mubr.msk.f32.mxu1 %vm8357_vm3, %v8355_v28 }
 0x44e   :  { %8019 = vmatprep.subr.mxu1 %v8355_v28 }
 0x450   :  { %8012 = vmatmul.mubr.msk.f32.vlgmr.msra.gmra.mxu1 %vm534_vm4, %v2063_v40 }
 0x451   :  { %8020 = vmatpush3.xpose.msk.msra.mxu1 %vm534_vm4, %v2221_v43  ;;  %8021 = vmatprep.mubr.msk.f32.mxu1 %vm8357_vm3, %v8355_v28 }
 0x452   :  { %8029 = vmatprep.subr.mxu1 %v8355_v28 }
 0x454   :  { %8022 = vmatmul.mubr.msk.f32.vlgmr.msra.gmra.mxu1 %vm534_vm4, %v2219_v44 }
 0x455   :  { %8031 = vmatprep.mubr.msk.f32.mxu1 %vm8357_vm3, %v8355_v28 }
 0x4f8   :  { %v1210_v46 = vpop.f32.mrf.mxu1 }
 0x4f9   :  { %v1527_v47 = vcombine.high %v1210_v46, %v1210_v46  ;;  %v1534_v48 = vrot.slane %v1210_v46, %v8602_v35 }
 0x4fa   :  { %v7975_v49 = vpop.f32.mrf.mxu1 }
 0x4fb   :  { %v1542_v51 = vcombine.high %v1534_v48, %v1534_v48  ;;  %v1541_v52 = vrot.slane %v1527_v47, %v8602_v35  ;;  %v1549_v54 = vrot.slane %v1534_v48, %v8602_v35 }
 0x4fc   :  { %v1287_v53 = vpop.f32.mrf.mxu0 }
 0x4fd   :  { %v1563_v55 = vrot.slane %v1542_v51, %v8602_v35  ;;  %v1566_v56 = vcombine.high %v1287_v53, %v1287_v53  ;;  %v1573_v57 = vrot.slane %v1287_v53, %v8602_v35  ;;  %v1556_v62 = vrot.slane %v1541_v52, %v8602_v35 }
 0x4fe   :  { %v7980_v58 = vpop.f32.mrf.mxu0 }
 0x4ff   :  { %v1722_v59 = vcombine.low %v1549_v54, %v1563_v55  ;;  %v1580_v60 = vrot.slane %v1566_v56, %v8602_v35  ;;  %v1581_v61 = vcombine.high %v1573_v57, %v1573_v57  ;;  %v7562_v63 = vcombine.high %v1549_v54, %v1563_v55 }
 0x500   :  { %v1588_v0 = vrot.slane %v1573_v57, %v8602_v35  ;;  %v1364_v3 = vpop.f32.mrf.mxu1 }
 0x501   :  { %v1602_v4 = vrot.slane %v1581_v61, %v8602_v35  ;;  %v1605_v7 = vcombine.high %v1364_v3, %v1364_v3  ;;  %v1612_v8 = vrot.slane %v1364_v3, %v8602_v35  ;;  %v1732_v11 = vrot.slane %v1722_v59, %v8602_v35 }
 0x502   :  { %v1603_v5 = vcombine.high %v1588_v0, %v1588_v0  ;;  %v1724_v6 = vcombine.low %v1556_v62, %v1588_v0  ;;  %v7985_v10 = vpop.f32.mrf.mxu1  ;;  %v1595_v12 = vrot.slane %v1580_v60, %v8602_v35  ;;  %v1739_v14 = vrot.slane %v7562_v63, %v8602_v35 }
 0x503   :  { %v1604_v13 = vcombine.high %v1602_v4, %v1602_v4  ;;  %v1619_v16 = vrot.slane %v1605_v7, %v8602_v35  ;;  %v1620_v17 = vcombine.high %v1612_v8, %v1612_v8  ;;  %v1627_v29 = vrot.slane %v1612_v8, %v8602_v35 }
 0x504   :  { %v1725_v15 = vcombine.low %v1602_v4, %v1603_v5  ;;  %v1441_v18 = vpop.f32.mrf.mxu0  ;;  %v1746_v24 = vrot.slane %v1724_v6, %v8602_v35  ;;  %v1754_v40 = vcombine.low %v1732_v11, %v1739_v14 }
 0x505   :  { %v1771_v19 = vcombine.low %v1604_v13, %v1595_v12  ;;  %v1644_v21 = vcombine.high %v1441_v18, %v1441_v18  ;;  %v1651_v23 = vrot.slane %v1441_v18, %v8602_v35  ;;  %v1641_v30 = vrot.slane %v1620_v17, %v8602_v35 }
 0x506   :  { %v1753_v26 = vrot.slane %v1725_v15, %v8602_v35  ;;  %v7990_v31 = vpop.f32.mrf.mxu0  ;;  %v1634_v34 = vrot.slane %v1619_v16, %v8602_v35  ;;  %v1762_v4 = vrot.slane %v1754_v40, %v8602_v35 }
 0x507   :  { %v1658_v36 = vrot.slane %v1644_v21, %v8602_v35  ;;  %v1659_v38 = vcombine.high %v1651_v23, %v1651_v23  ;;  %v1666_v39 = vrot.slane %v1651_v23, %v8602_v35  ;;  %v1772_v44 = vcombine.low %v1627_v29, %v1641_v30 }
 0x508   :  { %v1755_v43 = vcombine.low %v1746_v24, %v1753_v26  ;;  %v7563_v46 = vcombine.high %v1627_v29, %v1641_v30  ;;  %v1518_v47 = vpop.f32.mrf.mxu1  ;;  %v1781_v48 = vrot.slane %v1771_v19, %v8602_v35 }
 0x509   :  { %v1680_v49 = vrot.slane %v1659_v38, %v8602_v35  ;;  %v1681_v51 = vcombine.high %v1666_v39, %v1666_v39  ;;  %v1774_v52 = vcombine.low %v1634_v34, %v1666_v39  ;;  %v1788_v53 = vrot.slane %v1772_v44, %v8602_v35 }
 0x50a   :  { %v1673_v54 = vrot.slane %v1658_v36, %v8602_v35  ;;  %v1683_v55 = vcombine.high %v1518_v47, %v1518_v47  ;;  %v1690_v56 = vrot.slane %v1518_v47, %v8602_v35  ;;  %v7995_v57 = vpop.f32.mrf.mxu1  ;;  %v1795_v58 = vrot.slane %v7563_v46, %v8602_v35 }
 0x50b   :  { %v1682_v59 = vcombine.high %v1680_v49, %v1680_v49  ;;  %v1802_v60 = vrot.slane %v1774_v52, %v8602_v35  ;;  %v1769_v61 = vrot.slane %v1755_v43, %v8602_v35  ;;  %v1803_v62 = vcombine.low %v1781_v48, %v1788_v53 }
 0x50c   :  { %v1820_v63 = vcombine.low %v1680_v49, %v1681_v51  ;;  %v1698_v0 = vcombine.high %v1690_v56, %v1690_v56  ;;  %v2058_v3 = vpop.f32.mrf.mxu1  ;;  %v1697_v7 = vrot.slane %v1683_v55, %v8602_v35  ;;  %v1705_v10 = vrot.slane %v1690_v56, %v8602_v35 }
 0x50d   :  { %v1804_v5 = vcombine.low %v1795_v58, %v1802_v60  ;;  %v1821_v6 = vcombine.low %v1682_v59, %v1673_v54  ;;  %v2374_v8 = vmul.f32 0.5, %v2058_v3  ;;  %v1770_v12 = vcombine.low %v1762_v4, %v1769_v61 }
 0x50e   :  { %v1719_v11 = vrot.slane %v1698_v0, %v8602_v35  ;;  %v8008_v13 = vpop.f32.mrf.mxu1  ;;  %v1811_v14 = vrot.slane %v1803_v62, %v8602_v35  ;;  %v1830_v18 = vrot.slane %v1820_v63, %v8602_v35  ;;  %v1712_v24 = vrot.slane %v1697_v7, %v8602_v35 }
 0x50f   :  { %v1818_v15 = vrot.slane %v1804_v5, %v8602_v35  ;;  %v1837_v16 = vrot.slane %v1821_v6, %v8602_v35  ;;  %v2379_v17 = vadd.f32 %v2374_v8, %v8701_v9  ;;  %7998 = vmatprep.mubr.msk.f32.mxu0 %vm534_vm4, %v1770_v12 }
 0x510   :  { %v1822_v19 = vcombine.low %v1705_v10, %v1719_v11  ;;  %v7564_v21 = vcombine.high %v1705_v10, %v1719_v11  ;;  %v2136_v23 = vpop.f32.mrf.mxu1  ;;  %v1875_v44 = vrot.slane %v1712_v24, %v8602_v35 }
 0x511   :  { %v2375_v26 = vmul.f32 0.5, %v2136_v23  ;;  %v2384_v29 = vsel %vm1079_vm5, %v2379_v17, -inf  ;;  %v1819_v30 = vcombine.low %v1811_v14, %v1818_v15  ;;  %v1852_v38 = vcombine.low %v1830_v18, %v1837_v16 }
 0x512   :  { %v1844_v31 = vrot.slane %v1822_v19, %v8602_v35  ;;  %v1851_v34 = vrot.slane %v7564_v21, %v8602_v35  ;;  %2385 = vmax.xlane.f32.xlu0 %v2384_v29  ;;  %v8013_v36 = vpop.f32.mrf.mxu1  ;;  %v1882_v52 = vrot.slane %v1875_v44, %v8602_v35 }
 0x513   :  { %7999 = vmatmul.mubr.msk.f32.vlgmr.msra.gmra.mxu0 %vm534_vm4, %v1819_v30  ;;  %v2380_v39 = vadd.f32 %v2375_v26, %v8701_v9  ;;  %v1860_v48 = vrot.slane %v1852_v38, %v8602_v35 }
 0x514   :  { %v1853_v40 = vcombine.low %v1844_v31, %v1851_v34  ;;  %8015 = vmatpush3.xpose.msk.msra.mxu0 %vm534_vm4, %v8761_v41  ;;  %v2292_v43 = vpop.f32.mrf.mxu1  ;;  %v2299_v41 = vpop.permute.xlu1 %2298 }
 0x515   :  { %v2387_v46 = vsel %vm1079_vm5, %v2380_v39, -inf  ;;  %8024 = vmatprep.subr.mxu0 %v8355_v28  ;;  %v2377_v0 = vmul.f32 0.5, %v2292_v43 }
 0x516   :  { %2388 = vmax.xlane.f32.xlu1 %v2387_v46  ;;  %v8023_v47 = vpop.f32.mrf.mxu1  ;;  %v1867_v49 = vrot.slane %v1853_v40, %v8602_v35 }
 0x517   :  { %v2382_v10 = vadd.f32 %v2377_v0, %v8701_v9  ;;  %v3185_v0 = vrot.slane %v8782_v45, 4 }
 0x518   :  { %v1868_v51 = vcombine.low %v1860_v48, %v1867_v49  ;;  %v2297_v53 = vpop.permute.xlu1 %2296 }
 0x519   :  { %v2393_v15 = vsel %vm1079_vm5, %v2382_v10, -inf }
 0x51a   :  { %8001 = vmatprep.mubr.msk.f32.mxu0 %vm534_vm4, %v1868_v51 }
 0x51b   :  { %8002 = vmatmul.mubr.msk.f32.gmra.mxu0 %vm534_vm4, %v1882_v52 }
 0x51c   :  { %8016 = vmatprep.mubr.msk.f32.mxu0 %vm8357_vm3, %v8355_v28 }
 0x51f   :  { %8017 = vmatmul.mubr.msk.f32.vlgmr.msra.gmra.mxu0 %vm534_vm4, %v8765_v42 }
 0x520   :  { %8025 = vmatpush3.xpose.msk.msra.mxu0 %vm534_vm4, %v2299_v41  ;;  %8026 = vmatprep.mubr.msk.f32.mxu0 %vm8357_vm3, %v8355_v28 }
 0x521   :  { %8034 = vmatprep.subr.mxu0 %v8355_v28 }
 0x523   :  { %8027 = vmatmul.mubr.msk.f32.vlgmr.msra.gmra.mxu0 %vm534_vm4, %v2297_v53 }
 0x524   :  { %8036 = vmatprep.mubr.msk.f32.mxu0 %vm8357_vm3, %v8355_v28 }
 0x59b   :  { %v2386_v54 = vpop.xlane.xlu0 %2385 }
 0x59c   :  { %v2399_v56 = vsub.f32 %v2379_v17, %v2386_v54 }
 0x59e   :  { %v2404_v42 = vmul.f32 1.442695, %v2399_v56 }
 0x59f   :  { %v2389_v55 = vpop.xlane.xlu1 %2388 }
 0x5a0   :  { %v2400_v57 = vsub.f32 %v2380_v39, %v2389_v55  ;;  %8278 = vpow2.f32 %v2404_v42 }
 0x5a2   :  { %v2406_v59 = vmul.f32 1.442695, %v2400_v57 }
 0x5a4   :  { %8280 = vpow2.f32 %v2406_v59 }
 0x5ad   :  { %v8868_v13 = vpop.eup %8278 }
 0x5ae   :  { %v2414_v18 = vsel %vm1079_vm5, %v8868_v13, 0.0 }
 0x5b1   :  { %v8281_v16 = vpop.eup %8280 }
 0x5b2   :  { %v2417_v17 = vsel %vm1079_vm5, %v8281_v16, 0.0 }
 0x5d3   :  { %v8856_v58 = vpop.f32.mrf.mxu0 }
 0x5d5   :  { %v8858_v60 = vpop.f32.mrf.mxu0 }
 0x5db   :  { %v8860_v61 = vpop.f32.mrf.mxu0 }
 0x5dd   :  { %v8862_v62 = vpop.f32.mrf.mxu0 }
 0x5df   :  { %v2214_v63 = vpop.f32.mrf.mxu0 }
 0x5e0   :  { %v2376_v3 = vmul.f32 0.5, %v2214_v63 }
 0x5e1   :  { %v8018_v4 = vpop.f32.mrf.mxu0 }
 0x5e2   :  { %v2381_v5 = vadd.f32 %v2376_v3, %v8701_v9 }
 0x5e3   :  { %v2370_v6 = vpop.f32.mrf.mxu0 }
 0x5e4   :  { %v2378_v7 = vmul.f32 0.5, %v2370_v6  ;;  %v2390_v8 = vsel %vm1079_vm5, %v2381_v5, -inf }
 0x5e5   :  { %2391 = vmax.xlane.f32.xlu0 %v2390_v8  ;;  %v8028_v11 = vpop.f32.mrf.mxu0 }
 0x5e6   :  { %v2383_v12 = vadd.f32 %v2378_v7, %v8701_v9 }
 0x5e8   :  { %v2396_v14 = vsel %vm1079_vm5, %v2383_v12, -inf }
 0x5e9   :  { %2397 = vmax.xlane.f32.xlu1 %v2396_v14  ;;  %2394 = vmax.xlane.f32.xlu0 %v2393_v15 }
 0x5ed   :  { %2418 = vadd.xlane.f32.xlu1 %v2417_v17  ;;  %2415 = vadd.xlane.f32.xlu0 %v2414_v18 }
 0x603   :  { %2516 = vrot.lane.b32.xlu0 %v8649_v50, %s8362_s4 }
 0x66e   :  { %v2392_v19 = vpop.xlane.xlu0 %2391 }
 0x66f   :  { %v2401_v21 = vsub.f32 %v2381_v5, %v2392_v19 }
 0x671   :  { %v2408_v23 = vmul.f32 1.442695, %v2401_v21 }
 0x672   :  { %v2398_v24 = vpop.xlane.xlu1 %2397  ;;  %v2395_v26 = vpop.xlane.xlu0 %2394 }
 0x673   :  { %8282 = vpow2.f32 %v2408_v23  ;;  %v2403_v29 = vsub.f32 %v2383_v12, %v2398_v24  ;;  %v2402_v30 = vsub.f32 %v2382_v10, %v2395_v26 }
 0x675   :  { %v2412_v31 = vmul.f32 1.442695, %v2403_v29  ;;  %v2410_v34 = vmul.f32 1.442695, %v2402_v30 }
 0x676   :  { %v2419_v36 = vpop.xlane.xlu1 %2418  ;;  %v2416_v38 = vpop.xlane.xlu0 %2415 }
 0x677   :  { %8284 = vpow2.f32 %v2412_v31 }
 0x678   :  { %8286 = vpow2.f32 %v2410_v34 }
 0x679   :  { %8288 = vrcp.f32 %v2419_v36 }
 0x67a   :  { %v2517_v39 = vpop.permute.xlu0 %2516  ;;  %8290 = vrcp.f32 %v2416_v38 }
 0x67b   :  { %8035 = vmatpush3.msk.msra.mxu0 %vm1141_vm6, %v2517_v39 }
 0x67c   :  { %8044 = vmatprep.subr.mxu0 %v8355_v28 }
 0x680   :  { %v8283_v40 = vpop.eup %8282 }
 0x681   :  { %v2420_v43 = vsel %vm1079_vm5, %v8283_v40, 0.0 }
 0x682   :  { %2421 = vadd.xlane.f32.xlu0 %v2420_v43 }
 0x684   :  { %v8285_v44 = vpop.eup %8284 }
 0x685   :  { %v8287_v46 = vpop.eup %8286  ;;  %v2426_v47 = vsel %vm1079_vm5, %v8285_v44, 0.0 }
 0x686   :  { %v8289_v48 = vpop.eup %8288  ;;  %2427 = vadd.xlane.f32.xlu0 %v2426_v47  ;;  %v2423_v49 = vsel %vm1079_vm5, %v8287_v46, 0.0 }
 0x687   :  { %2424 = vadd.xlane.f32.xlu1 %v2423_v49  ;;  %v2435_v51 = vmul.f32 %v8289_v48, %v8281_v16  ;;  %v8291_v54 = vpop.eup %8290 }
 0x688   :  { %v2434_v56 = vmul.f32 %v8291_v54, %v8868_v13 }
 0x689   :  { %8037 = vmatmul.mubr.msk.f32.vlgmr.msra.gmra.mxu0 %vm1137_vm7, %v2435_v51 }
 0x68a   :  { %8046 = vmatprep.mubr.msk.f32.mxu0 %vm8357_vm3, %v8355_v28 }
 0x698   :  { %2439 = vrot.lane.b32.xlu1 %v8639_v37, %s8362_s4 }
 0x69c   :  { %2593 = vrot.lane.b32.xlu1 %v8636_v32, %s8362_s4  ;;  %2747 = vrot.lane.b32.xlu0 %v8664_v2, %s8362_s4 }
 0x6a0   :  { %2670 = vrot.lane.b32.xlu1 %v8662_v1, %s8362_s4  ;;  %3285 = vrot.lane.b32.xlu0 %v8639_v37, %s8363_s10 }
 0x6a4   :  { %3287 = vrot.lane.b32.xlu1 %v8639_v37, %s8364_s7  ;;  %3443 = vrot.lane.b32.xlu0 %v8636_v32, %s8364_s7 }
 0x6a8   :  { %3365 = vrot.lane.b32.xlu1 %v8649_v50, %s8364_s7  ;;  %3521 = vrot.lane.b32.xlu0 %v8662_v1, %s8364_s7 }
 0x6ac   :  { %3363 = vrot.lane.b32.xlu1 %v8649_v50, %s8363_s10  ;;  %3599 = vrot.lane.b32.xlu0 %v8664_v2, %s8364_s7 }
 0x6b0   :  { %3441 = vrot.lane.b32.xlu1 %v8636_v32, %s8363_s10  ;;  %3597 = vrot.lane.b32.xlu0 %v8664_v2, %s8363_s10 }
 0x6b4   :  { %3519 = vrot.lane.b32.xlu1 %v8662_v1, %s8363_s10  ;;  %s9938_s10 = sld [smem:[#allocation11_spill]] }
 0x70b   :  { %v2422_v52 = vpop.xlane.xlu0 %2421 }
 0x70c   :  { %8292 = vrcp.f32 %v2422_v52 }
 0x70f   :  { %v2428_v41 = vpop.xlane.xlu0 %2427 }
 0x710   :  { %v2425_v53 = vpop.xlane.xlu1 %2424  ;;  %8294 = vrcp.f32 %v2428_v41 }
 0x711   :  { %8296 = vrcp.f32 %v2425_v53 }
 0x713   :  { %v2748_v57 = vpop.permute.xlu0 %2747 }
 0x714   :  { %v2440_v55 = vpop.permute.xlu1 %2439 }
 0x715   :  { %8030 = vmatpush3.msk.msra.mxu1 %vm1141_vm6, %v2440_v55 }
 0x716   :  { %8032 = vmatmul.mubr.msk.f32.vlgmr.msra.gmra.mxu1 %vm1137_vm7, %v2434_v56  ;;  %8039 = vmatprep.subr.mxu1 %v8355_v28 }
 0x717   :  { %8041 = vmatprep.mubr.msk.f32.mxu1 %vm8357_vm3, %v8355_v28  ;;  %v3286_v5 = vpop.permute.xlu0 %3285 }
 0x718   :  { %v2594_v42 = vpop.permute.xlu1 %2593 }
 0x719   :  { %v8293_v59 = vpop.eup %8292  ;;  %8040 = vmatpush3.msk.msra.mxu1 %vm1141_vm6, %v2594_v42 }
 0x71a   :  { %8049 = vmatprep.subr.mxu1 %v8355_v28  ;;  %v2436_v63 = vmul.f32 %v8293_v59, %v8283_v40 }
 0x71b   :  { %v8925_v10 = vpop.permute.xlu0 %3443 }
 0x71c   :  { %v2671_v3 = vpop.permute.xlu1 %2670  ;;  %8042 = vmatmul.mubr.msk.f32.vlgmr.msra.gmra.mxu1 %vm1137_vm7, %v2436_v63 }
 0x71d   :  { %v8295_v4 = vpop.eup %8294  ;;  %8045 = vmatpush3.msk.msra.mxu0 %vm1141_vm6, %v2671_v3  ;;  %8050 = vmatpush3.msk.msra.mxu1 %vm1141_vm6, %v2748_v57 }
 0x71e   :  { %v8297_v6 = vpop.eup %8296  ;;  %8051 = vmatprep.mubr.msk.f32.mxu1 %vm8357_vm3, %v8355_v28  ;;  %8062 = vmatprep.subr.mxu1 %v8355_v28  ;;  %v2438_v7 = vmul.f32 %v8295_v4, %v8285_v44 }
 0x71f   :  { %v2437_v8 = vmul.f32 %v8297_v6, %v8287_v46  ;;  %8054 = vmatprep.subr.msk.mxu0 %vm1891_vm8, %v3185_v0  ;;  %v3522_v13 = vpop.permute.xlu0 %3521 }
 0x720   :  { %v3288_v45 = vpop.permute.xlu1 %3287  ;;  %8052 = vmatmul.mubr.msk.f32.vlgmr.msra.gmra.mxu1 %vm1137_vm7, %v2438_v7 }
 0x721   :  { %8047 = vmatmul.mubr.msk.f32.vlgmr.msra.gmra.mxu0 %vm1137_vm7, %v2437_v8  ;;  %8063 = vmatpush3.xpose.msk.msra.mxu1 %vm534_vm4, %v3288_v45 }
 0x722   :  { %8064 = vmatprep.mubr.msk.f32.mxu1 %vm8357_vm3, %v8355_v28  ;;  %8067 = vmatprep.subr.mxu1 %v8355_v28 }
 0x723   :  { %8055 = vmatpush3.msk.msra.mxu0 %vm1891_vm8, %v3185_v0 }
 0x724   :  { %v3366_v11 = vpop.permute.xlu1 %3365  ;;  %8065 = vmatmul.mubr.msk.f32.vlgmr.msra.gmra.mxu1 %vm534_vm4, %v3286_v5  ;;  %8072 = vmatprep.subr.mxu0 %v8355_v28 }
 0x725   :  { %8068 = vmatpush3.xpose.msk.msra.mxu1 %vm534_vm4, %v3366_v11  ;;  %8069 = vmatprep.mubr.msk.f32.mxu1 %vm8357_vm3, %v8355_v28 }
 0x726   :  { %8077 = vmatprep.subr.mxu1 %v8355_v28 }
 0x728   :  { %v3364_v12 = vpop.permute.xlu1 %3363 }
 0x729   :  { %8070 = vmatmul.mubr.msk.f32.vlgmr.msra.gmra.mxu1 %vm534_vm4, %v3364_v12 }
 0x72a   :  { %8078 = vmatpush3.xpose.msk.msra.mxu1 %vm534_vm4, %v3522_v13  ;;  %8079 = vmatprep.mubr.msk.f32.mxu1 %vm8357_vm3, %v8355_v28 }
 0x72b   :  { %8087 = vmatprep.subr.mxu1 %v8355_v28 }
 0x72c   :  { %v8939_v14 = vpop.permute.xlu1 %3441 }
 0x730   :  { %v3520_v15 = vpop.permute.xlu1 %3519 }
 0x731   :  { %8080 = vmatmul.mubr.msk.f32.vlgmr.msra.gmra.mxu1 %vm534_vm4, %v3520_v15 }
 0x732   :  { %8089 = vmatprep.mubr.msk.f32.mxu1 %vm8357_vm3, %v8355_v28 }
 0x749   :  { %v2589_v16 = vpop.f32.mrf.mxu0 }
 0x74a   :  { %v2875_v18 = vrot.slane %v2589_v16, %v8602_v35  ;;  %v2868_v21 = vcombine.high %v2589_v16, %v2589_v16 }
 0x74b   :  { %v8038_v17 = vpop.f32.mrf.mxu0 }
 0x74c   :  { %v2883_v19 = vcombine.high %v2875_v18, %v2875_v18  ;;  %v2890_v23 = vrot.slane %v2875_v18, %v8602_v35  ;;  %v2882_v26 = vrot.slane %v2868_v21, %v8602_v35 }
 0x74e   :  { %v2904_v24 = vrot.slane %v2883_v19, %v8602_v35  ;;  %v2905_v34 = vcombine.high %v2890_v23, %v2890_v23  ;;  %v2897_v43 = vrot.slane %v2882_v26, %v8602_v35 }
 0x750   :  { %v2906_v36 = vcombine.high %v2904_v24, %v2904_v24  ;;  %v3027_v48 = vcombine.low %v2904_v24, %v2905_v34 }
 0x752   :  { %v3073_v49 = vcombine.low %v2906_v36, %v2897_v43  ;;  %v3055_v0 = vrot.slane %v3027_v48, %v8602_v35 }
 0x754   :  { %v3083_v5 = vrot.slane %v3073_v49, %v8602_v35 }
 0x7d6   :  { %v2512_v29 = vpop.f32.mrf.mxu1 }
 0x7d7   :  { %v2829_v30 = vcombine.high %v2512_v29, %v2512_v29  ;;  %v2836_v31 = vrot.slane %v2512_v29, %v8602_v35 }
 0x7d8   :  { %v8033_v38 = vpop.f32.mrf.mxu1 }
 0x7d9   :  { %v2843_v39 = vrot.slane %v2829_v30, %v8602_v35  ;;  %v2844_v40 = vcombine.high %v2836_v31, %v2836_v31  ;;  %v2851_v44 = vrot.slane %v2836_v31, %v8602_v35 }
 0x7db   :  { %v2858_v46 = vrot.slane %v2843_v39, %v8602_v35  ;;  %v2865_v47 = vrot.slane %v2844_v40, %v8602_v35 }
 0x7dc   :  { %v2666_v51 = vpop.f32.mrf.mxu1 }
 0x7dd   :  { %v3024_v52 = vcombine.low %v2851_v44, %v2865_v47  ;;  %v7590_v41 = vcombine.high %v2851_v44, %v2865_v47  ;;  %v3026_v53 = vcombine.low %v2858_v46, %v2890_v23  ;;  %v2907_v54 = vcombine.high %v2666_v51, %v2666_v51 }
 0x7de   :  { %v2914_v55 = vrot.slane %v2666_v51, %v8602_v35  ;;  %v8043_v56 = vpop.f32.mrf.mxu1 }
 0x7df   :  { %v3034_v57 = vrot.slane %v3024_v52, %v8602_v35  ;;  %v3041_v42 = vrot.slane %v7590_v41, %v8602_v35  ;;  %v3048_v59 = vrot.slane %v3026_v53, %v8602_v35  ;;  %v2921_v63 = vrot.slane %v2907_v54, %v8602_v35 }
 0x7e0   :  { %v2922_v3 = vcombine.high %v2914_v55, %v2914_v55  ;;  %v2820_v4 = vpop.f32.mrf.mxu1  ;;  %v2929_v11 = vrot.slane %v2914_v55, %v8602_v35 }
 0x7e1   :  { %v3056_v6 = vcombine.low %v3034_v57, %v3041_v42  ;;  %v2743_v7 = vpop.f32.mrf.mxu0  ;;  %v2985_v8 = vcombine.high %v2820_v4, %v2820_v4  ;;  %v2992_v45 = vrot.slane %v2820_v4, %v8602_v35  ;;  %v2936_v17 = vrot.slane %v2921_v63, %v8602_v35 }
 0x7e2   :  { %v2943_v12 = vrot.slane %v2922_v3, %v8602_v35  ;;  %v2946_v13 = vcombine.high %v2743_v7, %v2743_v7  ;;  %v2953_v15 = vrot.slane %v2743_v7, %v8602_v35  ;;  %v8053_v16 = vpop.f32.mrf.mxu1  ;;  %v3057_v23 = vcombine.low %v3048_v59, %v3055_v0 }
 0x7e3   :  { %v2999_v18 = vrot.slane %v2985_v8, %v8602_v35  ;;  %v3000_v19 = vcombine.high %v2992_v45, %v2992_v45  ;;  %v8048_v21 = vpop.f32.mrf.mxu0  ;;  %v3007_v36 = vrot.slane %v2992_v45, %v8602_v35  ;;  %v3064_v39 = vrot.slane %v3056_v6, %v8602_v35 }
 0x7e4   :  { %v3074_v24 = vcombine.low %v2929_v11, %v2943_v12  ;;  %v7591_v26 = vcombine.high %v2929_v11, %v2943_v12  ;;  %v2960_v29 = vrot.slane %v2946_v13, %v8602_v35  ;;  %v2961_v30 = vcombine.high %v2953_v15, %v2953_v15  ;;  %v3359_v31 = vpop.f32.mrf.mxu1 }
 0x7e5   :  { %v2968_v34 = vrot.slane %v2953_v15, %v8602_v35  ;;  %v3021_v38 = vrot.slane %v3000_v19, %v8602_v35  ;;  %v3675_v46 = vmul.f32 0.5, %v3359_v31  ;;  %v3071_v55 = vrot.slane %v3057_v23, %v8602_v35 }
 0x7e6   :  { %v3090_v40 = vrot.slane %v3074_v24, %v8602_v35  ;;  %v3097_v43 = vrot.slane %v7591_v26, %v8602_v35  ;;  %v2982_v44 = vrot.slane %v2961_v30, %v8602_v35  ;;  %v8066_v47 = vpop.f32.mrf.mxu1  ;;  %v2975_v53 = vrot.slane %v2960_v29, %v8602_v35 }
 0x7e7   :  { %v2983_v48 = vcombine.high %v2968_v34, %v2968_v34  ;;  %v3076_v49 = vcombine.low %v2936_v17, %v2968_v34  ;;  %v3124_v51 = vcombine.low %v3007_v36, %v3021_v38  ;;  %v7592_v52 = vcombine.high %v3007_v36, %v3021_v38  ;;  %v9002_v36 = vld [vmem:[%s9935_s0] sm:$0x1f]  ;;  %s9937_s0 = sld [smem:[#allocation10_spill]] }
 0x7e8   :  { %v3105_v41 = vcombine.low %v3083_v5, %v3090_v40  ;;  %v2984_v54 = vcombine.high %v2982_v44, %v2982_v44  ;;  %v3072_v3 = vcombine.low %v3064_v39, %v3071_v55  ;;  %v3014_v7 = vrot.slane %v2999_v18, %v8602_v35  ;;  %v3600_v39 = vpop.permute.xlu0 %3599 }
 0x7e9   :  { %v3104_v56 = vrot.slane %v3076_v49, %v8602_v35  ;;  %v3122_v57 = vcombine.low %v2982_v44, %v2983_v48  ;;  %v3146_v42 = vrot.slane %v3124_v51, %v8602_v35  ;;  %v3153_v59 = vrot.slane %v7592_v52, %v8602_v35  ;;  %v3437_v63 = vpop.f32.mrf.mxu1 }
 0x7ea   :  { %v3123_v0 = vcombine.low %v2984_v54, %v2975_v53  ;;  %v3676_v4 = vmul.f32 0.5, %v3437_v63  ;;  %v3680_v5 = vadd.f32 %v3675_v46, %v8701_v9  ;;  %8056 = vmatprep.mubr.msk.f32.mxu0 %vm534_vm4, %v3072_v3  ;;  %v3113_v15 = vrot.slane %v3105_v41, %v8602_v35 }
 0x7eb   :  { %v3106_v6 = vcombine.low %v3097_v43, %v3104_v56  ;;  %v8071_v8 = vpop.f32.mrf.mxu1  ;;  %v3132_v45 = vrot.slane %v3122_v57, %v8602_v35  ;;  %v3155_v12 = vcombine.low %v3146_v42, %v3153_v59  ;;  %v3177_v21 = vrot.slane %v3014_v7, %v8602_v35 }
 0x7ec   :  { %v3139_v11 = vrot.slane %v3123_v0, %v8602_v35  ;;  %v3681_v13 = vadd.f32 %v3676_v4, %v8701_v9  ;;  %v3685_v17 = vsel %vm1079_vm5, %v3680_v5, -inf  ;;  %v3598_v40 = vpop.permute.xlu0 %3597 }
 0x7ed   :  { %v3120_v16 = vrot.slane %v3106_v6, %v8602_v35  ;;  %3686 = vmax.xlane.f32.xlu1 %v3685_v17  ;;  %v3169_v26 = vrot.slane %v3155_v12, %v8602_v35  ;;  %v3184_v34 = vrot.slane %v3177_v21, %v8602_v35  ;;  %v7538_v49 = vld [vmem:[%s9937_s0] ss:$0 sm:$0xff] }
 0x7ee   :  { %v3688_v18 = vsel %vm1079_vm5, %v3681_v13, -inf  ;;  %v3154_v19 = vcombine.low %v3132_v45, %v3139_v11  ;;  %v1981_v41 = vadd.f32 %v8856_v58, %v7538_v49  ;;  %v1980_v54 = vadd.f32 %v7538_v49, %v8858_v60 }
 0x7ef   :  { %3689 = vmax.xlane.f32.xlu0 %v3688_v18  ;;  %v3121_v23 = vcombine.low %v3113_v15, %v3120_v16  ;;  %v1983_v59 = vadd.f32 %v8860_v61, %v7538_v49  ;;  %v1982_v3 = vadd.f32 %v7538_v49, %v8862_v62 }
 0x7f0   :  { %v3162_v24 = vrot.slane %v3154_v19, %v8602_v35 }
 0x7f1   :  { %8057 = vmatmul.mubr.msk.f32.vlgmr.msra.gmra.mxu0 %vm534_vm4, %v3121_v23  ;;  %v3593_v9 = vpop.f32.mrf.mxu1 }
 0x7f2   :  { %8073 = vmatpush3.xpose.msk.msra.mxu0 %vm534_vm4, %v8925_v10  ;;  %v3678_v29 = vmul.f32 0.5, %v3593_v9  ;;  %v3170_v30 = vcombine.low %v3162_v24, %v3169_v26 }
 0x7f3   :  { %v8081_v31 = vpop.f32.mrf.mxu1  ;;  %8082 = vmatprep.subr.mxu0 %v8355_v28 }
 0x7f4   :  { %8059 = vmatprep.mubr.msk.f32.mxu0 %vm534_vm4, %v3170_v30  ;;  %v3683_v38 = vadd.f32 %v9002_v36, %v3678_v29 }
 0x7f5   :  { %8060 = vmatmul.mubr.msk.f32.gmra.mxu0 %vm534_vm4, %v3184_v34 }
 0x7f6   :  { %v3694_v10 = vsel %vm1079_vm5, %v3683_v38, -inf  ;;  %8074 = vmatprep.mubr.msk.f32.mxu0 %vm8357_vm3, %v8355_v28 }
 0x7f7   :  { %3695 = vmax.xlane.f32.xlu1 %v3694_v10 }
 0x7f9   :  { %8075 = vmatmul.mubr.msk.f32.vlgmr.msra.gmra.mxu0 %vm534_vm4, %v8939_v14 }
 0x7fa   :  { %8083 = vmatpush3.xpose.msk.msra.mxu0 %vm534_vm4, %v3600_v39  ;;  %8084 = vmatprep.mubr.msk.f32.mxu0 %vm8357_vm3, %v8355_v28 }
 0x7fb   :  { %8092 = vmatprep.subr.mxu0 %v8355_v28 }
 0x7fd   :  { %8085 = vmatmul.mubr.msk.f32.vlgmr.msra.gmra.mxu0 %vm534_vm4, %v3598_v40 }
 0x7fe   :  { %8094 = vmatprep.mubr.msk.f32.mxu0 %vm8357_vm3, %v8355_v28 }
 0x876   :  { %v3687_v43 = vpop.xlane.xlu1 %3686 }
 0x877   :  { %v3700_v44 = vsub.f32 %v3680_v5, %v3687_v43 }
 0x878   :  { %v3690_v48 = vpop.xlane.xlu0 %3689 }
 0x879   :  { %v3705_v46 = vmul.f32 1.442695, %v3700_v44  ;;  %v3701_v51 = vsub.f32 %v3681_v13, %v3690_v48 }
 0x87b   :  { %8298 = vpow2.f32 %v3705_v46  ;;  %v3707_v55 = vmul.f32 1.442695, %v3701_v51 }
 0x87d   :  { %8300 = vpow2.f32 %v3707_v55 }
 0x880   :  { %v3696_v52 = vpop.xlane.xlu1 %3695 }
 0x881   :  { %v3703_v56 = vsub.f32 %v3683_v38, %v3696_v52 }
 0x883   :  { %v3711_v4 = vmul.f32 1.442695, %v3703_v56 }
 0x885   :  { %8302 = vpow2.f32 %v3711_v4 }
 0x888   :  { %v9018_v47 = vpop.eup %8298 }
 0x889   :  { %v3715_v14 = vsel %vm1079_vm5, %v9018_v47, 0.0 }
 0x88a   :  { %3716 = vadd.xlane.f32.xlu1 %v3715_v14  ;;  %v8301_v16 = vpop.eup %8300 }
 0x88b   :  { %v3718_v17 = vsel %vm1079_vm5, %v8301_v16, 0.0 }
 0x892   :  { %v8303_v18 = vpop.eup %8302 }
 0x893   :  { %v3724_v19 = vsel %vm1079_vm5, %v8303_v18, 0.0 }
 0x89b   :  { %3817 = vrot.lane.b32.xlu1 %v8649_v50, %s8365_s2 }
 0x89f   :  { %3894 = vrot.lane.b32.xlu1 %v8636_v32, %s8365_s2 }
 0x8b1   :  { %v8058_v53 = vpop.f32.mrf.mxu0 }
 0x8b2   :  { %v9031_v57 = vadd.f32 %v8058_v53, %v1981_v41 }
 0x8b3   :  { %v3262_v42 = vpop.f32.mrf.mxu0 }
 0x8b4   :  { %v9034_v63 = vadd.f32 %v3262_v42, %v1980_v54 }
 0x8b5   :  { %v8061_v0 = vpop.f32.mrf.mxu0 }
 0x8b6   :  { %v9037_v6 = vadd.f32 %v8061_v0, %v1983_v59 }
 0x8b7   :  { %v3272_v58 = vpop.f32.mrf.mxu0 }
 0x8b8   :  { %v9039_v7 = vadd.f32 %v3272_v58, %v1982_v3 }
 0x8b9   :  { %v3515_v60 = vpop.f32.mrf.mxu0 }
 0x8ba   :  { %v3677_v5 = vmul.f32 0.5, %v3515_v60 }
 0x8bb   :  { %v8076_v8 = vpop.f32.mrf.mxu0 }
 0x8bc   :  { %v3682_v45 = vadd.f32 %v9002_v36, %v3677_v5 }
 0x8bd   :  { %v3671_v11 = vpop.f32.mrf.mxu0 }
 0x8be   :  { %v3679_v61 = vmul.f32 0.5, %v3671_v11  ;;  %v3691_v12 = vsel %vm1079_vm5, %v3682_v45, -inf }
 0x8bf   :  { %3692 = vmax.xlane.f32.xlu0 %v3691_v12  ;;  %v8086_v13 = vpop.f32.mrf.mxu0 }
 0x8c0   :  { %v3684_v62 = vadd.f32 %v9002_v36, %v3679_v61 }
 0x8c2   :  { %v3697_v15 = vsel %vm1079_vm5, %v3684_v62, -inf }
 0x8c3   :  { %3698 = vmax.xlane.f32.xlu0 %v3697_v15 }
 0x8c7   :  { %3719 = vadd.xlane.f32.xlu0 %v3718_v17 }
 0x8cb   :  { %3725 = vadd.xlane.f32.xlu0 %v3724_v19 }
 0x8e1   :  { %3740 = vrot.lane.b32.xlu0 %v8639_v37, %s8365_s2 }
 0x8e5   :  { %3971 = vrot.lane.b32.xlu0 %v8662_v1, %s8365_s2 }
 0x8e9   :  { %4588 = vrot.lane.b32.xlu0 %v8639_v37, %s8366_s9 }
 0x8ed   :  { %4666 = vrot.lane.b32.xlu0 %v8649_v50, %s8366_s9 }
 0x8f1   :  { %4664 = vrot.lane.b32.xlu0 %v8649_v50, %s8367_s3 }
 0x8f5   :  { %4742 = vrot.lane.b32.xlu0 %v8636_v32, %s8367_s3 }
 0x8f9   :  { %4900 = vrot.lane.b32.xlu0 %v8664_v2, %s8366_s9 }
 0x913   :  { %v3717_v21 = vpop.xlane.xlu1 %3716 }
 0x914   :  { %8304 = vrcp.f32 %v3717_v21 }
 0x917   :  { %v3818_v23 = vpop.permute.xlu1 %3817 }
 0x918   :  { %8093 = vmatpush3.msk.msra.mxu0 %vm1141_vm6, %v3818_v23 }
 0x919   :  { %8102 = vmatprep.subr.mxu0 %v8355_v28 }
 0x91b   :  { %v3895_v44 = vpop.permute.xlu1 %3894 }
 0x921   :  { %v8305_v39 = vpop.eup %8304 }
 0x922   :  { %v3735_v40 = vmul.f32 %v8305_v39, %v9018_v47 }
 0x948   :  { %v3693_v24 = vpop.xlane.xlu0 %3692 }
 0x949   :  { %v3702_v26 = vsub.f32 %v3682_v45, %v3693_v24 }
 0x94b   :  { %v3709_v9 = vmul.f32 1.442695, %v3702_v26 }
 0x94c   :  { %v3699_v29 = vpop.xlane.xlu0 %3698 }
 0x94d   :  { %8306 = vpow2.f32 %v3709_v9  ;;  %v3704_v30 = vsub.f32 %v3684_v62, %v3699_v29 }
 0x94f   :  { %v3713_v31 = vmul.f32 1.442695, %v3704_v30 }
 0x950   :  { %v3720_v34 = vpop.xlane.xlu0 %3719 }
 0x951   :  { %8308 = vpow2.f32 %v3713_v31 }
 0x952   :  { %8310 = vrcp.f32 %v3720_v34 }
 0x954   :  { %v3726_v38 = vpop.xlane.xlu0 %3725 }
 0x955   :  { %8312 = vrcp.f32 %v3726_v38 }
 0x958   :  { %v3741_v10 = vpop.permute.xlu0 %3740 }
 0x959   :  { %8088 = vmatpush3.msk.msra.mxu1 %vm1141_vm6, %v3741_v10 }
 0x95a   :  { %v8307_v43 = vpop.eup %8306  ;;  %8090 = vmatmul.mubr.msk.f32.vlgmr.msra.gmra.mxu1 %vm1137_vm7, %v3735_v40  ;;  %8097 = vmatprep.subr.mxu1 %v8355_v28 }
 0x95b   :  { %8098 = vmatpush3.msk.msra.mxu1 %vm1141_vm6, %v3895_v44  ;;  %v3721_v46 = vsel %vm1079_vm5, %v8307_v43, 0.0  ;;  %8099 = vmatprep.mubr.msk.f32.mxu1 %vm8357_vm3, %v8355_v28 }
 0x95c   :  { %3722 = vadd.xlane.f32.xlu1 %v3721_v46  ;;  %8107 = vmatprep.subr.mxu1 %v8355_v28  ;;  %v3972_v52 = vpop.permute.xlu0 %3971 }
 0x95e   :  { %v8309_v14 = vpop.eup %8308 }
 0x95f   :  { %v8311_v47 = vpop.eup %8310  ;;  %v3727_v48 = vsel %vm1079_vm5, %v8309_v14, 0.0 }
 0x960   :  { %3728 = vadd.xlane.f32.xlu1 %v3727_v48  ;;  %v3736_v49 = vmul.f32 %v8311_v47, %v8301_v16  ;;  %v4589_v0 = vpop.permute.xlu0 %4588 }
 0x962   :  { %v8313_v51 = vpop.eup %8312  ;;  %8095 = vmatmul.mubr.msk.f32.vlgmr.msra.gmra.mxu0 %vm1137_vm7, %v3736_v49 }
 0x963   :  { %8103 = vmatpush3.msk.msra.mxu0 %vm1141_vm6, %v3972_v52  ;;  %8104 = vmatprep.mubr.msk.f32.mxu0 %vm8357_vm3, %v8355_v28  ;;  %v3738_v41 = vmul.f32 %v8313_v51, %v8303_v18 }
 0x964   :  { %v4667_v60 = vpop.permute.xlu0 %4666 }
 0x966   :  { %8105 = vmatmul.mubr.msk.f32.vlgmr.msra.gmra.mxu0 %vm1137_vm7, %v3738_v41 }
 0x968   :  { %v4665_v8 = vpop.permute.xlu0 %4664 }
 0x971   :  { %4048 = vrot.lane.b32.xlu1 %v8664_v2, %s8365_s2  ;;  %s9941_s2 = sld [smem:[#allocation14_spill]] }
 0x975   :  { %4586 = vrot.lane.b32.xlu1 %v8639_v37, %s8367_s3 }
 0x979   :  { %4744 = vrot.lane.b32.xlu1 %v8636_v32, %s8366_s9 }
 0x97d   :  { %4822 = vrot.lane.b32.xlu1 %v8662_v1, %s8366_s9 }
 0x981   :  { %4820 = vrot.lane.b32.xlu1 %v8662_v1, %s8367_s3 }
 0x985   :  { %4898 = vrot.lane.b32.xlu1 %v8664_v2, %s8367_s3  ;;  %s9939_s3 = sld [smem:[#allocation12_spill]] }
 0x9e5   :  { %v3723_v53 = vpop.xlane.xlu1 %3722 }
 0x9e6   :  { %8314 = vrcp.f32 %v3723_v53 }
 0x9e9   :  { %v3729_v54 = vpop.xlane.xlu1 %3728 }
 0x9ea   :  { %8316 = vrcp.f32 %v3729_v54 }
 0x9ed   :  { %v4049_v55 = vpop.permute.xlu1 %4048 }
 0x9f1   :  { %v4587_v42 = vpop.permute.xlu1 %4586 }
 0x9f3   :  { %v8315_v56 = vpop.eup %8314 }
 0x9f4   :  { %v3737_v59 = vmul.f32 %v8315_v56, %v8307_v43  ;;  %v9135_v56 = vld [vmem:[%s9936_s1 + $0x8] sm:$0xff] }
 0x9f5   :  { %v9095_v58 = vpop.permute.xlu1 %4744  ;;  %8112 = vmatprep.subr.msk.mxu0 %vm1891_vm8, %v9135_v56 }
 0x9f6   :  { %8100 = vmatmul.mubr.msk.f32.vlgmr.msra.gmra.mxu1 %vm1137_vm7, %v3737_v59  ;;  %8113 = vmatpush3.msk.msra.mxu0 %vm1891_vm8, %v9135_v56 }
 0x9f7   :  { %v8317_v3 = vpop.eup %8316  ;;  %8108 = vmatpush3.msk.msra.mxu1 %vm1141_vm6, %v4049_v55  ;;  %8109 = vmatprep.mubr.msk.f32.mxu1 %vm8357_vm3, %v8355_v28 }
 0x9f8   :  { %8120 = vmatprep.subr.mxu1 %v8355_v28  ;;  %v3739_v4 = vmul.f32 %v8317_v3, %v8309_v14  ;;  %8130 = vmatprep.subr.mxu0 %v8355_v28 }
 0x9f9   :  { %v4823_v5 = vpop.permute.xlu1 %4822 }
 0x9fa   :  { %8110 = vmatmul.mubr.msk.f32.vlgmr.msra.gmra.mxu1 %vm1137_vm7, %v3739_v4 }
 0x9fb   :  { %8121 = vmatpush3.xpose.msk.msra.mxu1 %vm534_vm4, %v4589_v0  ;;  %8122 = vmatprep.mubr.msk.f32.mxu1 %vm8357_vm3, %v8355_v28 }
 0x9fc   :  { %8125 = vmatprep.subr.mxu1 %v8355_v28 }
 0x9fd   :  { %v4821_v45 = vpop.permute.xlu1 %4820 }
 0x9fe   :  { %8123 = vmatmul.mubr.msk.f32.vlgmr.msra.gmra.mxu1 %vm534_vm4, %v4587_v42 }
 0x9ff   :  { %8126 = vmatpush3.xpose.msk.msra.mxu1 %vm534_vm4, %v4667_v60  ;;  %8127 = vmatprep.mubr.msk.f32.mxu1 %vm8357_vm3, %v8355_v28 }
 0xa00   :  { %8135 = vmatprep.subr.mxu1 %v8355_v28 }
 0xa02   :  { %8128 = vmatmul.mubr.msk.f32.vlgmr.msra.gmra.mxu1 %vm534_vm4, %v4665_v8 }
 0xa03   :  { %8136 = vmatpush3.xpose.msk.msra.mxu1 %vm534_vm4, %v4823_v5  ;;  %8137 = vmatprep.mubr.msk.f32.mxu1 %vm8357_vm3, %v8355_v28 }
 0xa04   :  { %8145 = vmatprep.subr.mxu1 %v8355_v28 }
 0xa06   :  { %8138 = vmatmul.mubr.msk.f32.vlgmr.msra.gmra.mxu1 %vm534_vm4, %v4821_v45 }
 0xa07   :  { %8147 = vmatprep.mubr.msk.f32.mxu1 %vm8357_vm3, %v8355_v28 }
 0xa1a   :  { %v3813_v11 = vpop.f32.mrf.mxu1 }
 0xa1b   :  { %v4137_v61 = vrot.slane %v3813_v11, %v8602_v35  ;;  %v4130_v13 = vcombine.high %v3813_v11, %v3813_v11 }
 0xa1c   :  { %v8091_v12 = vpop.f32.mrf.mxu1 }
 0xa1d   :  { %v4145_v62 = vcombine.high %v4137_v61, %v4137_v61  ;;  %v4152_v16 = vrot.slane %v4137_v61, %v8602_v35  ;;  %v4144_v17 = vrot.slane %v4130_v13, %v8602_v35 }
 0xa1f   :  { %v4166_v15 = vrot.slane %v4145_v62, %v8602_v35  ;;  %v4159_v9 = vrot.slane %v4144_v17, %v8602_v35 }
 0xa21   :  { %v4325_v18 = vcombine.low %v4152_v16, %v4166_v15  ;;  %v7618_v21 = vcombine.high %v4152_v16, %v4166_v15 }
 0xa22   :  { %v3890_v19 = vpop.f32.mrf.mxu0 }
 0xa23   :  { %v4169_v23 = vcombine.high %v3890_v19, %v3890_v19  ;;  %v4176_v24 = vrot.slane %v3890_v19, %v8602_v35  ;;  %v4335_v34 = vrot.slane %v4325_v18, %v8602_v35  ;;  %v4342_v39 = vrot.slane %v7618_v21, %v8602_v35 }
 0xa24   :  { %v8096_v26 = vpop.f32.mrf.mxu0 }
 0xa25   :  { %v4183_v29 = vrot.slane %v4169_v23, %v8602_v35  ;;  %v4184_v30 = vcombine.high %v4176_v24, %v4176_v24  ;;  %v4191_v31 = vrot.slane %v4176_v24, %v8602_v35  ;;  %v4357_v48 = vcombine.low %v4335_v34, %v4342_v39 }
 0xa26   :  { %v4044_v38 = vpop.f32.mrf.mxu0 }
 0xa27   :  { %v4205_v10 = vrot.slane %v4184_v30, %v8602_v35  ;;  %v4206_v40 = vcombine.high %v4191_v31, %v4191_v31  ;;  %v4327_v43 = vcombine.low %v4159_v9, %v4191_v31  ;;  %v4198_v46 = vrot.slane %v4183_v29, %v8602_v35 }
 0xa28   :  { %v8106_v44 = vpop.f32.mrf.mxu0  ;;  %v4365_v53 = vrot.slane %v4357_v48, %v8602_v35  ;;  %v4254_v42 = vrot.slane %v4044_v38, %v8602_v35  ;;  %v4247_v0 = vcombine.high %v4044_v38, %v4044_v38 }
 0xa29   :  { %v4207_v14 = vcombine.high %v4205_v10, %v4205_v10  ;;  %v4328_v47 = vcombine.low %v4205_v10, %v4206_v40  ;;  %v4349_v49 = vrot.slane %v4327_v43, %v8602_v35 }
 0xa2a   :  { %v4262_v59 = vcombine.high %v4254_v42, %v4254_v42  ;;  %v4261_v4 = vrot.slane %v4247_v0, %v8602_v35  ;;  %v4269_v60 = vrot.slane %v4254_v42, %v8602_v35 }
 0xa2b   :  { %v4356_v51 = vrot.slane %v4328_v47, %v8602_v35  ;;  %v4374_v52 = vcombine.low %v4207_v14, %v4198_v46 }
 0xa2c   :  { %v4283_v3 = vrot.slane %v4262_v59, %v8602_v35  ;;  %v4276_v62 = vrot.slane %v4261_v4, %v8602_v35  ;;  %v4284_v15 = vcombine.high %v4269_v60, %v4269_v60 }
 0xa2d   :  { %v4358_v41 = vcombine.low %v4349_v49, %v4356_v51  ;;  %v4384_v31 = vrot.slane %v4374_v52, %v8602_v35 }
 0xa2e   :  { %v4285_v11 = vcombine.high %v4283_v3, %v4283_v3  ;;  %v4423_v34 = vcombine.low %v4283_v3, %v4284_v15 }
 0xa2f   :  { %v4372_v54 = vrot.slane %v4358_v41, %v8602_v35 }
 0xa30   :  { %v4424_v24 = vcombine.low %v4285_v11, %v4276_v62  ;;  %v4433_v41 = vrot.slane %v4423_v34, %v8602_v35 }
 0xa31   :  { %v4373_v55 = vcombine.low %v4365_v53, %v4372_v54 }
 0xa32   :  { %v4440_v46 = vrot.slane %v4424_v24, %v8602_v35 }
 0xa33   :  { %8114 = vmatprep.mubr.msk.f32.mxu0 %vm534_vm4, %v4373_v55 }
 0xa34   :  { %v4455_v11 = vcombine.low %v4433_v41, %v4440_v46 }
 0xab6   :  { %v3967_v5 = vpop.f32.mrf.mxu1 }
 0xab7   :  { %v4208_v8 = vcombine.high %v3967_v5, %v3967_v5  ;;  %v4215_v45 = vrot.slane %v3967_v5, %v8602_v35 }
 0xab8   :  { %v8101_v61 = vpop.f32.mrf.mxu1 }
 0xab9   :  { %v4222_v12 = vrot.slane %v4208_v8, %v8602_v35  ;;  %v4223_v13 = vcombine.high %v4215_v45, %v4215_v45  ;;  %v4230_v16 = vrot.slane %v4215_v45, %v8602_v35 }
 0xaba   :  { %v4121_v17 = vpop.f32.mrf.mxu1 }
 0xabb   :  { %v4237_v18 = vrot.slane %v4222_v12, %v8602_v35  ;;  %v4244_v19 = vrot.slane %v4223_v13, %v8602_v35  ;;  %v4286_v21 = vcombine.high %v4121_v17, %v4121_v17  ;;  %v4293_v23 = vrot.slane %v4121_v17, %v8602_v35 }
 0xabc   :  { %v8111_v26 = vpop.f32.mrf.mxu1 }
 0xabd   :  { %v4375_v9 = vcombine.low %v4230_v16, %v4244_v19  ;;  %v7619_v29 = vcombine.high %v4230_v16, %v4244_v19  ;;  %v4377_v30 = vcombine.low %v4237_v18, %v4269_v60  ;;  %v4301_v38 = vcombine.high %v4293_v23, %v4293_v23  ;;  %v4899_v26 = vpop.permute.xlu1 %4898 }
 0xabe   :  { %v4660_v39 = vpop.f32.mrf.mxu1  ;;  %v4300_v44 = vrot.slane %v4286_v21, %v8602_v35  ;;  %v4308_v14 = vrot.slane %v4293_v23, %v8602_v35  ;;  %v4463_v18 = vrot.slane %v4455_v11, %v8602_v35  ;;  %v4743_v23 = vpop.permute.xlu0 %4742 }
 0xabf   :  { %v4391_v10 = vrot.slane %v4375_v9, %v8602_v35  ;;  %v4398_v40 = vrot.slane %v7619_v29, %v8602_v35  ;;  %v4405_v43 = vrot.slane %v4377_v30, %v8602_v35  ;;  %v4322_v47 = vrot.slane %v4301_v38, %v8602_v35 }
 0xac0   :  { %v4976_v48 = vmul.f32 0.5, %v4660_v39  ;;  %v8124_v49 = vpop.f32.mrf.mxu1  ;;  %v4315_v3 = vrot.slane %v4300_v44, %v8602_v35 }
 0xac1   :  { %v4406_v51 = vcombine.low %v4384_v31, %v4391_v10  ;;  %v4407_v52 = vcombine.low %v4398_v40, %v4405_v43  ;;  %v4425_v53 = vcombine.low %v4308_v14, %v4322_v47  ;;  %v7620_v54 = vcombine.high %v4308_v14, %v4322_v47 }
 0xac2   :  { %v4738_v55 = vpop.f32.mrf.mxu1  ;;  %v4981_v42 = vadd.f32 %v9002_v36, %v4976_v48  ;;  %v4478_v15 = vrot.slane %v4315_v3, %v8602_v35 }
 0xac3   :  { %v4414_v59 = vrot.slane %v4406_v51, %v8602_v35  ;;  %v4421_v0 = vrot.slane %v4407_v52, %v8602_v35  ;;  %v4977_v4 = vmul.f32 0.5, %v4738_v55  ;;  %v4447_v60 = vrot.slane %v4425_v53, %v8602_v35 }
 0xac4   :  { %v4454_v5 = vrot.slane %v7620_v54, %v8602_v35  ;;  %v4986_v8 = vsel %vm1079_vm5, %v4981_v42, -inf  ;;  %v8129_v45 = vpop.f32.mrf.mxu1  ;;  %v4485_v24 = vrot.slane %v4478_v15, %v8602_v35 }
 0xac5   :  { %4987 = vmax.xlane.f32.xlu0 %v4986_v8  ;;  %v4422_v61 = vcombine.low %v4414_v59, %v4421_v0  ;;  %v4982_v12 = vadd.f32 %v9002_v36, %v4977_v4 }
 0xac6   :  { %v4456_v13 = vcombine.low %v4447_v60, %v4454_v5  ;;  %v4894_v62 = vpop.f32.mrf.mxu1 }
 0xac7   :  { %8115 = vmatmul.mubr.msk.f32.vlgmr.msra.gmra.mxu0 %vm534_vm4, %v4422_v61  ;;  %v4989_v16 = vsel %vm1079_vm5, %v4982_v12, -inf  ;;  %v4979_v49 = vmul.f32 0.5, %v4894_v62 }
 0xac8   :  { %8131 = vmatpush3.xpose.msk.msra.mxu0 %vm534_vm4, %v9095_v58  ;;  %4990 = vmax.xlane.f32.xlu1 %v4989_v16  ;;  %v8139_v17 = vpop.f32.mrf.mxu1  ;;  %v4470_v19 = vrot.slane %v4456_v13, %v8602_v35  ;;  %v4901_v58 = vpop.permute.xlu0 %4900 }
 0xac9   :  { %8140 = vmatprep.subr.mxu0 %v8355_v28  ;;  %v4984_v54 = vadd.f32 %v9002_v36, %v4979_v49 }
 0xaca   :  { %v4471_v21 = vcombine.low %v4463_v18, %v4470_v19 }
 0xacc   :  { %8117 = vmatprep.mubr.msk.f32.mxu0 %vm534_vm4, %v4471_v21 }
 0xacd   :  { %8118 = vmatmul.mubr.msk.f32.gmra.mxu0 %vm534_vm4, %v4485_v24 }
 0xace   :  { %8132 = vmatprep.mubr.msk.f32.mxu0 %vm8357_vm3, %v8355_v28 }
 0xad1   :  { %8133 = vmatmul.mubr.msk.f32.vlgmr.msra.gmra.mxu0 %vm534_vm4, %v4743_v23 }
 0xad2   :  { %8141 = vmatpush3.xpose.msk.msra.mxu0 %vm534_vm4, %v4901_v58  ;;  %8142 = vmatprep.mubr.msk.f32.mxu0 %vm8357_vm3, %v8355_v28 }
 0xad3   :  { %8150 = vmatprep.subr.mxu0 %v8355_v28 }
 0xad5   :  { %8143 = vmatmul.mubr.msk.f32.vlgmr.msra.gmra.mxu0 %vm534_vm4, %v4899_v26 }
 0xad6   :  { %8152 = vmatprep.mubr.msk.f32.mxu0 %vm8357_vm3, %v8355_v28 }
 0xb4e   :  { %v4988_v9 = vpop.xlane.xlu0 %4987 }
 0xb4f   :  { %v5001_v30 = vsub.f32 %v4981_v42, %v4988_v9 }
 0xb51   :  { %v4991_v29 = vpop.xlane.xlu1 %4990  ;;  %v5006_v39 = vmul.f32 1.442695, %v5001_v30 }
 0xb52   :  { %v5002_v31 = vsub.f32 %v4982_v12, %v4991_v29 }
 0xb53   :  { %8318 = vpow2.f32 %v5006_v39 }
 0xb54   :  { %v5008_v40 = vmul.f32 1.442695, %v5002_v31 }
 0xb56   :  { %8320 = vpow2.f32 %v5008_v40 }
 0xb60   :  { %v8319_v42 = vpop.eup %8318 }
 0xb61   :  { %v5016_v4 = vsel %vm1079_vm5, %v8319_v42, 0.0 }
 0xb63   :  { %v8321_v0 = vpop.eup %8320 }
 0xb64   :  { %v5019_v3 = vsel %vm1079_vm5, %v8321_v0, 0.0 }
 0xb87   :  { %v8116_v34 = vpop.f32.mrf.mxu0 }
 0xb88   :  { %v9192_v38 = vadd.f32 %v8116_v34, %v9031_v57 }
 0xb89   :  { %v4563_v10 = vpop.f32.mrf.mxu0 }
 0xb8a   :  { %v9195_v43 = vadd.f32 %v4563_v10, %v9034_v63 }
 0xb8d   :  { %v8119_v44 = vpop.f32.mrf.mxu0 }
 0xb8e   :  { %v9198_v46 = vadd.f32 %v8119_v44, %v9037_v6 }
 0xb8f   :  { %v4573_v14 = vpop.f32.mrf.mxu0 }
 0xb90   :  { %v9201_v47 = vadd.f32 %v4573_v14, %v9039_v7  ;;  %v4995_v7 = vsel %vm1079_vm5, %v4984_v54, -inf }
 0xb91   :  { %v4816_v48 = vpop.f32.mrf.mxu0 }
 0xb92   :  { %v4978_v57 = vmul.f32 0.5, %v4816_v48 }
 0xb93   :  { %v8134_v51 = vpop.f32.mrf.mxu0 }
 0xb94   :  { %v4983_v52 = vadd.f32 %v9002_v36, %v4978_v57 }
 0xb95   :  { %v4972_v41 = vpop.f32.mrf.mxu0 }
 0xb96   :  { %v4980_v53 = vmul.f32 0.5, %v4972_v41  ;;  %v4992_v63 = vsel %vm1079_vm5, %v4983_v52, -inf }
 0xb97   :  { %4993 = vmax.xlane.f32.xlu0 %v4992_v63  ;;  %v8144_v55 = vpop.f32.mrf.mxu0 }
 0xb98   :  { %v4985_v6 = vadd.f32 %v9002_v36, %v4980_v53 }
 0xb9a   :  { %v4998_v59 = vsel %vm1079_vm5, %v4985_v6, -inf }
 0xb9b   :  { %4996 = vmax.xlane.f32.xlu0 %v4995_v7  ;;  %4999 = vmax.xlane.f32.xlu1 %v4998_v59 }
 0xb9f   :  { %5020 = vadd.xlane.f32.xlu1 %v5019_v3  ;;  %5017 = vadd.xlane.f32.xlu0 %v5016_v4 }
 0xbb5   :  { %5118 = vrot.lane.b32.xlu0 %v8649_v50, %s8368_s11 }
 0xc20   :  { %v4994_v60 = vpop.xlane.xlu0 %4993 }
 0xc21   :  { %v5003_v36 = vsub.f32 %v4983_v52, %v4994_v60 }
 0xc23   :  { %v5010_v5 = vmul.f32 1.442695, %v5003_v36 }
 0xc24   :  { %v5000_v8 = vpop.xlane.xlu1 %4999  ;;  %v4997_v45 = vpop.xlane.xlu0 %4996 }
 0xc25   :  { %8322 = vpow2.f32 %v5010_v5  ;;  %v5005_v11 = vsub.f32 %v4985_v6, %v5000_v8  ;;  %v5004_v61 = vsub.f32 %v4984_v54, %v4997_v45 }
 0xc27   :  { %v5014_v12 = vmul.f32 1.442695, %v5005_v11  ;;  %v5012_v13 = vmul.f32 1.442695, %v5004_v61 }
 0xc28   :  { %v5021_v62 = vpop.xlane.xlu1 %5020  ;;  %v5018_v15 = vpop.xlane.xlu0 %5017 }
 0xc29   :  { %8324 = vpow2.f32 %v5014_v12 }
 0xc2a   :  { %8326 = vpow2.f32 %v5012_v13 }
 0xc2b   :  { %8328 = vrcp.f32 %v5021_v62 }
 0xc2c   :  { %v5119_v16 = vpop.permute.xlu0 %5118  ;;  %8330 = vrcp.f32 %v5018_v15 }
 0xc2d   :  { %8151 = vmatpush3.msk.msra.mxu0 %vm1141_vm6, %v5119_v16 }
 0xc2e   :  { %8160 = vmatprep.subr.mxu0 %v8355_v28 }
 0xc32   :  { %v8323_v50 = vpop.eup %8322 }
 0xc33   :  { %v5022_v17 = vsel %vm1079_vm5, %v8323_v50, 0.0 }
 0xc34   :  { %5023 = vadd.xlane.f32.xlu0 %v5022_v17 }
 0xc36   :  { %v8325_v18 = vpop.eup %8324 }
 0xc37   :  { %v8327_v19 = vpop.eup %8326  ;;  %v5028_v21 = vsel %vm1079_vm5, %v8325_v18, 0.0 }
 0xc38   :  { %v8329_v23 = vpop.eup %8328  ;;  %5029 = vadd.xlane.f32.xlu0 %v5028_v21  ;;  %v5025_v24 = vsel %vm1079_vm5, %v8327_v19, 0.0 }
 0xc39   :  { %5026 = vadd.xlane.f32.xlu1 %v5025_v24  ;;  %v5037_v58 = vmul.f32 %v8329_v23, %v8321_v0  ;;  %v8331_v30 = vpop.eup %8330 }
 0xc3a   :  { %v5036_v34 = vmul.f32 %v8331_v30, %v8319_v42 }
 0xc3b   :  { %8153 = vmatmul.mubr.msk.f32.vlgmr.msra.gmra.mxu0 %vm1137_vm7, %v5037_v58 }
 0xc3c   :  { %8162 = vmatprep.mubr.msk.f32.mxu0 %vm8357_vm3, %v8355_v28 }
 0xc4a   :  { %5041 = vrot.lane.b32.xlu1 %v8639_v37, %s8368_s11 }
 0xc4e   :  { %5195 = vrot.lane.b32.xlu1 %v8636_v32, %s8368_s11  ;;  %5349 = vrot.lane.b32.xlu0 %v8664_v2, %s8368_s11 }
 0xc52   :  { %5272 = vrot.lane.b32.xlu1 %v8662_v1, %s8368_s11  ;;  %v5787_v1 = vrot.slane %v9135_v56, 4 }
 0xcbd   :  { %v5024_v26 = vpop.xlane.xlu0 %5023 }
 0xcbe   :  { %8332 = vrcp.f32 %v5024_v26 }
 0xcc1   :  { %v5030_v9 = vpop.xlane.xlu0 %5029 }
 0xcc2   :  { %v5027_v29 = vpop.xlane.xlu1 %5026  ;;  %8334 = vrcp.f32 %v5030_v9 }
 0xcc3   :  { %8336 = vrcp.f32 %v5027_v29 }
 0xcc5   :  { %v5350_v39 = vpop.permute.xlu0 %5349 }
 0xcc6   :  { %v5042_v31 = vpop.permute.xlu1 %5041 }
 0xcc7   :  { %8146 = vmatpush3.msk.msra.mxu1 %vm1141_vm6, %v5042_v31 }
 0xcc8   :  { %8148 = vmatmul.mubr.msk.f32.vlgmr.msra.gmra.mxu1 %vm1137_vm7, %v5036_v34  ;;  %8155 = vmatprep.subr.mxu1 %v8355_v28 }
 0xcc9   :  { %8157 = vmatprep.mubr.msk.f32.mxu1 %vm8357_vm3, %v8355_v28 }
 0xcca   :  { %v5196_v32 = vpop.permute.xlu1 %5195 }
 0xccb   :  { %v8333_v37 = vpop.eup %8332  ;;  %8156 = vmatpush3.msk.msra.mxu1 %vm1141_vm6, %v5196_v32 }
 0xccc   :  { %8165 = vmatprep.subr.mxu1 %v8355_v28  ;;  %v5038_v2 = vmul.f32 %v8333_v37, %v8323_v50 }
 0xcce   :  { %v5273_v10 = vpop.permute.xlu1 %5272  ;;  %8158 = vmatmul.mubr.msk.f32.vlgmr.msra.gmra.mxu1 %vm1137_vm7, %v5038_v2 }
 0xccf   :  { %v8335_v40 = vpop.eup %8334  ;;  %8161 = vmatpush3.msk.msra.mxu0 %vm1141_vm6, %v5273_v10  ;;  %8166 = vmatpush3.msk.msra.mxu1 %vm1141_vm6, %v5350_v39 }
 0xcd0   :  { %v8337_v44 = vpop.eup %8336  ;;  %8167 = vmatprep.mubr.msk.f32.mxu1 %vm8357_vm3, %v8355_v28  ;;  %v5040_v14 = vmul.f32 %v8335_v40, %v8325_v18  ;;  %8170 = vmatprep.subr.msk.mxu0 %vm1891_vm8, %v5787_v1 }
 0xcd1   :  { %v5039_v56 = vmul.f32 %v8337_v44, %v8327_v19 }
 0xcd2   :  { %8168 = vmatmul.mubr.msk.f32.vlgmr.msra.gmra.mxu1 %vm1137_vm7, %v5040_v14 }
 0xcd3   :  { %8163 = vmatmul.mubr.msk.f32.vlgmr.msra.gmra.mxu0 %vm1137_vm7, %v5039_v56  ;;  %6059 = vmatprep.mubr.f32.mxu1 %v8355_v28 }
 0xcd4   :  { %8171 = vmatpush3.msk.msra.mxu0 %vm1891_vm8, %v5787_v1 }
 0xcfb   :  { %v5191_v48 = vpop.f32.mrf.mxu0 }
 0xcfc   :  { %v5477_v57 = vrot.slane %v5191_v48, %v8602_v35  ;;  %v5470_v52 = vcombine.high %v5191_v48, %v5191_v48 }
 0xcfd   :  { %v8154_v49 = vpop.f32.mrf.mxu0 }
 0xcfe   :  { %v5485_v51 = vcombine.high %v5477_v57, %v5477_v57  ;;  %v5492_v41 = vrot.slane %v5477_v57, %v8602_v35  ;;  %v5484_v6 = vrot.slane %v5470_v52, %v8602_v35 }
 0xd00   :  { %v5506_v53 = vrot.slane %v5485_v51, %v8602_v35  ;;  %v5507_v42 = vcombine.high %v5492_v41, %v5492_v41  ;;  %v5499_v5 = vrot.slane %v5484_v6, %v8602_v35 }
 0xd02   :  { %v5508_v3 = vcombine.high %v5506_v53, %v5506_v53  ;;  %v5629_v8 = vcombine.low %v5506_v53, %v5507_v42 }
 0xd04   :  { %v5675_v62 = vcombine.low %v5508_v3, %v5499_v5  ;;  %v5657_v21 = vrot.slane %v5629_v8, %v8602_v35 }
 0xd06   :  { %v5685_v2 = vrot.slane %v5675_v62, %v8602_v35 }
 0xd88   :  { %v5114_v63 = vpop.f32.mrf.mxu1 }
 0xd89   :  { %v5431_v54 = vcombine.high %v5114_v63, %v5114_v63  ;;  %v5438_v55 = vrot.slane %v5114_v63, %v8602_v35 }
 0xd8a   :  { %v8149_v7 = vpop.f32.mrf.mxu1 }
 0xd8b   :  { %v5445_v59 = vrot.slane %v5431_v54, %v8602_v35  ;;  %v5446_v0 = vcombine.high %v5438_v55, %v5438_v55  ;;  %v5453_v4 = vrot.slane %v5438_v55, %v8602_v35 }
 0xd8d   :  { %v5460_v60 = vrot.slane %v5445_v59, %v8602_v35  ;;  %v5467_v36 = vrot.slane %v5446_v0, %v8602_v35 }
 0xd8e   :  { %v5268_v45 = vpop.f32.mrf.mxu1 }
 0xd8f   :  { %v5626_v11 = vcombine.low %v5453_v4, %v5467_v36  ;;  %v7646_v61 = vcombine.high %v5453_v4, %v5467_v36  ;;  %v5628_v12 = vcombine.low %v5460_v60, %v5492_v41  ;;  %v5509_v13 = vcombine.high %v5268_v45, %v5268_v45 }
 0xd90   :  { %v5516_v15 = vrot.slane %v5268_v45, %v8602_v35  ;;  %v8159_v16 = vpop.f32.mrf.mxu1 }
 0xd91   :  { %v5636_v50 = vrot.slane %v5626_v11, %v8602_v35  ;;  %v5643_v17 = vrot.slane %v7646_v61, %v8602_v35  ;;  %v5650_v18 = vrot.slane %v5628_v12, %v8602_v35  ;;  %v5523_v19 = vrot.slane %v5509_v13, %v8602_v35 }
 0xd92   :  { %v5524_v23 = vcombine.high %v5516_v15, %v5516_v15  ;;  %v5422_v24 = vpop.f32.mrf.mxu1  ;;  %v5531_v26 = vrot.slane %v5516_v15, %v8602_v35 }
 0xd93   :  { %v5658_v58 = vcombine.low %v5636_v50, %v5643_v17  ;;  %v5345_v9 = vpop.f32.mrf.mxu0  ;;  %v5587_v29 = vcombine.high %v5422_v24, %v5422_v24  ;;  %v5594_v30 = vrot.slane %v5422_v24, %v8602_v35  ;;  %v5659_v1 = vcombine.low %v5650_v18, %v5657_v21 }
 0xd94   :  { %v5545_v31 = vrot.slane %v5524_v23, %v8602_v35  ;;  %v5548_v34 = vcombine.high %v5345_v9, %v5345_v9  ;;  %v5555_v32 = vrot.slane %v5345_v9, %v8602_v35  ;;  %v8169_v37 = vpop.f32.mrf.mxu1  ;;  %v5538_v39 = vrot.slane %v5523_v19, %v8602_v35 }
 0xd95   :  { %v5602_v10 = vcombine.high %v5594_v30, %v5594_v30  ;;  %v8164_v40 = vpop.f32.mrf.mxu0  ;;  %v5666_v44 = vrot.slane %v5658_v58, %v8602_v35  ;;  %v5609_v51 = vrot.slane %v5594_v30, %v8602_v35  ;;  %v5673_v41 = vrot.slane %v5659_v1, %v8602_v35 }
 0xd96   :  { %v5676_v14 = vcombine.low %v5531_v26, %v5545_v31  ;;  %v7647_v56 = vcombine.high %v5531_v26, %v5545_v31  ;;  %v5562_v48 = vrot.slane %v5548_v34, %v8602_v35  ;;  %v5563_v49 = vcombine.high %v5555_v32, %v5555_v32 }
 0xd97   :  { %v5570_v57 = vrot.slane %v5555_v32, %v8602_v35  ;;  %v5623_v52 = vrot.slane %v5602_v10, %v8602_v35  ;;  %v5601_v55 = vrot.slane %v5587_v29, %v8602_v35  ;;  %v5674_v60 = vcombine.low %v5666_v44, %v5673_v41 }
 0xd98   :  { %v5692_v53 = vrot.slane %v5676_v14, %v8602_v35  ;;  %v5699_v63 = vrot.slane %v7647_v56, %v8602_v35  ;;  %v5584_v54 = vrot.slane %v5563_v49, %v8602_v35  ;;  %v5577_v3 = vrot.slane %v5562_v48, %v8602_v35 }
 0xd99   :  { %v5585_v6 = vcombine.high %v5570_v57, %v5570_v57  ;;  %v5678_v42 = vcombine.low %v5538_v39, %v5570_v57  ;;  %v5726_v7 = vcombine.low %v5609_v51, %v5623_v52  ;;  %v7648_v59 = vcombine.high %v5609_v51, %v5623_v52  ;;  %8172 = vmatprep.mubr.msk.f32.mxu0 %vm534_vm4, %v5674_v60  ;;  %v6107_v60 = vld [vmem:[%s9939_s3 + $0x78] sm:$0xff] }
 0xd9a   :  { %v5707_v0 = vcombine.low %v5685_v2, %v5692_v53  ;;  %v5586_v4 = vcombine.high %v5584_v54, %v5584_v54  ;;  %v5616_v12 = vrot.slane %v5601_v55, %v8602_v35 }
 0xd9b   :  { %v5706_v36 = vrot.slane %v5678_v42, %v8602_v35  ;;  %v5724_v5 = vcombine.low %v5584_v54, %v5585_v6  ;;  %v5748_v8 = vrot.slane %v5726_v7, %v8602_v35  ;;  %v5755_v45 = vrot.slane %v7648_v59, %v8602_v35  ;;  %v5970_v7 = vld [vmem:[%s9938_s10 + $0x18] sm:$0xff]  ;;  %v5969_v59 = vld [vmem:[%s9938_s10 + $0x10] sm:$0xff] }
 0xd9c   :  { %v5725_v11 = vcombine.low %v5586_v4, %v5577_v3  ;;  %v5715_v16 = vrot.slane %v5707_v0, %v8602_v35  ;;  %v5779_v18 = vrot.slane %v5616_v12, %v8602_v35  ;;  %v5968_v0 = vld [vmem:[%s9938_s10 + $0x8] sm:$0xff]  ;;  %6023 = vmatprep.subr.mxu1 %v5970_v7  ;;  %v5967_v3 = vld [vmem:[%s9938_s10] sm:$0xff]  ;;  %v6123_v4 = vld [vmem:[%s9939_s3 + $0xf8] sm:$0xff]  ;;  %s9940_s10 = sld [smem:[#allocation13_spill]] }
 0xd9d   :  { %v5708_v61 = vcombine.low %v5699_v63, %v5706_v36  ;;  %v5734_v13 = vrot.slane %v5724_v5, %v8602_v35  ;;  %v5757_v15 = vcombine.low %v5748_v8, %v5755_v45  ;;  %6024 = vmatpush1.msra.mxu1 %v5969_v59  ;;  %v6122_v36 = vld [vmem:[%s9939_s3 + $0xf0] sm:$0xff]  ;;  %7800 = vmatprep.subr.mxu0 %v6123_v4  ;;  %v6121_v8 = vld [vmem:[%s9939_s3 + $0xe8] sm:$0xff]  ;;  %v6119_v12 = vld [vmem:[%s9939_s3 + $0xd8] sm:$0xff] }
 0xd9e   :  { %v5741_v62 = vrot.slane %v5725_v11, %v8602_v35  ;;  %v5786_v58 = vrot.slane %v5779_v18, %v8602_v35  ;;  %6025 = vmatprep.subr.mxu1 %v5968_v0  ;;  %v6106_v5 = vld [vmem:[%s9939_s3 + $0x70] sm:$0xff]  ;;  %v6105_v45 = vld [vmem:[%s9939_s3 + $0x68] sm:$0xff]  ;;  %v6120_v11 = vld [vmem:[%s9939_s3 + $0xe0] sm:$0xff] }
 0xd9f   :  { %v5722_v50 = vrot.slane %v5708_v61, %v8602_v35  ;;  %v5771_v23 = vrot.slane %v5757_v15, %v8602_v35  ;;  %6026 = vmatpush1.msra.mxu1 %v5967_v3  ;;  %v6104_v61 = vld [vmem:[%s9939_s3 + $0x60] sm:$0xff]  ;;  %v6102_v15 = vld [vmem:[%s9939_s3 + $0x50] sm:$0xff]  ;;  %v6109_v59 = vld [vmem:[%s9939_s3 + $0x88] sm:$0xff] }
 0xda0   :  { %v5756_v17 = vcombine.low %v5734_v13, %v5741_v62  ;;  %v6103_v13 = vld [vmem:[%s9939_s3 + $0x58] sm:$0xff]  ;;  %v6118_v62 = vld [vmem:[%s9939_s3 + $0xd0] sm:$0xff]  ;;  %v6100_v18 = vld [vmem:[%s9939_s3 + $0x40] sm:$0xff] }
 0xda1   :  { %v5723_v19 = vcombine.low %v5715_v16, %v5722_v50  ;;  %v6117_v16 = vld [vmem:[%s9939_s3 + $0xc8] sm:$0xff]  ;;  %v6094_v7 = vld [vmem:[%s9939_s3 + $0x10] sm:$0xff]  ;;  %v6108_v3 = vld [vmem:[%s9939_s3 + $0x80] sm:$0xff] }
 0xda2   :  { %v5764_v21 = vrot.slane %v5756_v17, %v8602_v35  ;;  %v6101_v50 = vld [vmem:[%s9939_s3 + $0x48] sm:$0xff]  ;;  %v6116_v17 = vld [vmem:[%s9939_s3 + $0xc0] sm:$0xff] }
 0xda3   :  { %8173 = vmatmul.mubr.msk.f32.vlgmr.msra.gmra.mxu0 %vm534_vm4, %v5723_v19  ;;  %v6115_v19 = vld [vmem:[%s9939_s3 + $0xb8] sm:$0xff]  ;;  %v6093_v0 = vld [vmem:[%s9939_s3 + $0x8] sm:$0xff]  ;;  %v6092_v4 = vld [vmem:[%s9939_s3] sm:$0xff] }
 0xda4   :  { %v5772_v24 = vcombine.low %v5764_v21, %v5771_v23  ;;  %7801 = vmatpush3.msra.mxu0 %v6107_v60  ;;  %v6099_v21 = vld [vmem:[%s9939_s3 + $0x38] sm:$0xff]  ;;  %v6114_v23 = vld [vmem:[%s9939_s3 + $0xb0] sm:$0xff]  ;;  %v5975_v60 = vsub.s32 0, %v8596_v33 }
 0xda5   :  { %7802 = vmatprep.subr.mxu0 %v6122_v36  ;;  %v5971_v36 = vld [vmem:[%s9942_s29] sm:$0x3] }
 0xda6   :  { %8175 = vmatprep.mubr.msk.f32.mxu0 %vm534_vm4, %v5772_v24  ;;  %7803 = vmatpush3.msra.mxu0 %v6106_v5  ;;  %v6098_v24 = vld [vmem:[%s9939_s3 + $0x30] sm:$0xff]  ;;  %v5979_v5 = vsub.s32 1, %v8596_v33  ;;  %v7174_v33 = vld [vmem:[%s9898_s20 + $0x18] sm:$0xff] }
 0xda7   :  { %8176 = vmatmul.mubr.msk.f32.gmra.mxu0 %vm534_vm4, %v5786_v58  ;;  %7804 = vmatprep.subr.mxu0 %v6121_v8  ;;  %v6113_v58 = vld [vmem:[%s9939_s3 + $0xa8] sm:$0xff]  ;;  %v5976_v8 = vrot.slane %v5971_v36, %v5975_v60 }
 0xda8   :  { %7805 = vmatpush3.msra.mxu0 %v6105_v45  ;;  %v5980_v45 = vrot.slane %v5971_v36, %v5979_v5 }
 0xda9   :  { %7806 = vmatprep.subr.mxu0 %v6120_v11 }
 0xdaa   :  { %7807 = vmatpush3.msra.mxu0 %v6104_v61 }
 0xdab   :  { %7808 = vmatprep.subr.mxu0 %v6119_v12 }
 0xdac   :  { %7809 = vmatpush3.msra.mxu0 %v6103_v13 }
 0xdad   :  { %7810 = vmatprep.subr.mxu0 %v6118_v62 }
 0xdae   :  { %7811 = vmatpush3.msra.mxu0 %v6102_v15 }
 0xdaf   :  { %7812 = vmatprep.subr.mxu0 %v6117_v16 }
 0xdb0   :  { %7813 = vmatpush3.msra.mxu0 %v6101_v50 }
 0xdb1   :  { %7814 = vmatprep.subr.mxu0 %v6116_v17 }
 0xdb2   :  { %7815 = vmatpush3.msra.mxu0 %v6100_v18 }
 0xdb3   :  { %7816 = vmatprep.subr.mxu0 %v6115_v19 }
 0xdb4   :  { %7817 = vmatpush3.msra.mxu0 %v6099_v21 }
 0xdb5   :  { %7818 = vmatprep.subr.mxu0 %v6114_v23 }
 0xdb6   :  { %7819 = vmatpush3.msra.mxu0 %v6098_v24 }
 0xdb7   :  { %7820 = vmatprep.subr.mxu0 %v6113_v58 }
 0xe63   :  { %v8174_v26 = vpop.f32.mrf.mxu0 }
 0xe64   :  { %v5884_v9 = vadd.f32 %v8174_v26, %v9192_v38  ;;  %v6097_v26 = vld [vmem:[%s9939_s3 + $0x28] sm:$0xff] }
 0xe65   :  { %v5864_v29 = vpop.f32.mrf.mxu0  ;;  %7821 = vmatpush3.msra.mxu0 %v6097_v26 }
 0xe66   :  { %v5883_v30 = vadd.f32 %v5864_v29, %v9195_v43  ;;  %v5888_v31 = vadd.f32 %v5884_v9, %v8577_v22  ;;  %v6112_v9 = vld [vmem:[%s9939_s3 + $0xa0] sm:$0xff] }
 0xe67   :  { %v8177_v34 = vpop.f32.mrf.mxu0  ;;  %v6096_v29 = vld [vmem:[%s9939_s3 + $0x20] sm:$0xff]  ;;  %7822 = vmatprep.subr.mxu0 %v6112_v9 }
 0xe68   :  { %v5886_v32 = vadd.f32 %v8177_v34, %v9198_v46  ;;  %v5896_v37 = vsel %vm220_vm2, %v5888_v31, 0.0  ;;  %v5887_v1 = vadd.f32 %v5883_v30, %v8572_v20  ;;  %7823 = vmatpush3.msra.mxu0 %v6096_v29 }
 0xe69   :  { %5897 = vadd.xlane.f32.xlu0 %v5896_v37  ;;  %v5874_v2 = vpop.f32.mrf.mxu0 }
 0xe6a   :  { %v5885_v39 = vadd.f32 %v5874_v2, %v9201_v47  ;;  %v5893_v10 = vsel %vm220_vm2, %v5887_v1, 0.0  ;;  %v5890_v38 = vadd.f32 %v5886_v32, %v8584_v25 }
 0xe6b   :  { %5894 = vadd.xlane.f32.xlu1 %v5893_v10 }
 0xe6c   :  { %v5889_v43 = vadd.f32 %v5885_v39, %v8588_v27  ;;  %v5903_v22 = vsel %vm5902_vm9, %v5890_v38, 0.0 }
 0xe6e   :  { %v5899_v46 = vsel %vm220_vm2, %v5889_v43, 0.0 }
 0xe6f   :  { %5904 = vadd.xlane.f32.xlu1 %v5903_v22  ;;  %5900 = vadd.xlane.f32.xlu0 %v5899_v46 }
 0xef2   :  { %v5898_v40 = vpop.xlane.xlu0 %5897 }
 0xef3   :  { %v5908_v20 = vmul.f32 0.0625, %v5898_v40 }
 0xef4   :  { %v5895_v44 = vpop.xlane.xlu1 %5894 }
 0xef5   :  { %v9308_v14 = vsub.f32 %v5888_v31, %v5908_v20  ;;  %v5907_v56 = vmul.f32 0.0625, %v5895_v44 }
 0xef7   :  { %v9310_v47 = vsub.f32 %v5887_v1, %v5907_v56  ;;  %v5916_v25 = vmul.f32 %v9308_v14, %v9308_v14  ;;  %v7654_v56 = vld [vmem:[%s9940_s10] ss:$0 sm:$0xff] }
 0xef8   :  { %v5905_v48 = vpop.xlane.xlu1 %5904  ;;  %v5901_v49 = vpop.xlane.xlu0 %5900 }
 0xef9   :  { %v5910_v27 = vmul.f32 0.0625, %v5905_v48  ;;  %v5909_v57 = vmul.f32 0.0625, %v5901_v49  ;;  %v5922_v51 = vsel %vm220_vm2, %v5916_v25, 0.0  ;;  %v5915_v52 = vmul.f32 %v9310_v47, %v9310_v47  ;;  %v7655_v48 = vld [vmem:[%s9941_s2] ss:$0 sm:$0xff] }
 0xefa   :  { %5923 = vadd.xlane.f32.xlu1 %v5922_v51 }
 0xefb   :  { %v9317_v41 = vsub.f32 %v5890_v38, %v5910_v27  ;;  %v9319_v53 = vsub.f32 %v5889_v43, %v5909_v57  ;;  %v5919_v63 = vsel %vm220_vm2, %v5915_v52, 0.0 }
 0xefc   :  { %5920 = vadd.xlane.f32.xlu0 %v5919_v63 }
 0xefd   :  { %v5918_v54 = vmul.f32 %v9317_v41, %v9317_v41  ;;  %v5917_v55 = vmul.f32 %v9319_v53, %v9319_v53 }
 0xeff   :  { %v5928_v6 = vsel %vm5902_vm9, %v5918_v54, 0.0  ;;  %v5925_v42 = vsel %vm220_vm2, %v5917_v55, 0.0 }
 0xf00   :  { %5929 = vadd.xlane.f32.xlu1 %v5928_v6  ;;  %5926 = vadd.xlane.f32.xlu0 %v5925_v42  ;;  %v6095_v6 = vld [vmem:[%s9939_s3 + $0x18] sm:$0xff]  ;;  %v6110_v42 = vld [vmem:[%s9939_s3 + $0x90] sm:$0xff] }
 0xf83   :  { %v5924_v30 = vpop.xlane.xlu1 %5923 }
 0xf84   :  { %v5932_v31 = vmul.f32 0.0625, %v5924_v30 }
 0xf85   :  { %v5921_v34 = vpop.xlane.xlu0 %5920 }
 0xf86   :  { %v5936_v32 = vadd.f32 1e-05, %v5932_v31  ;;  %v5931_v37 = vmul.f32 0.0625, %v5921_v34 }
 0xf88   :  { %8338 = vrsqrt.f32 %v5936_v32  ;;  %v5935_v1 = vadd.f32 1e-05, %v5931_v37 }
 0xf89   :  { %v5930_v2 = vpop.xlane.xlu1 %5929  ;;  %v5927_v39 = vpop.xlane.xlu0 %5926 }
 0xf8a   :  { %8340 = vrsqrt.f32 %v5935_v1  ;;  %v5934_v10 = vmul.f32 0.0625, %v5930_v2  ;;  %v5933_v38 = vmul.f32 0.0625, %v5927_v39  ;;  %v7660_v39 = vld [vmem:[%s9893_s13] ss:$0 sm:$0xff] }
 0xf8c   :  { %v5938_v43 = vadd.f32 1e-05, %v5934_v10  ;;  %v5937_v22 = vadd.f32 1e-05, %v5933_v38 }
 0xf8e   :  { %8342 = vrsqrt.f32 %v5937_v22 }
 0xf8f   :  { %8344 = vrsqrt.f32 %v5938_v43 }
 0xf95   :  { %v8339_v46 = vpop.eup %8338 }
 0xf96   :  { %v5944_v44 = vmul.f32 %v8339_v46, %v9308_v14 }
 0xf97   :  { %v8341_v40 = vpop.eup %8340 }
 0xf98   :  { %v5943_v20 = vmul.f32 %v8341_v40, %v9310_v47  ;;  %v5954_v57 = vmul.f32 %v7654_v56, %v5944_v44 }
 0xf9a   :  { %v5953_v25 = vmul.f32 %v7654_v56, %v5943_v20  ;;  %v9426_v14 = vadd.f32 %v7655_v48, %v5954_v57 }
 0xf9b   :  { %v8343_v49 = vpop.eup %8342 }
 0xf9c   :  { %v9420_v27 = vadd.f32 %v7655_v48, %v5953_v25  ;;  %v8345_v51 = vpop.eup %8344  ;;  %v5945_v52 = vmul.f32 %v8343_v49, %v9319_v53 }
 0xf9d   :  { %v5946_v63 = vmul.f32 %v8345_v51, %v9317_v41  ;;  %v6111_v41 = vld [vmem:[%s9939_s3 + $0x98] sm:$0xff] }
 0xf9e   :  { %7656 = vmatmul.mubr.msk.f32.vlgmr.msra.gmra.mxu1 %vm220_vm2, %v9420_v27  ;;  %v5955_v47 = vmul.f32 %v7654_v56, %v5945_v52  ;;  %7824 = vmatprep.subr.mxu0 %v6111_v41 }
 0xf9f   :  { %6065 = vmatprep.mubr.f32.mxu1 %v8355_v28  ;;  %v5956_v55 = vmul.f32 %v7654_v56, %v5946_v63  ;;  %7825 = vmatpush3.msra.mxu0 %v6095_v6 }
 0xfa0   :  { %v9432_v54 = vadd.f32 %v7655_v48, %v5955_v47  ;;  %7826 = vmatprep.subr.mxu0 %v6110_v42 }
 0xfa1   :  { %v9437_v53 = vadd.f32 %v7655_v48, %v5956_v55  ;;  %7827 = vmatpush3.msra.mxu0 %v6094_v7 }
 0xfa2   :  { %7657 = vmatmul.mubr.msk.f32.gmra.mxu1 %vm220_vm2, %v9426_v14  ;;  %7828 = vmatprep.subr.mxu0 %v6109_v59 }
 0xfa3   :  { %6071 = vmatprep.mubr.f32.mxu1 %v8355_v28  ;;  %7829 = vmatpush3.msra.mxu0 %v6093_v0 }
 0xfa4   :  { %7830 = vmatprep.subr.mxu0 %v6108_v3 }
 0xfa5   :  { %7831 = vmatpush3.msra.mxu0 %v6092_v4 }
 0xfa6   :  { %7658 = vmatmul.mubr.msk.f32.gmra.mxu1 %vm220_vm2, %v9432_v54 }
 0xfa7   :  { %6077 = vmatprep.mubr.f32.mxu1 %v8355_v28 }
 0xfaa   :  { %7659 = vmatmul.mubr.msk.f32.gmra.mxu1 %vm220_vm2, %v9437_v53 }
 0xfab   :  { %6584 = vmatprep.mubr.f32.mxu1 %v8355_v28 }
0x105e   :  { %v6061_v11 = vpop.f32.mrf.mxu1 }
0x105f   :  { %v6062_v61 = vadd.f32 %v6061_v11, %v5976_v8 }
0x1060   :  { %v6063_v12 = vpop.f32.mrf.mxu1 }
0x1061   :  { %v6064_v13 = vadd.f32 %v6063_v12, %v5980_v45  ;;  %v6084_v16 = vmax.f32 %v6062_v61, 0.0 }
0x1062   :  { %v6067_v62 = vpop.f32.mrf.mxu1 }
0x1063   :  { %v6085_v15 = vmax.f32 %v6064_v13, 0.0  ;;  %v6068_v50 = vadd.f32 %v6067_v62, %v5976_v8 }
0x1064   :  { %v6069_v17 = vpop.f32.mrf.mxu1 }
0x1065   :  { %v6070_v18 = vadd.f32 %v6069_v17, %v5980_v45  ;;  %6195 = vmatprep.mubr.f32.mxu0 %v6085_v15  ;;  %v6086_v23 = vmax.f32 %v6068_v50, 0.0 }
0x1066   :  { %v6073_v19 = vpop.f32.mrf.mxu1  ;;  %6196 = vmatmul.mubr.f32.vlgmr.msra.gmra.mxu0 %v6084_v16 }
0x1067   :  { %v6087_v21 = vmax.f32 %v6070_v18, 0.0  ;;  %v6074_v24 = vadd.f32 %v6073_v19, %v5976_v8  ;;  %v6466_v19 = vld [vmem:[%s9894_s16 + $0x38] sm:$0xff] }
0x1068   :  { %v6075_v58 = vpop.f32.mrf.mxu1  ;;  %6548 = vmatprep.subr.mxu1 %v6466_v19 }
0x1069   :  { %v6076_v26 = vadd.f32 %v6075_v58, %v5980_v45  ;;  %6200 = vmatprep.mubr.f32.mxu0 %v6087_v21  ;;  %v6088_v30 = vmax.f32 %v6074_v24, 0.0  ;;  %v6465_v21 = vld [vmem:[%s9894_s16 + $0x30] sm:$0xff]  ;;  %v6463_v24 = vld [vmem:[%s9894_s16 + $0x20] sm:$0xff]  ;;  %v6462_v58 = vld [vmem:[%s9894_s16 + $0x18] sm:$0xff] }
0x106a   :  { %v6079_v9 = vpop.f32.mrf.mxu1  ;;  %6201 = vmatmul.mubr.f32.gmra.mxu0 %v6086_v23  ;;  %v6464_v23 = vld [vmem:[%s9894_s16 + $0x28] sm:$0xff]  ;;  %6549 = vmatpush1.msra.mxu1 %v6465_v21 }
0x106b   :  { %v6089_v29 = vmax.f32 %v6076_v26, 0.0  ;;  %v6080_v31 = vadd.f32 %v6079_v9, %v5976_v8  ;;  %6550 = vmatprep.subr.mxu1 %v6464_v23  ;;  %v7092_v26 = vld [vmem:[%s9895_s18 + $0xf8] sm:$0xff] }
0x106c   :  { %v6081_v34 = vpop.f32.mrf.mxu1  ;;  %6551 = vmatpush1.msra.mxu1 %v6463_v24  ;;  %v7076_v9 = vld [vmem:[%s9895_s18 + $0x78] sm:$0xff]  ;;  %7844 = vmatprep.subr.mxu0 %v7092_v26 }
0x106d   :  { %v6082_v32 = vadd.f32 %v6081_v34, %v5980_v45  ;;  %6205 = vmatprep.mubr.f32.mxu0 %v6089_v29  ;;  %v6090_v1 = vmax.f32 %v6080_v31, 0.0  ;;  %6660 = vmatprep.subr.mxu1 %v6462_v58  ;;  %v7091_v29 = vld [vmem:[%s9895_s18 + $0xf0] sm:$0xff]  ;;  %v7090_v31 = vld [vmem:[%s9895_s18 + $0xe8] sm:$0xff] }
0x106e   :  { %6206 = vmatmul.mubr.f32.gmra.mxu0 %v6088_v30  ;;  %v7075_v30 = vld [vmem:[%s9895_s18 + $0x70] sm:$0xff]  ;;  %v7074_v34 = vld [vmem:[%s9895_s18 + $0x68] sm:$0xff] }
0x106f   :  { %v6091_v37 = vmax.f32 %v6082_v32, 0.0  ;;  %7845 = vmatpush3.msra.mxu0 %v7076_v9 }
0x1070   :  { %7846 = vmatprep.subr.mxu0 %v7091_v29 }
0x1071   :  { %6210 = vmatprep.mubr.f32.mxu0 %v6091_v37  ;;  %7847 = vmatpush3.msra.mxu0 %v7075_v30 }
0x1072   :  { %6211 = vmatmul.mubr.f32.gmra.mxu0 %v6090_v1  ;;  %7848 = vmatprep.subr.mxu0 %v7090_v31 }
0x1073   :  { %7849 = vmatpush3.msra.mxu0 %v7074_v34 }
0x1126   :  { %v7832_v2 = vpop.f32.mrf.mxu0 }
0x1128   :  { %v7833_v10 = vpop.f32.mrf.mxu0 }
0x1129   :  { %v7834_v38 = vadd.f32 %v7833_v10, %v7832_v2 }
0x112a   :  { %v7835_v43 = vpop.f32.mrf.mxu0 }
0x112b   :  { %v6198_v22 = vadd.f32 %v7834_v38, %v7660_v39 }
0x112c   :  { %v7836_v46 = vpop.f32.mrf.mxu0 }
0x112d   :  { %v7837_v40 = vadd.f32 %v7836_v46, %v7835_v43  ;;  %v6216_v20 = vadd.f32 %v6198_v22, %v9420_v27 }
0x112e   :  { %v7838_v44 = vpop.f32.mrf.mxu0 }
0x112f   :  { %v6203_v56 = vadd.f32 %v7837_v40, %v7660_v39  ;;  %v6222_v25 = vsel %vm220_vm2, %v6216_v20, 0.0 }
0x1130   :  { %6223 = vadd.xlane.f32.xlu0 %v6222_v25  ;;  %v7839_v48 = vpop.f32.mrf.mxu0 }
0x1131   :  { %v7840_v49 = vadd.f32 %v7839_v48, %v7838_v44  ;;  %v6217_v57 = vadd.f32 %v6203_v56, %v9426_v14  ;;  %v7661_v56 = vld [vmem:[%s9896_s14] ss:$0 sm:$0xff] }
0x1132   :  { %v7841_v51 = vpop.f32.mrf.mxu0  ;;  %v7662_v48 = vld [vmem:[%s9897_s15] ss:$0 sm:$0xff] }
0x1133   :  { %v6208_v52 = vadd.f32 %v7840_v49, %v7660_v39  ;;  %v6225_v47 = vsel %vm220_vm2, %v6217_v57, 0.0 }
0x1134   :  { %6226 = vadd.xlane.f32.xlu1 %v6225_v47  ;;  %v7842_v63 = vpop.f32.mrf.mxu0 }
0x1135   :  { %v7843_v55 = vadd.f32 %v7842_v63, %v7841_v51  ;;  %v6218_v41 = vadd.f32 %v6208_v52, %v9432_v54 }
0x1137   :  { %v6213_v6 = vadd.f32 %v7843_v55, %v7660_v39  ;;  %v6228_v27 = vsel %vm220_vm2, %v6218_v41, 0.0 }
0x1138   :  { %6229 = vadd.xlane.f32.xlu0 %v6228_v27 }
0x1139   :  { %v6219_v42 = vadd.f32 %v6213_v6, %v9437_v53 }
0x113b   :  { %v6231_v7 = vsel %vm5902_vm9, %v6219_v42, 0.0 }
0x113c   :  { %6232 = vadd.xlane.f32.xlu1 %v6231_v7 }
0x11b9   :  { %v6224_v59 = vpop.xlane.xlu0 %6223 }
0x11ba   :  { %v6234_v14 = vmul.f32 0.0625, %v6224_v59 }
0x11bc   :  { %v9486_v0 = vsub.f32 %v6216_v20, %v6234_v14 }
0x11bd   :  { %v6227_v3 = vpop.xlane.xlu1 %6226 }
0x11be   :  { %v6235_v4 = vmul.f32 0.0625, %v6227_v3  ;;  %v6242_v36 = vmul.f32 %v9486_v0, %v9486_v0 }
0x11c0   :  { %v9490_v8 = vsub.f32 %v6217_v57, %v6235_v4  ;;  %v6246_v54 = vsel %vm220_vm2, %v6242_v36, 0.0 }
0x11c1   :  { %6247 = vadd.xlane.f32.xlu0 %v6246_v54  ;;  %v6230_v45 = vpop.xlane.xlu0 %6229 }
0x11c2   :  { %v6236_v11 = vmul.f32 0.0625, %v6230_v45  ;;  %v6243_v53 = vmul.f32 %v9490_v8, %v9490_v8 }
0x11c4   :  { %v9495_v61 = vsub.f32 %v6218_v41, %v6236_v11  ;;  %v6249_v12 = vsel %vm220_vm2, %v6243_v53, 0.0 }
0x11c5   :  { %6250 = vadd.xlane.f32.xlu1 %v6249_v12  ;;  %v6233_v13 = vpop.xlane.xlu1 %6232 }
0x11c6   :  { %v6237_v62 = vmul.f32 0.0625, %v6233_v13  ;;  %v6244_v15 = vmul.f32 %v9495_v61, %v9495_v61 }
0x11c8   :  { %v9500_v16 = vsub.f32 %v6219_v42, %v6237_v62  ;;  %v6252_v50 = vsel %vm220_vm2, %v6244_v15, 0.0 }
0x11c9   :  { %6253 = vadd.xlane.f32.xlu0 %v6252_v50 }
0x11ca   :  { %v6245_v17 = vmul.f32 %v9500_v16, %v9500_v16 }
0x11cc   :  { %v6255_v18 = vsel %vm5902_vm9, %v6245_v17, 0.0 }
0x11cd   :  { %6256 = vadd.xlane.f32.xlu1 %v6255_v18 }
0x124a   :  { %v6248_v32 = vpop.xlane.xlu0 %6247 }
0x124b   :  { %v6258_v37 = vmul.f32 0.0625, %v6248_v32 }
0x124d   :  { %v6262_v1 = vadd.f32 1e-05, %v6258_v37 }
0x124e   :  { %v6251_v2 = vpop.xlane.xlu1 %6250 }
0x124f   :  { %8346 = vrsqrt.f32 %v6262_v1  ;;  %v6259_v39 = vmul.f32 0.0625, %v6251_v2 }
0x1251   :  { %v6263_v10 = vadd.f32 1e-05, %v6259_v39 }
0x1252   :  { %v6254_v38 = vpop.xlane.xlu0 %6253 }
0x1253   :  { %8348 = vrsqrt.f32 %v6263_v10  ;;  %v6260_v43 = vmul.f32 0.0625, %v6254_v38 }
0x1255   :  { %v6264_v22 = vadd.f32 1e-05, %v6260_v43 }
0x1256   :  { %v6257_v46 = vpop.xlane.xlu1 %6256 }
0x1257   :  { %8350 = vrsqrt.f32 %v6264_v22  ;;  %v6261_v40 = vmul.f32 0.0625, %v6257_v46 }
0x1259   :  { %v6265_v20 = vadd.f32 1e-05, %v6261_v40 }
0x125b   :  { %8352 = vrsqrt.f32 %v6265_v20 }
0x125c   :  { %v8347_v44 = vpop.eup %8346 }
0x125d   :  { %v6270_v25 = vmul.f32 %v8347_v44, %v9486_v0 }
0x125f   :  { %v6280_v49 = vmul.f32 %v7661_v56, %v6270_v25 }
0x1260   :  { %v8349_v57 = vpop.eup %8348 }
0x1261   :  { %v6290_v51 = vadd.f32 %v7662_v48, %v6280_v49  ;;  %v6271_v52 = vmul.f32 %v8349_v57, %v9490_v8 }
0x1263   :  { %v6298_v47 = vcombine.high %v6290_v51, %v6290_v51  ;;  %v6305_v63 = vrot.slane %v6290_v51, %v8602_v35  ;;  %v6281_v55 = vmul.f32 %v7661_v56, %v6271_v52 }
0x1264   :  { %v8351_v41 = vpop.eup %8350 }
0x1265   :  { %v6312_v6 = vrot.slane %v6298_v47, %v8602_v35  ;;  %v6291_v27 = vadd.f32 %v7662_v48, %v6281_v55  ;;  %v6272_v42 = vmul.f32 %v8351_v41, %v9495_v61  ;;  %v6313_v7 = vcombine.high %v6305_v63, %v6305_v63 }
0x1266   :  { %v6321_v53 = vrot.slane %v6305_v63, %v8602_v35 }
0x1267   :  { %v9551_v59 = vrot.slane %v6312_v6, %v8602_v35  ;;  %v6347_v14 = vcombine.high %v6291_v27, %v6291_v27  ;;  %v6354_v0 = vrot.slane %v6291_v27, %v8602_v35  ;;  %v6282_v4 = vmul.f32 %v7661_v56, %v6272_v42 }
0x1268   :  { %v8353_v3 = vpop.eup %8352  ;;  %v6314_v36 = vcombine.high %v6312_v6, %v6312_v6  ;;  %v6335_v12 = vrot.slane %v6313_v7, %v8602_v35 }
0x1269   :  { %v6361_v8 = vrot.slane %v6347_v14, %v8602_v35  ;;  %v6362_v54 = vcombine.high %v6354_v0, %v6354_v0  ;;  %v6292_v45 = vadd.f32 %v7662_v48, %v6282_v4  ;;  %v6344_v11 = vcombine.high %v9551_v59, %v9551_v59 }
0x126a   :  { %v6342_v61 = vrot.slane %v6314_v36, %v8602_v35  ;;  %v6273_v62 = vmul.f32 %v8353_v3, %v9500_v16  ;;  %v6370_v19 = vrot.slane %v6354_v0, %v8602_v35  ;;  %v6345_v30 = vcombine.high %v6335_v12, %v6335_v12  ;;  %v6460_v3 = vld [vmem:[%s9894_s16 + $0x8] sm:$0xff]  ;;  %v6459_v36 = vld [vmem:[%s9894_s16] sm:$0xff] }
0x126b   :  { %v9561_v13 = vrot.slane %v6362_v54, %v8602_v35  ;;  %v6363_v15 = vcombine.high %v6361_v8, %v6361_v8  ;;  %v6396_v50 = vcombine.high %v6292_v45, %v6292_v45  ;;  %v6403_v17 = vrot.slane %v6292_v45, %v8602_v35 }
0x126c   :  { %v6591_v23 = vcombine.low %v6321_v53, %v6342_v61  ;;  %v6479_v9 = vcombine.low %v6335_v12, %v6344_v11  ;;  %v6283_v29 = vmul.f32 %v7661_v56, %v6273_v62  ;;  %v6377_v32 = vrot.slane %v6361_v8, %v8602_v35  ;;  %v6469_v12 = vld [vmem:[%s9894_s16 + $0x50] sm:$0xff] }
0x126d   :  { %v6394_v18 = vcombine.high %v9561_v13, %v9561_v13  ;;  %v6391_v21 = vrot.slane %v6363_v15, %v8602_v35  ;;  %v6410_v24 = vrot.slane %v6396_v50, %v8602_v35  ;;  %v6411_v58 = vcombine.high %v6403_v17, %v6403_v17 }
0x126e   :  { %v6419_v26 = vrot.slane %v6403_v17, %v8602_v35  ;;  %v6599_v2 = vrot.slane %v6591_v23, %v8602_v35  ;;  %v6487_v43 = vrot.slane %v6479_v9, %v8602_v35  ;;  %v7666_v46 = vcombine.high %v6321_v53, %v6342_v61  ;;  %v6470_v61 = vld [vmem:[%s9894_s16 + $0x58] sm:$0xff]  ;;  %v6467_v17 = vld [vmem:[%s9894_s16 + $0x40] sm:$0xff] }
0x126f   :  { %v7664_v16 = vcombine.high %v6370_v19, %v6391_v21  ;;  %v6412_v31 = vcombine.high %v6410_v24, %v6410_v24  ;;  %v6433_v37 = vrot.slane %v6411_v58, %v8602_v35  ;;  %v6426_v1 = vrot.slane %v6410_v24, %v8602_v35  ;;  %v6474_v23 = vld [vmem:[%s9894_s16 + $0x78] sm:$0xff]  ;;  %v6473_v58 = vld [vmem:[%s9894_s16 + $0x70] sm:$0xff] }
0x1270   :  { %v6480_v34 = vcombine.low %v6394_v18, %v6419_v26  ;;  %v6441_v10 = vcombine.high %v6419_v26, %v6419_v26  ;;  %v6293_v49 = vadd.f32 %v7662_v48, %v6283_v29  ;;  %v6817_v52 = vcombine.low %v6345_v30, %v6370_v19  ;;  %v6461_v48 = vld [vmem:[%s9894_s16 + $0x10] sm:$0xff]  ;;  %v6471_v30 = vld [vmem:[%s9894_s16 + $0x60] sm:$0xff] }
0x1271   :  { %v6606_v39 = vrot.slane %v7664_v16, %v8602_v35  ;;  %v6440_v38 = vrot.slane %v6412_v31, %v8602_v35  ;;  %v6704_v20 = vcombine.low %v6377_v32, %v6433_v37  ;;  %v6613_v57 = vrot.slane %v6426_v1, %v8602_v35  ;;  %v6472_v16 = vld [vmem:[%s9894_s16 + $0x68] sm:$0xff] }
0x1272   :  { %v6494_v22 = vrot.slane %v6480_v34, %v8602_v35  ;;  %v6818_v25 = vcombine.low %v6391_v21, %v6441_v10  ;;  %v6442_v55 = vcombine.high %v6426_v1, %v6426_v1  ;;  %v6711_v41 = vrot.slane %v7666_v46, %v8602_v35  ;;  %v6478_v34 = vld [vmem:[%s9894_s16 + $0x98] sm:$0xff] }
0x1273   :  { %v6614_v40 = vcombine.low %v6599_v2, %v6606_v39  ;;  %v6501_v44 = vrot.slane %v6440_v38, %v8602_v35  ;;  %v6718_v51 = vrot.slane %v6704_v20, %v8602_v35  ;;  %v6444_v27 = vcombine.high %v6440_v38, %v6440_v38  ;;  %v6476_v2 = vld [vmem:[%s9894_s16 + $0x88] sm:$0xff]  ;;  %v6475_v39 = vld [vmem:[%s9894_s16 + $0x80] sm:$0xff]  ;;  %v7072_v46 = vld [vmem:[%s9895_s18 + $0x58] sm:$0xff] }
0x1274   :  { %v6502_v56 = vcombine.low %v6487_v43, %v6494_v22  ;;  %v6832_v14 = vrot.slane %v6818_v25, %v8602_v35  ;;  %v7669_v0 = vcombine.high %v6377_v32, %v6433_v37  ;;  %v6628_v4 = vrot.slane %v6613_v57, %v8602_v35  ;;  %v6477_v37 = vld [vmem:[%s9894_s16 + $0x90] sm:$0xff]  ;;  %v7089_v43 = vld [vmem:[%s9895_s18 + $0xe0] sm:$0xff]  ;;  %v7088_v22 = vld [vmem:[%s9895_s18 + $0xd8] sm:$0xff] }
0x1275   :  { %v6516_v63 = vrot.slane %v6501_v44, %v8602_v35  ;;  %v6621_v6 = vrot.slane %v6614_v40, %v8602_v35  ;;  %v6726_v7 = vcombine.low %v6711_v41, %v6718_v51  ;;  %v6725_v8 = vrot.slane %v6442_v55, %v8602_v35  ;;  %7850 = vmatprep.subr.mxu0 %v7089_v43  ;;  %v7087_v40 = vld [vmem:[%s9895_s18 + $0xd0] sm:$0xff]  ;;  %v7086_v44 = vld [vmem:[%s9895_s18 + $0xc8] sm:$0xff]  ;;  %v7085_v25 = vld [vmem:[%s9895_s18 + $0xc0] sm:$0xff] }
0x1276   :  { %v6509_v47 = vrot.slane %v6502_v56, %v8602_v35  ;;  %v6825_v54 = vrot.slane %v6817_v52, %v8602_v35  ;;  %v6451_v45 = vrot.slane %v6293_v49, %v8602_v35  ;;  %v6931_v11 = vcombine.low %v9551_v59, %v9561_v13  ;;  %v6468_v13 = vld [vmem:[%s9894_s16 + $0x48] sm:$0xff]  ;;  %v7071_v20 = vld [vmem:[%s9895_s18 + $0x50] sm:$0xff]  ;;  %v7069_v49 = vld [vmem:[%s9895_s18 + $0x40] sm:$0xff] }
0x1277   :  { %v6629_v53 = vcombine.low %v6621_v6, %v6628_v4  ;;  %v6733_v62 = vrot.slane %v6726_v7, %v8602_v35  ;;  %v6839_v15 = vrot.slane %v6444_v27, %v8602_v35  ;;  %v6946_v59 = vrot.slane %v7669_v0, %v8602_v35  ;;  %v7070_v56 = vld [vmem:[%s9895_s18 + $0x48] sm:$0xff]  ;;  %v7084_v57 = vld [vmem:[%s9895_s18 + $0xb8] sm:$0xff]  ;;  %v7083_v52 = vld [vmem:[%s9895_s18 + $0xb0] sm:$0xff] }
0x1278   :  { %v6517_v42 = vcombine.low %v6509_v47, %v6516_v63  ;;  %v6840_v50 = vcombine.low %v6825_v54, %v6832_v14  ;;  %v6740_v18 = vrot.slane %v6725_v8, %v8602_v35  ;;  %v6458_v19 = vrot.slane %v6451_v45, %v8602_v35  ;;  %v7068_v51 = vld [vmem:[%s9895_s18 + $0x38] sm:$0xff]  ;;  %v7067_v47 = vld [vmem:[%s9895_s18 + $0x30] sm:$0xff]  ;;  %v7082_v63 = vld [vmem:[%s9895_s18 + $0xa8] sm:$0xff] }
0x1279   :  { %v6939_v21 = vrot.slane %v6931_v11, %v8602_v35  ;;  %v6854_v9 = vrot.slane %v6839_v15, %v8602_v35  ;;  %v7066_v55 = vld [vmem:[%s9895_s18 + $0x28] sm:$0xff]  ;;  %v7081_v41 = vld [vmem:[%s9895_s18 + $0xa0] sm:$0xff]  ;;  %v7080_v27 = vld [vmem:[%s9895_s18 + $0x98] sm:$0xff] }
0x127a   :  { %7663 = vmatmul.mubr.msk.f32.vlgmr.msra.gmra.mxu1 %vm220_vm2, %v6517_v42  ;;  %v6741_v24 = vcombine.low %v6733_v62, %v6740_v18  ;;  %v6847_v26 = vrot.slane %v6840_v50, %v8602_v35  ;;  %v6953_v31 = vrot.slane %v6458_v19, %v8602_v35  ;;  %v7065_v6 = vld [vmem:[%s9895_s18 + $0x20] sm:$0xff]  ;;  %v7064_v42 = vld [vmem:[%s9895_s18 + $0x18] sm:$0xff]  ;;  %v7063_v7 = vld [vmem:[%s9895_s18 + $0x10] sm:$0xff] }
0x127b   :  { %6661 = vmatpush1.msra.mxu1 %v6461_v48  ;;  %6696 = vmatprep.mubr.f32.mxu1 %v8355_v28  ;;  %v6954_v29 = vcombine.low %v6939_v21, %v6946_v59  ;;  %v7079_v48 = vld [vmem:[%s9895_s18 + $0x90] sm:$0xff]  ;;  %v7078_v14 = vld [vmem:[%s9895_s18 + $0x88] sm:$0xff]  ;;  %v7186_v4 = vld [vmem:[%s9898_s20 + $0x78] sm:$0xff] }
0x127c   :  { %6662 = vmatprep.subr.mxu1 %v6460_v3  ;;  %v6855_v32 = vcombine.low %v6847_v26, %v6854_v9  ;;  %v6968_v10 = vrot.slane %v6953_v31, %v8602_v35  ;;  %v7062_v0 = vld [vmem:[%s9895_s18 + $0x8] sm:$0xff]  ;;  %v7077_v3 = vld [vmem:[%s9895_s18 + $0x80] sm:$0xff]  ;;  %v7182_v11 = vld [vmem:[%s9898_s20 + $0x58] sm:$0xff] }
0x127d   :  { %6663 = vmatpush1.msra.mxu1 %v6459_v36  ;;  %v6961_v1 = vrot.slane %v6954_v29, %v8602_v35  ;;  %v7073_v35 = vld [vmem:[%s9895_s18 + $0x60] sm:$0xff]  ;;  %v7185_v36 = vld [vmem:[%s9898_s20 + $0x70] sm:$0xff]  ;;  %v7184_v54 = vld [vmem:[%s9898_s20 + $0x68] sm:$0xff] }
0x127e   :  { %7665 = vmatmul.mubr.msk.f32.vlgmr.msra.gmra.mxu1 %vm220_vm2, %v6629_v53  ;;  %6772 = vmatprep.subr.mxu1 %v6470_v61  ;;  %v7061_v8 = vld [vmem:[%s9895_s18] sm:$0xff]  ;;  %v7181_v53 = vld [vmem:[%s9898_s20 + $0x50] sm:$0xff]  ;;  %v7180_v61 = vld [vmem:[%s9898_s20 + $0x48] sm:$0xff] }
0x127f   :  { %6773 = vmatpush1.msra.mxu1 %v6469_v12  ;;  %6808 = vmatprep.mubr.f32.mxu1 %v8355_v28  ;;  %v6969_v38 = vcombine.low %v6961_v1, %v6968_v10  ;;  %v7183_v45 = vld [vmem:[%s9898_s20 + $0x60] sm:$0xff]  ;;  %v7178_v62 = vld [vmem:[%s9898_s20 + $0x38] sm:$0xff]  ;;  %v7177_v15 = vld [vmem:[%s9898_s20 + $0x30] sm:$0xff] }
0x1280   :  { %6774 = vmatprep.subr.mxu1 %v6468_v13  ;;  %7851 = vmatpush3.msra.mxu0 %v7073_v35  ;;  %v7179_v12 = vld [vmem:[%s9898_s20 + $0x40] sm:$0xff]  ;;  %v7176_v50 = vld [vmem:[%s9898_s20 + $0x28] sm:$0xff] }
0x1281   :  { %6775 = vmatpush1.msra.mxu1 %v6467_v17  ;;  %7852 = vmatprep.subr.mxu0 %v7088_v22  ;;  %v7045_v9 = vld [vmem:[%s9899_s17] sm:$0x3]  ;;  %v7172_v22 = vld [vmem:[%s9898_s20 + $0x8] sm:$0xff] }
0x1282   :  { %7667 = vmatmul.mubr.msk.f32.vlgmr.msra.gmra.mxu1 %vm220_vm2, %v6741_v24  ;;  %6886 = vmatprep.subr.mxu1 %v6474_v23  ;;  %v7054_v1 = vrot.slane %v7045_v9, %v5979_v5  ;;  %v7173_v5 = vld [vmem:[%s9898_s20 + $0x10] sm:$0xff] }
0x1283   :  { %6887 = vmatpush1.msra.mxu1 %v6473_v58  ;;  %6922 = vmatprep.mubr.f32.mxu1 %v8355_v28 }
0x1284   :  { %6888 = vmatprep.subr.mxu1 %v6472_v16  ;;  %7853 = vmatpush3.msra.mxu0 %v7072_v46  ;;  %v7272_v46 = vld [vmem:[%s9900_s22 + $0x38] sm:$0xff] }
0x1285   :  { %6889 = vmatpush1.msra.mxu1 %v6471_v30  ;;  %7854 = vmatprep.subr.mxu0 %v7087_v40  ;;  %v7271_v40 = vld [vmem:[%s9900_s22 + $0x30] sm:$0xff] }
0x1286   :  { %7668 = vmatmul.mubr.msk.f32.vlgmr.msra.gmra.mxu1 %vm220_vm2, %v6855_v32  ;;  %7000 = vmatprep.subr.mxu1 %v6478_v34  ;;  %v7050_v34 = vrot.slane %v7045_v9, %v5975_v60  ;;  %v7175_v60 = vld [vmem:[%s9898_s20 + $0x20] sm:$0xff] }
0x1287   :  { %7001 = vmatpush1.msra.mxu1 %v6477_v37  ;;  %7036 = vmatprep.mubr.f32.mxu1 %v8355_v28 }
0x1288   :  { %7002 = vmatprep.subr.mxu1 %v6476_v2  ;;  %7855 = vmatpush3.msra.mxu0 %v7071_v20  ;;  %v7171_v20 = vld [vmem:[%s9898_s20] sm:$0xff] }
0x1289   :  { %7003 = vmatpush1.msra.mxu1 %v6475_v39  ;;  %7856 = vmatprep.subr.mxu0 %v7086_v44  ;;  %v7270_v44 = vld [vmem:[%s9900_s22 + $0x28] sm:$0xff] }
0x128a   :  { %7670 = vmatmul.mubr.msk.f32.vlgmr.msra.gmra.mxu1 %vm220_vm2, %v6969_v38  ;;  %8178 = vmatprep.subr.mxu1 %v8355_v28 }
0x128b   :  { %8210 = vmatprep.mubr.msk.f32.mxu1 %vm8357_vm3, %v8355_v28  ;;  %7857 = vmatpush3.msra.mxu0 %v7070_v56  ;;  %v7269_v56 = vld [vmem:[%s9900_s22 + $0x20] sm:$0xff] }
0x128c   :  { %7858 = vmatprep.subr.mxu0 %v7085_v25  ;;  %8179 = vmatpush3.msra.mxu1 %v7186_v4  ;;  %v7268_v25 = vld [vmem:[%s9900_s22 + $0x18] sm:$0xff]  ;;  %v7673_v4 = vld [vmem:[%s9904_s23] ss:$0 sm:$0xff] }
0x128d   :  { %7859 = vmatpush3.msra.mxu0 %v7069_v49  ;;  %8180 = vmatprep.subr.mxu1 %v8355_v28 }
0x128e   :  { %7860 = vmatprep.subr.mxu0 %v7084_v57  ;;  %8181 = vmatpush3.msra.mxu1 %v7185_v36  ;;  %v7671_v57 = vld [vmem:[%s9901_s19] ss:$0 sm:$0xff] }
0x128f   :  { %7861 = vmatpush3.msra.mxu0 %v7068_v51  ;;  %8182 = vmatprep.subr.mxu1 %v8355_v28 }
0x1290   :  { %7862 = vmatprep.subr.mxu0 %v7083_v52  ;;  %8183 = vmatpush3.msra.mxu1 %v7184_v54 }
0x1291   :  { %7863 = vmatpush3.msra.mxu0 %v7067_v47  ;;  %8184 = vmatprep.subr.mxu1 %v8355_v28 }
0x1292   :  { %7864 = vmatprep.subr.mxu0 %v7082_v63  ;;  %8185 = vmatpush3.msra.mxu1 %v7183_v45 }
0x1293   :  { %7865 = vmatpush3.msra.mxu0 %v7066_v55  ;;  %8186 = vmatprep.subr.mxu1 %v8355_v28  ;;  %v7267_v55 = vld [vmem:[%s9900_s22 + $0x10] sm:$0xff] }
0x1294   :  { %7866 = vmatprep.subr.mxu0 %v7081_v41  ;;  %8187 = vmatpush3.msra.mxu1 %v7182_v11  ;;  %v7266_v41 = vld [vmem:[%s9900_s22 + $0x8] sm:$0xff]  ;;  %v7438_v11 = vld [vmem:[%s9905_s26] sm:$0xf] }
0x1295   :  { %7867 = vmatpush3.msra.mxu0 %v7065_v6  ;;  %8188 = vmatprep.subr.mxu1 %v8355_v28  ;;  %v7265_v6 = vld [vmem:[%s9900_s22] sm:$0xff] }
0x1296   :  { %7868 = vmatprep.subr.mxu0 %v7080_v27  ;;  %8189 = vmatpush3.msra.mxu1 %v7181_v53  ;;  %v7672_v27 = vld [vmem:[%s9902_s21] ss:$0 sm:$0xff]  ;;  %v33_v53 = vstv %s9906_s27 }
0x1297   :  { %7869 = vmatpush3.msra.mxu0 %v7064_v42  ;;  %8190 = vmatprep.subr.mxu1 %v8355_v28  ;;  %34 = vst [vmem:[#allocation2] sm:$0x1] %v33_v53 }
0x1298   :  { %7870 = vmatprep.subr.mxu0 %v7079_v48  ;;  %8191 = vmatpush3.msra.mxu1 %v7180_v61  ;;  %v7675_v61 = vld [vmem:[%s9907_s25] ss:$0 sm:$0xff] }
0x1299   :  { %7871 = vmatpush3.msra.mxu0 %v7063_v7  ;;  %8192 = vmatprep.subr.mxu1 %v8355_v28 }
0x129a   :  { %7872 = vmatprep.subr.mxu0 %v7078_v14  ;;  %8193 = vmatpush3.msra.mxu1 %v7179_v12 }
0x129b   :  { %7873 = vmatpush3.msra.mxu0 %v7062_v0  ;;  %8194 = vmatprep.subr.mxu1 %v8355_v28  ;;  %v7356_v0 = vld [vmem:[%s9903_s24 + $0x8] sm:$0xff] }
0x129c   :  { %7874 = vmatprep.subr.mxu0 %v7077_v3  ;;  %8195 = vmatpush3.msra.mxu1 %v7178_v62  ;;  %v7355_v3 = vld [vmem:[%s9903_s24] sm:$0xff] }
0x129d   :  { %7875 = vmatpush3.msra.mxu0 %v7061_v8  ;;  %8196 = vmatprep.subr.mxu1 %v8355_v28 }
0x129e   :  { %8213 = vmatprep.subr.mxu0 %v8355_v28  ;;  %8197 = vmatpush3.msra.mxu1 %v7177_v15 }
0x129f   :  { %8198 = vmatprep.subr.mxu1 %v8355_v28 }
0x12a0   :  { %8199 = vmatpush3.msra.mxu1 %v7176_v50 }
0x12a1   :  { %8200 = vmatprep.subr.mxu1 %v8355_v28 }
0x12a2   :  { %8201 = vmatpush3.msra.mxu1 %v7175_v60 }
0x12a3   :  { %8202 = vmatprep.subr.mxu1 %v8355_v28 }
0x12a4   :  { %8203 = vmatpush3.msra.mxu1 %v7174_v33 }
0x12a5   :  { %8204 = vmatprep.subr.mxu1 %v8355_v28 }
0x12a6   :  { %8205 = vmatpush3.msra.mxu1 %v7173_v5 }
0x12a7   :  { %8206 = vmatprep.subr.mxu1 %v8355_v28 }
0x12a8   :  { %8207 = vmatpush3.msra.mxu1 %v7172_v22 }
0x12a9   :  { %8208 = vmatprep.subr.mxu1 %v8355_v28 }
0x12aa   :  { %8209 = vmatpush3.msra.mxu1 %v7171_v20 }
0x12ab   :  { %8232 = vmatprep.subr.mxu1 %v8355_v28 }
0x133a   :  { %v6586_v59 = vpop.f32.mrf.mxu1 }
0x133c   :  { %v6588_v13 = vpop.f32.mrf.mxu1 }
0x133e   :  { %v6698_v17 = vpop.f32.mrf.mxu1 }
0x133f   :  { %v6699_v23 = vadd.f32 %v6698_v17, %v6586_v59 }
0x1340   :  { %v6700_v18 = vpop.f32.mrf.mxu1 }
0x1341   :  { %v6701_v58 = vadd.f32 %v6700_v18, %v6588_v13 }
0x1342   :  { %v6810_v19 = vpop.f32.mrf.mxu1 }
0x1343   :  { %v6815_v26 = vadd.f32 %v6810_v19, %v6699_v23 }
0x1344   :  { %v6812_v21 = vpop.f32.mrf.mxu1 }
0x1345   :  { %v6816_v16 = vadd.f32 %v6812_v21, %v6701_v58 }
0x1346   :  { %v6924_v24 = vpop.f32.mrf.mxu1 }
0x1347   :  { %v6929_v30 = vadd.f32 %v6924_v24, %v6815_v26 }
0x1348   :  { %v6926_v29 = vpop.f32.mrf.mxu1 }
0x1349   :  { %v6930_v32 = vadd.f32 %v6926_v29, %v6816_v16 }
0x134a   :  { %v7038_v31 = vpop.f32.mrf.mxu1 }
0x134b   :  { %v7043_v37 = vadd.f32 %v7038_v31, %v6929_v30 }
0x134c   :  { %v7040_v2 = vpop.f32.mrf.mxu1 }
0x134d   :  { %v7044_v39 = vadd.f32 %v7040_v2, %v6930_v32  ;;  %v7057_v10 = vadd.f32 %v7050_v34, %v7043_v37 }
0x134f   :  { %v7058_v38 = vadd.f32 %v7054_v1, %v7044_v39  ;;  %v7059_v35 = vmax.f32 %v7057_v10, 0.0 }
0x1351   :  { %v7060_v43 = vmax.f32 %v7058_v38, 0.0 }
0x1353   :  { %7164 = vmatprep.mubr.f32.mxu0 %v7060_v43 }
0x1354   :  { %7165 = vmatmul.mubr.f32.vlgmr.msra.gmra.mxu0 %v7059_v35 }
0x1355   :  { %8229 = vmatprep.mubr.msk.f32.mxu0 %vm8357_vm3, %v8355_v28  ;;  %8214 = vmatpush3.msra.mxu0 %v7272_v46 }
0x1356   :  { %8215 = vmatprep.subr.mxu0 %v8355_v28 }
0x1357   :  { %8216 = vmatpush3.msra.mxu0 %v7271_v40 }
0x1358   :  { %8217 = vmatprep.subr.mxu0 %v8355_v28 }
0x1359   :  { %8218 = vmatpush3.msra.mxu0 %v7270_v44 }
0x135a   :  { %8219 = vmatprep.subr.mxu0 %v8355_v28 }
0x135b   :  { %8220 = vmatpush3.msra.mxu0 %v7269_v56 }
0x135c   :  { %8221 = vmatprep.subr.mxu0 %v8355_v28 }
0x135d   :  { %8222 = vmatpush3.msra.mxu0 %v7268_v25 }
0x135e   :  { %8223 = vmatprep.subr.mxu0 %v8355_v28 }
0x135f   :  { %8224 = vmatpush3.msra.mxu0 %v7267_v55 }
0x1360   :  { %8225 = vmatprep.subr.mxu0 %v8355_v28 }
0x1361   :  { %8226 = vmatpush3.msra.mxu0 %v7266_v41 }
0x1362   :  { %8227 = vmatprep.subr.mxu0 %v8355_v28 }
0x1363   :  { %8228 = vmatpush3.msra.mxu0 %v7265_v6 }
0x1414   :  { %v7876_v49 = vpop.f32.mrf.mxu0 }
0x1416   :  { %v7877_v51 = vpop.f32.mrf.mxu0 }
0x1417   :  { %v7878_v52 = vadd.f32 %v7877_v51, %v7876_v49 }
0x1419   :  { %v7167_v47 = vadd.f32 %v7878_v52, %v7671_v57 }
0x141b   :  { %v7170_v63 = vmax.f32 %v7167_v47, 0.0 }
0x141d   :  { %8211 = vmatmul.mubr.f32.vlgmr.msra.gmra.mxu1 %v7170_v63 }
0x141e   :  { %8236 = vmatprep.mubr.msk.f32.mxu1 %vm8357_vm3, %v8355_v28  ;;  %8233 = vmatpush3.msra.mxu1 %v7356_v0 }
0x141f   :  { %8234 = vmatprep.subr.mxu1 %v8355_v28 }
0x1420   :  { %8235 = vmatpush3.msra.mxu1 %v7355_v3 }
0x1421   :  { %8239 = vmatprep.subr.mxu1 %v8355_v28 }
0x14dd   :  { %v7260_v42 = vpop.f32.mrf.mxu1 }
0x14de   :  { %v7261_v48 = vadd.f32 %v7672_v27, %v7260_v42 }
0x14df   :  { %v8212_v7 = vpop.f32.mrf.mxu1 }
0x14e0   :  { %v7264_v14 = vmax.f32 %v7261_v48, 0.0 }
0x14e2   :  { %8230 = vmatmul.mubr.msk.f32.vlgmr.msra.gmra.mxu0 %vm7280_vm10, %v7264_v14 }
0x15a2   :  { %v7350_v36 = vpop.f32.mrf.mxu0 }
0x15a3   :  { %v7351_v8 = vadd.f32 %v7673_v4, %v7350_v36 }
0x15a4   :  { %v8231_v54 = vpop.f32.mrf.mxu0 }
0x15a5   :  { %v7354_v45 = vmax.f32 %v7351_v8, 0.0 }
0x15a7   :  { %8237 = vmatmul.mubr.msk.f32.vlgmr.msra.gmra.mxu1 %vm220_vm2, %v7354_v45 }
0x15a8   :  { %8241 = vmatprep.mubr.msk.f32.mxu1 %vm8357_vm3, %v8355_v28  ;;  %8240 = vmatpush3.msk.msra.mxu1 %vm1891_vm8, %v7438_v11  ;;  %v7677_v28 = vld [vmem:[#allocation2] ss:$0 sm:$0xff] }
0x1667   :  { %v7433_v12 = vpop.f32.mrf.mxu1 }
0x1668   :  { %v7434_v62 = vadd.f32 %v7675_v61, %v7433_v12 }
0x1669   :  { %v8238_v15 = vpop.f32.mrf.mxu1 }
0x166a   :  { %v7437_v50 = vmax.f32 %v7434_v62, 0.0 }
0x166c   :  { %8242 = vmatmul.mubr.msk.f32.vlgmr.msra.gmra.mxu1 %vm534_vm4, %v7437_v50 }
0x172c   :  { %v7518_v59 = vpop.f32.mrf.mxu1 }
0x172d   :  { %v7519_v13 = vadd.f32 %v7677_v28, %v7518_v59 }
0x172e   :  { %v8243_v17 = vpop.f32.mrf.mxu1 }
0x172f   :  { %7523 = vst.msk [vmem:[%s9908_s28] sm:$0x1f] %vm7522_vm11, %v7519_v13 }

</bundles_post_ra>
